<compile_context>
chip_gen: v5e
topology: v5e:2x2
jax: 0.10.0
libtpu: 0.0.40
codegen_flags: <defaults>
</compile_context>

<pallas_src>
import math

import jax
import jax.numpy as jnp
import numpy as np
from jax.experimental import pallas as pl
from jax.experimental.pallas import tpu as pltpu

# ---------------- model config (small, consistent with the module) ----------
BATCH = 2
SEQ = 16
EMBED = 128
NUM_HEADS = 8
HEAD_DIM = EMBED // NUM_HEADS
LN_EPS = 1e-5  # torch.nn.LayerNorm default


# ------------------------------- kernel -------------------------------------
def _layernorm(x, gamma, beta):
    mu = jnp.mean(x, axis=-1, keepdims=True)
    var = jnp.mean((x - mu) ** 2, axis=-1, keepdims=True)
    return (x - mu) * jax.lax.rsqrt(var + LN_EPS) * gamma + beta


def encoder_layer_kernel(x_ref, wqkv_ref, w3_ref, vec_ref, o_ref):
    # w3_ref rows: 0=wo, 1=w1, 2=w2
    # vec_ref rows: 0=bq*scale, 1=bk, 2=bv, 3=bo, 4=b1, 5=b2,
    #               6=g1, 7=be1, 8=g2, 9=be2, 10..15=pad
    bb, s, e = x_ref.shape
    n = bb * s
    x2d = x_ref[...].reshape(n, e)  # (B*S, E): row-wise for all matmuls

    # --- fused QKV projection: one lane-dense (n,128)x(128,384) MXU pass -----
    qkv = jnp.dot(x2d, wqkv_ref[...], preferred_element_type=jnp.float32)
    q2d = qkv[:, 0 * e:1 * e] + vec_ref[0:1, :]   # scale already folded in
    k2d = qkv[:, 1 * e:2 * e] + vec_ref[1:2, :]
    v2d = qkv[:, 2 * e:3 * e] + vec_ref[2:3, :]

    # --- gather heads into a (H*B, S, D) batch (head-major) ------------------
    # Only sublane-splitting reshapes, static 16-lane slices and leading-axis
    # concat are used (no lane-dim-splitting reshape / 4D transpose).
    def to_heads(t2d):
        parts = [
            t2d[:, h * HEAD_DIM:(h + 1) * HEAD_DIM].reshape(bb, s, HEAD_DIM)
            for h in range(NUM_HEADS)
        ]
        return jnp.concatenate(parts, axis=0)  # (H*bb, S, D)

    qh = to_heads(q2d)
    kh = to_heads(k2d)
    vh = to_heads(v2d)

    # --- batched scores + ONE softmax over all heads --------------------------
    # (contraction over last dims, same form as the canonical flash kernel)
    sc = jnp.einsum("gqd,gkd->gqk", qh, kh,
                    preferred_element_type=jnp.float32)        # (H*bb, S, S)
    sc = sc - jnp.max(sc, axis=-1, keepdims=True)
    pr = jnp.exp(sc)
    pr = pr * pl.reciprocal(jnp.sum(pr, axis=-1, keepdims=True), approx=False)
    ctx = jnp.einsum("gqk,gkd->gqd", pr, vh,
                     preferred_element_type=jnp.float32)       # (H*bb, S, D)

    # --- re-assemble heads along lanes (aligned 16-lane offsets) -> (n, E) ---
    ctx2d = jnp.concatenate(
        [ctx[h * bb:(h + 1) * bb].reshape(n, HEAD_DIM)
         for h in range(NUM_HEADS)],
        axis=-1)

    # --- single full-width output projection ----------------------------------
    attn = (jnp.dot(ctx2d, w3_ref[0], preferred_element_type=jnp.float32)
            + vec_ref[3:4, :])

    # --- residual + LayerNorm 1 ------------------------------------------------
    x1 = _layernorm(x2d + attn, vec_ref[6:7, :], vec_ref[7:8, :])

    # --- feed-forward: linear2(relu(linear1(x1))) ------------------------------
    h1 = jnp.maximum(
        jnp.dot(x1, w3_ref[1], preferred_element_type=jnp.float32)
        + vec_ref[4:5, :], 0.0)
    ffn = (jnp.dot(h1, w3_ref[2], preferred_element_type=jnp.float32)
           + vec_ref[5:6, :])

    # --- residual + LayerNorm 2 ------------------------------------------------
    y = _layernorm(x1 + ffn, vec_ref[8:9, :], vec_ref[9:10, :])
    o_ref[...] = y.reshape(bb, s, e)


# --------------------------- host-side packing --------------------------------
def pack_params(p):
    E = EMBED
    scale = 1.0 / math.sqrt(HEAD_DIM)  # 0.25 for D=16 -> exact fold into wq/bq

    wqkv = jnp.concatenate([p["wq"] * scale, p["wk"], p["wv"]], axis=1)  # (E,3E)
    w3 = jnp.stack([p["wo"], p["w1"], p["w2"]])                          # (3,E,E)
    vec = jnp.concatenate(
        [p["bq"] * scale, p["bk"], p["bv"], p["bo"], p["b1"], p["b2"],
         p["g1"], p["be1"], p["g2"], p["be2"],
         jnp.zeros((6, E), jnp.float32)], axis=0)                        # (16,E)
    return wqkv, w3, vec


# ------------------------------ wrapper ----------------------------------------
def transformer_encoder_layer(x, params):
    B, S, E = x.shape
    wqkv, w3, vec = pack_params(params)

    # Single grid step on all generations: the whole problem fits comfortably in
    # VMEM and splitting the tiny batch across cores only duplicates weight DMA.
    in_specs = [
        pl.BlockSpec((B, S, E), lambda i: (0, 0, 0)),
        pl.BlockSpec((E, 3 * E), lambda i: (0, 0)),
        pl.BlockSpec((3, E, E), lambda i: (0, 0, 0)),
        pl.BlockSpec((16, E), lambda i: (0, 0)),
    ]

    return pl.pallas_call(
        encoder_layer_kernel,
        out_shape=jax.ShapeDtypeStruct((B, S, E), jnp.float32),
        grid_spec=pltpu.PrefetchScalarGridSpec(
            num_scalar_prefetch=0,
            grid=(1,),
            in_specs=in_specs,
            out_specs=pl.BlockSpec((B, S, E), lambda i: (0, 0, 0)),
        ),
        compiler_params=pltpu.CompilerParams(
            dimension_semantics=("arbitrary",)),
    )(x, wqkv, w3, vec)


# ------------------------- pure-JAX reference ----------------------------------
def reference_forward(x, p):
    def ln(y, g, b):
        mu = jnp.mean(y, axis=-1, keepdims=True)
        var = jnp.mean((y - mu) ** 2, axis=-1, keepdims=True)
        return (y - mu) / jnp.sqrt(var + LN_EPS) * g + b

    B, S, E = x.shape
    q = (x @ p["wq"] + p["bq"]).reshape(B, S, NUM_HEADS, HEAD_DIM).transpose(0, 2, 1, 3)
    k = (x @ p["wk"] + p["bk"]).reshape(B, S, NUM_HEADS, HEAD_DIM).transpose(0, 2, 1, 3)
    v = (x @ p["wv"] + p["bv"]).reshape(B, S, NUM_HEADS, HEAD_DIM).transpose(0, 2, 1, 3)
    e = jnp.einsum("bhqd,bhkd->bhqk", q, k) / np.sqrt(HEAD_DIM)
    a = jax.nn.softmax(e, axis=-1)
    o = jnp.einsum("bhqk,bhkd->bhqd", a, v).transpose(0, 2, 1, 3).reshape(B, S, E)
    o = o @ p["wo"] + p["bo"]
    x1 = ln(x + o, p["g1"], p["be1"])
    ffn = jnp.maximum(x1 @ p["w1"] + p["b1"], 0.0) @ p["w2"] + p["b2"]
    return ln(x1 + ffn, p["g2"], p["be2"])


# --------------------------------- main ----------------------------------------
def init_params(key):
    params = {}
    names_mat = ["wq", "wk", "wv", "wo", "w1", "w2"]
    names_bias = ["bq", "bk", "bv", "bo", "b1", "b2"]
    keys = jax.random.split(key, len(names_mat) + len(names_bias))
    bound = 1.0 / math.sqrt(EMBED)  # torch nn.Linear default init range
    for i, n in enumerate(names_mat):
        params[n] = jax.random.uniform(
            keys[i], (EMBED, EMBED), jnp.float32, -bound, bound)
    for i, n in enumerate(names_bias):
        params[n] = jax.random.uniform(
            keys[len(names_mat) + i], (1, EMBED), jnp.float32, -bound, bound)
    # LayerNorm affine params (torch default: weight=1, bias=0)
    params["g1"] = jnp.ones((1, EMBED), jnp.float32)
    params["be1"] = jnp.zeros((1, EMBED), jnp.float32)
    params["g2"] = jnp.ones((1, EMBED), jnp.float32)
    params["be2"] = jnp.zeros((1, EMBED), jnp.float32)
    return params


if __name__ == "__main__":
    key = jax.random.PRNGKey(0)
    kx, kp = jax.random.split(key)
    x = jax.random.normal(kx, (BATCH, SEQ, EMBED), jnp.float32)
    params = init_params(kp)

    out = transformer_encoder_layer(x, params)
    out = jax.block_until_ready(out)

    ref = reference_forward(x, params)
    np.testing.assert_allclose(np.asarray(out), np.asarray(ref),
                               rtol=1e-4, atol=1e-4)

    print("KERNEL_OK")
</pallas_src>

<mosaic_0001>
module attributes {stable_mosaic.version = 11 : i64} {
  func.func @encoder_layer_kernel(%arg0: i32, %arg1: memref<2x16x128xf32, #tpu.memory_space<vmem>>, %arg2: memref<128x384xf32, #tpu.memory_space<vmem>>, %arg3: memref<3x128x128xf32, #tpu.memory_space<vmem>>, %arg4: memref<16x128xf32, #tpu.memory_space<vmem>>, %arg5: memref<2x16x128xf32, #tpu.memory_space<vmem>>) attributes {dimension_semantics = [#tpu.dimension_semantics<arbitrary>], iteration_bounds = array<i64: 1>, scalar_prefetch = 0 : i64, scratch_operands = 0 : i64, tpu.core_type = #tpu.core_type<tc>, window_params = [{pipeline_mode = #tpu.pipeline_mode<synchronous>, transform_indices = @transform_0, window_bounds = array<i64: 2, 16, 128>}, {pipeline_mode = #tpu.pipeline_mode<synchronous>, transform_indices = @transform_1, window_bounds = array<i64: 128, 384>}, {pipeline_mode = #tpu.pipeline_mode<synchronous>, transform_indices = @transform_2, window_bounds = array<i64: 3, 128, 128>}, {pipeline_mode = #tpu.pipeline_mode<synchronous>, transform_indices = @transform_3, window_bounds = array<i64: 16, 128>}, {pipeline_mode = #tpu.pipeline_mode<synchronous>, transform_indices = @transform_4, window_bounds = array<i64: 2, 16, 128>}]} {
    %c0 = arith.constant 0 : index
    %c0_0 = arith.constant 0 : index
    %c0_1 = arith.constant 0 : index
    %0 = vector.load %arg1[%c0, %c0_0, %c0_1] : memref<2x16x128xf32, #tpu.memory_space<vmem>>, vector<2x16x128xf32>
    %1 = vector.shape_cast %0 : vector<2x16x128xf32> to vector<32x128xf32>
    %c0_2 = arith.constant 0 : index
    %c0_3 = arith.constant 0 : index
    %2 = vector.load %arg2[%c0_2, %c0_3] : memref<128x384xf32, #tpu.memory_space<vmem>>, vector<128x384xf32>
    %cst = arith.constant dense<0.000000e+00> : vector<32x384xf32>
    %3 = tpu.matmul %1, %2, %cst {dimension_numbers = #tpu.dot_dimension_numbers<[1], [0], [0], [1], [0, 0, 1, 1], [], []>} : vector<32x128xf32>, vector<128x384xf32>, vector<32x384xf32> -> vector<32x384xf32>
    %4 = vector.extract_strided_slice %3 {offsets = [0, 0], sizes = [32, 128], strides = [1, 1]} : vector<32x384xf32> to vector<32x128xf32>
    %c0_4 = arith.constant 0 : index
    %c0_5 = arith.constant 0 : index
    %5 = vector.load %arg4[%c0_4, %c0_5] : memref<16x128xf32, #tpu.memory_space<vmem>>, vector<1x128xf32>
    %6 = vector.broadcast %5 : vector<1x128xf32> to vector<32x128xf32>
    %7 = arith.addf %4, %6 : vector<32x128xf32>
    %8 = vector.extract_strided_slice %3 {offsets = [0, 128], sizes = [32, 128], strides = [1, 1]} : vector<32x384xf32> to vector<32x128xf32>
    %c1 = arith.constant 1 : index
    %c0_6 = arith.constant 0 : index
    %9 = vector.load %arg4[%c1, %c0_6] : memref<16x128xf32, #tpu.memory_space<vmem>>, vector<1x128xf32>
    %10 = vector.broadcast %9 : vector<1x128xf32> to vector<32x128xf32>
    %11 = arith.addf %8, %10 : vector<32x128xf32>
    %12 = vector.extract_strided_slice %3 {offsets = [0, 256], sizes = [32, 128], strides = [1, 1]} : vector<32x384xf32> to vector<32x128xf32>
    %c2 = arith.constant 2 : index
    %c0_7 = arith.constant 0 : index
    %13 = vector.load %arg4[%c2, %c0_7] : memref<16x128xf32, #tpu.memory_space<vmem>>, vector<1x128xf32>
    %14 = vector.broadcast %13 : vector<1x128xf32> to vector<32x128xf32>
    %15 = arith.addf %12, %14 : vector<32x128xf32>
    %16 = vector.extract_strided_slice %7 {offsets = [0, 0], sizes = [32, 16], strides = [1, 1]} : vector<32x128xf32> to vector<32x16xf32>
    %17 = vector.shape_cast %16 : vector<32x16xf32> to vector<2x16x16xf32>
    %18 = vector.extract_strided_slice %7 {offsets = [0, 16], sizes = [32, 16], strides = [1, 1]} : vector<32x128xf32> to vector<32x16xf32>
    %19 = vector.shape_cast %18 : vector<32x16xf32> to vector<2x16x16xf32>
    %20 = vector.extract_strided_slice %7 {offsets = [0, 32], sizes = [32, 16], strides = [1, 1]} : vector<32x128xf32> to vector<32x16xf32>
    %21 = vector.shape_cast %20 : vector<32x16xf32> to vector<2x16x16xf32>
    %22 = vector.extract_strided_slice %7 {offsets = [0, 48], sizes = [32, 16], strides = [1, 1]} : vector<32x128xf32> to vector<32x16xf32>
    %23 = vector.shape_cast %22 : vector<32x16xf32> to vector<2x16x16xf32>
    %24 = vector.extract_strided_slice %7 {offsets = [0, 64], sizes = [32, 16], strides = [1, 1]} : vector<32x128xf32> to vector<32x16xf32>
    %25 = vector.shape_cast %24 : vector<32x16xf32> to vector<2x16x16xf32>
    %26 = vector.extract_strided_slice %7 {offsets = [0, 80], sizes = [32, 16], strides = [1, 1]} : vector<32x128xf32> to vector<32x16xf32>
    %27 = vector.shape_cast %26 : vector<32x16xf32> to vector<2x16x16xf32>
    %28 = vector.extract_strided_slice %7 {offsets = [0, 96], sizes = [32, 16], strides = [1, 1]} : vector<32x128xf32> to vector<32x16xf32>
    %29 = vector.shape_cast %28 : vector<32x16xf32> to vector<2x16x16xf32>
    %30 = vector.extract_strided_slice %7 {offsets = [0, 112], sizes = [32, 16], strides = [1, 1]} : vector<32x128xf32> to vector<32x16xf32>
    %31 = vector.shape_cast %30 : vector<32x16xf32> to vector<2x16x16xf32>
    %32 = tpu.concatenate %17, %19, %21, %23, %25, %27, %29, %31 in 0 : vector<2x16x16xf32>, vector<2x16x16xf32>, vector<2x16x16xf32>, vector<2x16x16xf32>, vector<2x16x16xf32>, vector<2x16x16xf32>, vector<2x16x16xf32>, vector<2x16x16xf32> -> vector<16x16x16xf32>
    %33 = vector.extract_strided_slice %11 {offsets = [0, 0], sizes = [32, 16], strides = [1, 1]} : vector<32x128xf32> to vector<32x16xf32>
    %34 = vector.shape_cast %33 : vector<32x16xf32> to vector<2x16x16xf32>
    %35 = vector.extract_strided_slice %11 {offsets = [0, 16], sizes = [32, 16], strides = [1, 1]} : vector<32x128xf32> to vector<32x16xf32>
    %36 = vector.shape_cast %35 : vector<32x16xf32> to vector<2x16x16xf32>
    %37 = vector.extract_strided_slice %11 {offsets = [0, 32], sizes = [32, 16], strides = [1, 1]} : vector<32x128xf32> to vector<32x16xf32>
    %38 = vector.shape_cast %37 : vector<32x16xf32> to vector<2x16x16xf32>
    %39 = vector.extract_strided_slice %11 {offsets = [0, 48], sizes = [32, 16], strides = [1, 1]} : vector<32x128xf32> to vector<32x16xf32>
    %40 = vector.shape_cast %39 : vector<32x16xf32> to vector<2x16x16xf32>
    %41 = vector.extract_strided_slice %11 {offsets = [0, 64], sizes = [32, 16], strides = [1, 1]} : vector<32x128xf32> to vector<32x16xf32>
    %42 = vector.shape_cast %41 : vector<32x16xf32> to vector<2x16x16xf32>
    %43 = vector.extract_strided_slice %11 {offsets = [0, 80], sizes = [32, 16], strides = [1, 1]} : vector<32x128xf32> to vector<32x16xf32>
    %44 = vector.shape_cast %43 : vector<32x16xf32> to vector<2x16x16xf32>
    %45 = vector.extract_strided_slice %11 {offsets = [0, 96], sizes = [32, 16], strides = [1, 1]} : vector<32x128xf32> to vector<32x16xf32>
    %46 = vector.shape_cast %45 : vector<32x16xf32> to vector<2x16x16xf32>
    %47 = vector.extract_strided_slice %11 {offsets = [0, 112], sizes = [32, 16], strides = [1, 1]} : vector<32x128xf32> to vector<32x16xf32>
    %48 = vector.shape_cast %47 : vector<32x16xf32> to vector<2x16x16xf32>
    %49 = tpu.concatenate %34, %36, %38, %40, %42, %44, %46, %48 in 0 : vector<2x16x16xf32>, vector<2x16x16xf32>, vector<2x16x16xf32>, vector<2x16x16xf32>, vector<2x16x16xf32>, vector<2x16x16xf32>, vector<2x16x16xf32>, vector<2x16x16xf32> -> vector<16x16x16xf32>
    %50 = vector.extract_strided_slice %15 {offsets = [0, 0], sizes = [32, 16], strides = [1, 1]} : vector<32x128xf32> to vector<32x16xf32>
    %51 = vector.shape_cast %50 : vector<32x16xf32> to vector<2x16x16xf32>
    %52 = vector.extract_strided_slice %15 {offsets = [0, 16], sizes = [32, 16], strides = [1, 1]} : vector<32x128xf32> to vector<32x16xf32>
    %53 = vector.shape_cast %52 : vector<32x16xf32> to vector<2x16x16xf32>
    %54 = vector.extract_strided_slice %15 {offsets = [0, 32], sizes = [32, 16], strides = [1, 1]} : vector<32x128xf32> to vector<32x16xf32>
    %55 = vector.shape_cast %54 : vector<32x16xf32> to vector<2x16x16xf32>
    %56 = vector.extract_strided_slice %15 {offsets = [0, 48], sizes = [32, 16], strides = [1, 1]} : vector<32x128xf32> to vector<32x16xf32>
    %57 = vector.shape_cast %56 : vector<32x16xf32> to vector<2x16x16xf32>
    %58 = vector.extract_strided_slice %15 {offsets = [0, 64], sizes = [32, 16], strides = [1, 1]} : vector<32x128xf32> to vector<32x16xf32>
    %59 = vector.shape_cast %58 : vector<32x16xf32> to vector<2x16x16xf32>
    %60 = vector.extract_strided_slice %15 {offsets = [0, 80], sizes = [32, 16], strides = [1, 1]} : vector<32x128xf32> to vector<32x16xf32>
    %61 = vector.shape_cast %60 : vector<32x16xf32> to vector<2x16x16xf32>
    %62 = vector.extract_strided_slice %15 {offsets = [0, 96], sizes = [32, 16], strides = [1, 1]} : vector<32x128xf32> to vector<32x16xf32>
    %63 = vector.shape_cast %62 : vector<32x16xf32> to vector<2x16x16xf32>
    %64 = vector.extract_strided_slice %15 {offsets = [0, 112], sizes = [32, 16], strides = [1, 1]} : vector<32x128xf32> to vector<32x16xf32>
    %65 = vector.shape_cast %64 : vector<32x16xf32> to vector<2x16x16xf32>
    %66 = tpu.concatenate %51, %53, %55, %57, %59, %61, %63, %65 in 0 : vector<2x16x16xf32>, vector<2x16x16xf32>, vector<2x16x16xf32>, vector<2x16x16xf32>, vector<2x16x16xf32>, vector<2x16x16xf32>, vector<2x16x16xf32>, vector<2x16x16xf32> -> vector<16x16x16xf32>
    "tpu.trace_start"() <{level = 10 : i32, message = "gqd,gkd->gqk"}> : () -> ()
    %cst_8 = arith.constant dense<0.000000e+00> : vector<16x16x16xf32>
    %67 = tpu.matmul %32, %49, %cst_8 {dimension_numbers = #tpu.dot_dimension_numbers<[2], [2], [1], [1], [0, 0, 0, 1, 1, 1], [0], [0]>} : vector<16x16x16xf32>, vector<16x16x16xf32>, vector<16x16x16xf32> -> vector<16x16x16xf32>
    "tpu.trace_stop"() : () -> ()
    %cst_9 = arith.constant dense<0xFF800000> : vector<16x16xf32>
    %68 = vector.multi_reduction <maximumf>, %67, %cst_9 [2] : vector<16x16x16xf32> to vector<16x16xf32>
    %69 = vector.shape_cast %68 : vector<16x16xf32> to vector<16x16x1xf32>
    %70 = vector.broadcast %69 : vector<16x16x1xf32> to vector<16x16x16xf32>
    %71 = arith.subf %67, %70 : vector<16x16x16xf32>
    %72 = math.exp %71 : vector<16x16x16xf32>
    %cst_10 = arith.constant dense<0.000000e+00> : vector<16x16xf32>
    %73 = vector.multi_reduction <add>, %72, %cst_10 [2] : vector<16x16x16xf32> to vector<16x16xf32>
    %74 = vector.shape_cast %73 : vector<16x16xf32> to vector<16x16x1xf32>
    %75 = tpu.reciprocal %74 : vector<16x16x1xf32> -> vector<16x16x1xf32>
    %76 = vector.broadcast %75 : vector<16x16x1xf32> to vector<16x16x16xf32>
    %77 = arith.mulf %72, %76 : vector<16x16x16xf32>
    "tpu.trace_start"() <{level = 10 : i32, message = "gqk,gkd->gqd"}> : () -> ()
    %cst_11 = arith.constant dense<0.000000e+00> : vector<16x16x16xf32>
    %78 = tpu.matmul %77, %66, %cst_11 {dimension_numbers = #tpu.dot_dimension_numbers<[2], [1], [1], [2], [0, 0, 0, 1, 1, 2], [0], [0]>} : vector<16x16x16xf32>, vector<16x16x16xf32>, vector<16x16x16xf32> -> vector<16x16x16xf32>
    "tpu.trace_stop"() : () -> ()
    %79 = vector.extract_strided_slice %78 {offsets = [0, 0, 0], sizes = [2, 16, 16], strides = [1, 1, 1]} : vector<16x16x16xf32> to vector<2x16x16xf32>
    %80 = vector.shape_cast %79 : vector<2x16x16xf32> to vector<32x16xf32>
    %81 = vector.extract_strided_slice %78 {offsets = [2, 0, 0], sizes = [2, 16, 16], strides = [1, 1, 1]} : vector<16x16x16xf32> to vector<2x16x16xf32>
    %82 = vector.shape_cast %81 : vector<2x16x16xf32> to vector<32x16xf32>
    %83 = vector.extract_strided_slice %78 {offsets = [4, 0, 0], sizes = [2, 16, 16], strides = [1, 1, 1]} : vector<16x16x16xf32> to vector<2x16x16xf32>
    %84 = vector.shape_cast %83 : vector<2x16x16xf32> to vector<32x16xf32>
    %85 = vector.extract_strided_slice %78 {offsets = [6, 0, 0], sizes = [2, 16, 16], strides = [1, 1, 1]} : vector<16x16x16xf32> to vector<2x16x16xf32>
    %86 = vector.shape_cast %85 : vector<2x16x16xf32> to vector<32x16xf32>
    %87 = vector.extract_strided_slice %78 {offsets = [8, 0, 0], sizes = [2, 16, 16], strides = [1, 1, 1]} : vector<16x16x16xf32> to vector<2x16x16xf32>
    %88 = vector.shape_cast %87 : vector<2x16x16xf32> to vector<32x16xf32>
    %89 = vector.extract_strided_slice %78 {offsets = [10, 0, 0], sizes = [2, 16, 16], strides = [1, 1, 1]} : vector<16x16x16xf32> to vector<2x16x16xf32>
    %90 = vector.shape_cast %89 : vector<2x16x16xf32> to vector<32x16xf32>
    %91 = vector.extract_strided_slice %78 {offsets = [12, 0, 0], sizes = [2, 16, 16], strides = [1, 1, 1]} : vector<16x16x16xf32> to vector<2x16x16xf32>
    %92 = vector.shape_cast %91 : vector<2x16x16xf32> to vector<32x16xf32>
    %93 = vector.extract_strided_slice %78 {offsets = [14, 0, 0], sizes = [2, 16, 16], strides = [1, 1, 1]} : vector<16x16x16xf32> to vector<2x16x16xf32>
    %94 = vector.shape_cast %93 : vector<2x16x16xf32> to vector<32x16xf32>
    %95 = tpu.concatenate %80, %82, %84, %86, %88, %90, %92, %94 in 1 : vector<32x16xf32>, vector<32x16xf32>, vector<32x16xf32>, vector<32x16xf32>, vector<32x16xf32>, vector<32x16xf32>, vector<32x16xf32>, vector<32x16xf32> -> vector<32x128xf32>
    %c0_12 = arith.constant 0 : index
    %c0_13 = arith.constant 0 : index
    %c0_14 = arith.constant 0 : index
    %96 = vector.load %arg3[%c0_12, %c0_13, %c0_14] : memref<3x128x128xf32, #tpu.memory_space<vmem>>, vector<1x128x128xf32>
    %97 = vector.shape_cast %96 : vector<1x128x128xf32> to vector<128x128xf32>
    %cst_15 = arith.constant dense<0.000000e+00> : vector<32x128xf32>
    %98 = tpu.matmul %95, %97, %cst_15 {dimension_numbers = #tpu.dot_dimension_numbers<[1], [0], [0], [1], [0, 0, 1, 1], [], []>} : vector<32x128xf32>, vector<128x128xf32>, vector<32x128xf32> -> vector<32x128xf32>
    %c3 = arith.constant 3 : index
    %c0_16 = arith.constant 0 : index
    %99 = vector.load %arg4[%c3, %c0_16] : memref<16x128xf32, #tpu.memory_space<vmem>>, vector<1x128xf32>
    %100 = vector.broadcast %99 : vector<1x128xf32> to vector<32x128xf32>
    %101 = arith.addf %98, %100 : vector<32x128xf32>
    %102 = arith.addf %1, %101 : vector<32x128xf32>
    %c6 = arith.constant 6 : index
    %c0_17 = arith.constant 0 : index
    %103 = vector.load %arg4[%c6, %c0_17] : memref<16x128xf32, #tpu.memory_space<vmem>>, vector<1x128xf32>
    %c7 = arith.constant 7 : index
    %c0_18 = arith.constant 0 : index
    %104 = vector.load %arg4[%c7, %c0_18] : memref<16x128xf32, #tpu.memory_space<vmem>>, vector<1x128xf32>
    %cst_19 = arith.constant dense<0.000000e+00> : vector<32xf32>
    %105 = vector.multi_reduction <add>, %102, %cst_19 [1] : vector<32x128xf32> to vector<32xf32>
    %106 = vector.shape_cast %105 : vector<32xf32> to vector<32x1xf32>
    %cst_20 = arith.constant 1.280000e+02 : f32
    %107 = vector.broadcast %cst_20 : f32 to vector<32x1xf32>
    %108 = arith.divf %106, %107 : vector<32x1xf32>
    %109 = vector.broadcast %108 : vector<32x1xf32> to vector<32x128xf32>
    %110 = arith.subf %102, %109 : vector<32x128xf32>
    %111 = arith.mulf %110, %110 : vector<32x128xf32>
    %cst_21 = arith.constant dense<0.000000e+00> : vector<32xf32>
    %112 = vector.multi_reduction <add>, %111, %cst_21 [1] : vector<32x128xf32> to vector<32xf32>
    %113 = vector.shape_cast %112 : vector<32xf32> to vector<32x1xf32>
    %cst_22 = arith.constant 1.280000e+02 : f32
    %114 = vector.broadcast %cst_22 : f32 to vector<32x1xf32>
    %115 = arith.divf %113, %114 : vector<32x1xf32>
    %116 = vector.broadcast %108 : vector<32x1xf32> to vector<32x128xf32>
    %117 = arith.subf %102, %116 : vector<32x128xf32>
    %cst_23 = arith.constant 9.99999974E-6 : f32
    %118 = vector.broadcast %cst_23 : f32 to vector<32x1xf32>
    %119 = arith.addf %115, %118 : vector<32x1xf32>
    %120 = math.rsqrt %119 : vector<32x1xf32>
    %121 = vector.broadcast %120 : vector<32x1xf32> to vector<32x128xf32>
    %122 = arith.mulf %117, %121 : vector<32x128xf32>
    %123 = vector.broadcast %103 : vector<1x128xf32> to vector<32x128xf32>
    %124 = arith.mulf %122, %123 : vector<32x128xf32>
    %125 = vector.broadcast %104 : vector<1x128xf32> to vector<32x128xf32>
    %126 = arith.addf %124, %125 : vector<32x128xf32>
    %c1_24 = arith.constant 1 : index
    %c0_25 = arith.constant 0 : index
    %c0_26 = arith.constant 0 : index
    %127 = vector.load %arg3[%c1_24, %c0_25, %c0_26] : memref<3x128x128xf32, #tpu.memory_space<vmem>>, vector<1x128x128xf32>
    %128 = vector.shape_cast %127 : vector<1x128x128xf32> to vector<128x128xf32>
    %cst_27 = arith.constant dense<0.000000e+00> : vector<32x128xf32>
    %129 = tpu.matmul %126, %128, %cst_27 {dimension_numbers = #tpu.dot_dimension_numbers<[1], [0], [0], [1], [0, 0, 1, 1], [], []>} : vector<32x128xf32>, vector<128x128xf32>, vector<32x128xf32> -> vector<32x128xf32>
    %c4 = arith.constant 4 : index
    %c0_28 = arith.constant 0 : index
    %130 = vector.load %arg4[%c4, %c0_28] : memref<16x128xf32, #tpu.memory_space<vmem>>, vector<1x128xf32>
    %131 = vector.broadcast %130 : vector<1x128xf32> to vector<32x128xf32>
    %132 = arith.addf %129, %131 : vector<32x128xf32>
    %cst_29 = arith.constant 0.000000e+00 : f32
    %133 = vector.broadcast %cst_29 : f32 to vector<32x128xf32>
    %134 = arith.maximumf %132, %133 : vector<32x128xf32>
    %c2_30 = arith.constant 2 : index
    %c0_31 = arith.constant 0 : index
    %c0_32 = arith.constant 0 : index
    %135 = vector.load %arg3[%c2_30, %c0_31, %c0_32] : memref<3x128x128xf32, #tpu.memory_space<vmem>>, vector<1x128x128xf32>
    %136 = vector.shape_cast %135 : vector<1x128x128xf32> to vector<128x128xf32>
    %cst_33 = arith.constant dense<0.000000e+00> : vector<32x128xf32>
    %137 = tpu.matmul %134, %136, %cst_33 {dimension_numbers = #tpu.dot_dimension_numbers<[1], [0], [0], [1], [0, 0, 1, 1], [], []>} : vector<32x128xf32>, vector<128x128xf32>, vector<32x128xf32> -> vector<32x128xf32>
    %c5 = arith.constant 5 : index
    %c0_34 = arith.constant 0 : index
    %138 = vector.load %arg4[%c5, %c0_34] : memref<16x128xf32, #tpu.memory_space<vmem>>, vector<1x128xf32>
    %139 = vector.broadcast %138 : vector<1x128xf32> to vector<32x128xf32>
    %140 = arith.addf %137, %139 : vector<32x128xf32>
    %141 = arith.addf %126, %140 : vector<32x128xf32>
    %c8 = arith.constant 8 : index
    %c0_35 = arith.constant 0 : index
    %142 = vector.load %arg4[%c8, %c0_35] : memref<16x128xf32, #tpu.memory_space<vmem>>, vector<1x128xf32>
    %c9 = arith.constant 9 : index
    %c0_36 = arith.constant 0 : index
    %143 = vector.load %arg4[%c9, %c0_36] : memref<16x128xf32, #tpu.memory_space<vmem>>, vector<1x128xf32>
    %cst_37 = arith.constant dense<0.000000e+00> : vector<32xf32>
    %144 = vector.multi_reduction <add>, %141, %cst_37 [1] : vector<32x128xf32> to vector<32xf32>
    %145 = vector.shape_cast %144 : vector<32xf32> to vector<32x1xf32>
    %cst_38 = arith.constant 1.280000e+02 : f32
    %146 = vector.broadcast %cst_38 : f32 to vector<32x1xf32>
    %147 = arith.divf %145, %146 : vector<32x1xf32>
    %148 = vector.broadcast %147 : vector<32x1xf32> to vector<32x128xf32>
    %149 = arith.subf %141, %148 : vector<32x128xf32>
    %150 = arith.mulf %149, %149 : vector<32x128xf32>
    %cst_39 = arith.constant dense<0.000000e+00> : vector<32xf32>
    %151 = vector.multi_reduction <add>, %150, %cst_39 [1] : vector<32x128xf32> to vector<32xf32>
    %152 = vector.shape_cast %151 : vector<32xf32> to vector<32x1xf32>
    %cst_40 = arith.constant 1.280000e+02 : f32
    %153 = vector.broadcast %cst_40 : f32 to vector<32x1xf32>
    %154 = arith.divf %152, %153 : vector<32x1xf32>
    %155 = vector.broadcast %147 : vector<32x1xf32> to vector<32x128xf32>
    %156 = arith.subf %141, %155 : vector<32x128xf32>
    %cst_41 = arith.constant 9.99999974E-6 : f32
    %157 = vector.broadcast %cst_41 : f32 to vector<32x1xf32>
    %158 = arith.addf %154, %157 : vector<32x1xf32>
    %159 = math.rsqrt %158 : vector<32x1xf32>
    %160 = vector.broadcast %159 : vector<32x1xf32> to vector<32x128xf32>
    %161 = arith.mulf %156, %160 : vector<32x128xf32>
    %162 = vector.broadcast %142 : vector<1x128xf32> to vector<32x128xf32>
    %163 = arith.mulf %161, %162 : vector<32x128xf32>
    %164 = vector.broadcast %143 : vector<1x128xf32> to vector<32x128xf32>
    %165 = arith.addf %163, %164 : vector<32x128xf32>
    %166 = vector.shape_cast %165 : vector<32x128xf32> to vector<2x16x128xf32>
    %c0_42 = arith.constant 0 : index
    %c0_43 = arith.constant 0 : index
    %c0_44 = arith.constant 0 : index
    %167 = vector.load %arg5[%c0_42, %c0_43, %c0_44] : memref<2x16x128xf32, #tpu.memory_space<vmem>>, vector<2x16x128xf32>
    tpu.vector_store %arg5[%c0_42, %c0_43, %c0_44], %166 {strides = array<i32>} : memref<2x16x128xf32, #tpu.memory_space<vmem>>, vector<2x16x128xf32>,
    return
  }
  func.func @transform_0(%arg0: i32) -> (i32, i32, i32) {
    %c0_i32 = arith.constant 0 : i32
    %c0_i32_0 = arith.constant 0 : i32
    %c0_i32_1 = arith.constant 0 : i32
    %c0_i32_2 = arith.constant 0 : i32
    return %c0_i32, %c0_i32_0, %c0_i32_1 : i32, i32, i32
  }
  func.func @transform_1(%arg0: i32) -> (i32, i32) {
    %c0_i32 = arith.constant 0 : i32
    %c0_i32_0 = arith.constant 0 : i32
    %c0_i32_1 = arith.constant 0 : i32
    return %c0_i32, %c0_i32_0 : i32, i32
  }
  func.func @transform_2(%arg0: i32) -> (i32, i32, i32) {
    %c0_i32 = arith.constant 0 : i32
    %c0_i32_0 = arith.constant 0 : i32
    %c0_i32_1 = arith.constant 0 : i32
    %c0_i32_2 = arith.constant 0 : i32
    return %c0_i32, %c0_i32_0, %c0_i32_1 : i32, i32, i32
  }
  func.func @transform_3(%arg0: i32) -> (i32, i32) {
    %c0_i32 = arith.constant 0 : i32
    %c0_i32_0 = arith.constant 0 : i32
    %c0_i32_1 = arith.constant 0 : i32
    return %c0_i32, %c0_i32_0 : i32, i32
  }
  func.func @transform_4(%arg0: i32) -> (i32, i32, i32) {
    %c0_i32 = arith.constant 0 : i32
    %c0_i32_0 = arith.constant 0 : i32
    %c0_i32_1 = arith.constant 0 : i32
    %c0_i32_2 = arith.constant 0 : i32
    return %c0_i32, %c0_i32_0, %c0_i32_1 : i32, i32, i32
  }
}

</mosaic_0001>

<bundles_post_ra>
// kernel: tpu_custom_call.1
= control target key start
LH: loop header
LB: loop body
LE: loop exit
PB: predicated region body
PF: predicated region fallthrough
CT: control target
= control target key end

     0   :  { %9 = vsyncpa [#allocation3], 0  ;;  %s4438_s0 = inlined_call_operand.hbm [shape: f32[2,16,128], index: 0, kind: input, shape index: {}]   ;;  %s4439_s1 = inlined_call_operand.hbm [shape: f32[128,384], index: 1, kind: input, shape index: {}]   ;;  %s4440_s2 = inlined_call_operand.hbm [shape: f32[3,128,128], index: 2, kind: input, shape index: {}]   ;;  %s4441_s3 = inlined_call_operand.hbm [shape: f32[16,128], index: 3, kind: input, shape index: {}]   ;;  %s4442_s4 = inlined_call_operand.hbm [shape: f32[2,16,128], index: 4, kind: output, shape index: {}]  }
   0x1   :  { %10 = vsyncpa [#allocation6], 0 }
   0x2   :  { %11 = vsyncpa [#allocation9], 0  ;;  %s30_s17 = sshll.u32 %s4439_s1, 4  ;;  %s31_s17 = int_to_ptr.hbm [resolvable:$true] %s30_s17 }
   0x3   :  { %12 = vsyncpa [#allocation4], 0  ;;  %s3234_s18 = smov [#allocation5]   ;;  %s17_s22 = sshll.u32 %s4438_s0, 4  ;;  %s18_s22 = int_to_ptr.hbm [resolvable:$true] %s17_s22 }
   0x4   :  { %s32_s19 = sshll.u32 %s3234_s18, 4  ;;  %s3235_s23 = smov 384   ;;  %s33_s19 = int_to_ptr.vmem [resolvable:$true] %s32_s19 }
   0x5   :  { %s3236_s24 = smov 24   ;;  %s3237_s25 = smov [#allocation2]  }
   0x6   :  { %38 = dma.hbm_to_vmem [thread:$0]  %s31_s17, 6144, %s33_s19, [#allocation6], %s3235_s23, %s3235_s23, %s3236_s24  }
   0x7   :  { %s19_s26 = sshll.u32 %s3237_s25, 4  ;;  %s3238_s27 = smov 128   ;;  %s20_s26 = int_to_ptr.vmem [resolvable:$true] %s19_s26 }
   0x8   :  { %s3239_s28 = smov 8   ;;  %s43_s30 = sshll.u32 %s4440_s2, 4  ;;  %s44_s30 = int_to_ptr.hbm [resolvable:$true] %s43_s30 }
   0x9   :  { %25 = dma.hbm_to_vmem [thread:$0]  %s18_s22, 512, %s20_s26, [#allocation3], %s3238_s27, %s3238_s27, %s3239_s28  }
   0xa   :  { %s3240_s5 = smov [#allocation7]   ;;  %s56_s8 = sshll.u32 %s4441_s3, 4  ;;  %s57_s8 = int_to_ptr.hbm [resolvable:$true] %s56_s8 }
   0xb   :  { %s45_s0 = sshll.u32 %s3240_s5, 4  ;;  %s3241_s9 = smov [#allocation8]   ;;  %s46_s0 = int_to_ptr.vmem [resolvable:$true] %s45_s0 }
   0xc   :  { %51 = dma.hbm_to_vmem [thread:$0]  %s44_s30, 6144, %s46_s0, [#allocation6], %s3238_s27, %s3238_s27, %s3239_s28  }
   0xd   :  { %s58_s10 = sshll.u32 %s3241_s9, 4  ;;  %s59_s10 = int_to_ptr.vmem [resolvable:$true] %s58_s10 }
   0xe   :  { %64 = dma.hbm_to_vmem [thread:$0]  %s57_s8, 256, %s59_s10, [#allocation9], %s3238_s27, %s3238_s27, %s3239_s28  }
   0xf   :  { %3226 = dma.done.wait [#allocation3], 512  }
  0x10   :  { %3227 = vsyncadd [#allocation3], 4294966784 }
  0x11   :  { %3228 = dma.done.wait [#allocation6], 12288  }
  0x12   :  { %3229 = vsyncadd [#allocation6], 4294955008 }
  0x13   :  { %3230 = dma.done.wait [#allocation9], 256  }
  0x14   :  { %3231 = vsyncadd [#allocation9], 4294967040  ;;  %v130_v0 = vld [vmem:[#allocation5 + $0x168] sm:$0xff]  ;;  %v131_v1 = vld [vmem:[#allocation5 + $0x170] sm:$0xff]  ;;  %s3242_s2 = smov 112   ;;  %s3243_s3 = smov 80  }
  0x15   :  { %v127_v2 = vld [vmem:[#allocation5 + $0x150] sm:$0xff]  ;;  %133 = vmatpush.msra.mxu0 %v130_v0  ;;  %162 = vmatpush.msra.mxu1 %v131_v1  ;;  %v128_v3 = vld [vmem:[#allocation5 + $0x158] sm:$0xff]  ;;  %v125_v5 = vld [vmem:[#allocation5 + $0x140] sm:$0xff]  ;;  %vm446_vm0 = vcmask 130048   ;;  %s3244_s11 = smov 96   ;;  %s3245_s12 = smov 48  }
  0x16   :  { %v124_v4 = vld [vmem:[#allocation5 + $0x138] sm:$0xff]  ;;  %v121_v6 = vld [vmem:[#allocation5 + $0x120] sm:$0xff]  ;;  %v122_v7 = vld [vmem:[#allocation5 + $0x128] sm:$0xff]  ;;  %s3246_s13 = smov 64   ;;  %s3247_s14 = smov 16  }
  0x17   :  { %134 = vmatpush.msra.mxu0 %v127_v2  ;;  %163 = vmatpush.msra.mxu1 %v128_v3  ;;  %v118_v8 = vld [vmem:[#allocation5 + $0x108] sm:$0xff]  ;;  %v119_v9 = vld [vmem:[#allocation5 + $0x110] sm:$0xff]  ;;  %v116_v11 = vld [vmem:[#allocation5 + $0xf8] sm:$0xff]  ;;  %s3248_s15 = smov 32   ;;  %s3250_s16 = smov [#allocation10]  }
  0x18   :  { %v115_v10 = vld [vmem:[#allocation5 + $0xf0] sm:$0xff]  ;;  %v112_v12 = vld [vmem:[#allocation5 + $0xd8] sm:$0xff]  ;;  %v113_v13 = vld [vmem:[#allocation5 + $0xe0] sm:$0xff]  ;;  %s2675_s17 = sshll.u32 %s3250_s16, 4  ;;  %s2677_s20 = sshll.u32 %s4442_s4, 4  ;;  %s2676_s17 = int_to_ptr.vmem [resolvable:$true] %s2675_s17  ;;  %s2678_s20 = int_to_ptr.hbm [resolvable:$true] %s2677_s20 }
  0x19   :  { %135 = vmatpush.msra.mxu0 %v124_v4  ;;  %164 = vmatpush.msra.mxu1 %v125_v5  ;;  %v109_v14 = vld [vmem:[#allocation5 + $0xc0] sm:$0xff]  ;;  %v110_v15 = vld [vmem:[#allocation5 + $0xc8] sm:$0xff]  ;;  %v107_v17 = vld [vmem:[#allocation5 + $0xb0] sm:$0xff] }
  0x1a   :  { %v106_v16 = vld [vmem:[#allocation5 + $0xa8] sm:$0xff]  ;;  %v103_v18 = vld [vmem:[#allocation5 + $0x90] sm:$0xff]  ;;  %v104_v19 = vld [vmem:[#allocation5 + $0x98] sm:$0xff] }
  0x1b   :  { %136 = vmatpush.msra.mxu0 %v121_v6  ;;  %165 = vmatpush.msra.mxu1 %v122_v7  ;;  %v100_v20 = vld [vmem:[#allocation5 + $0x78] sm:$0xff]  ;;  %v101_v21 = vld [vmem:[#allocation5 + $0x80] sm:$0xff]  ;;  %v98_v23 = vld [vmem:[#allocation5 + $0x68] sm:$0xff] }
  0x1c   :  { %v97_v22 = vld [vmem:[#allocation5 + $0x60] sm:$0xff]  ;;  %v94_v24 = vld [vmem:[#allocation5 + $0x48] sm:$0xff]  ;;  %v95_v25 = vld [vmem:[#allocation5 + $0x50] sm:$0xff] }
  0x1d   :  { %137 = vmatpush.msra.mxu0 %v118_v8  ;;  %166 = vmatpush.msra.mxu1 %v119_v9  ;;  %v91_v26 = vld [vmem:[#allocation5 + $0x30] sm:$0xff]  ;;  %v92_v27 = vld [vmem:[#allocation5 + $0x38] sm:$0xff]  ;;  %v129_v29 = vld [vmem:[#allocation5 + $0x160] sm:$0xff] }
  0x1e   :  { %v132_v28 = vld [vmem:[#allocation5 + $0x178] sm:$0xff]  ;;  %v89_v31 = vld [vmem:[#allocation5 + $0x20] sm:$0xff]  ;;  %v126_v32 = vld [vmem:[#allocation5 + $0x148] sm:$0xff] }
  0x1f   :  { %138 = vmatpush.msra.mxu0 %v115_v10  ;;  %167 = vmatpush.msra.mxu1 %v116_v11  ;;  %v88_v30 = vld [vmem:[#allocation5 + $0x18] sm:$0xff]  ;;  %v85_v33 = vld [vmem:[#allocation5] sm:$0xff]  ;;  %v86_v34 = vld [vmem:[#allocation5 + $0x8] sm:$0xff] }
  0x20   :  { %2788 = vmatpush.msra.mxu2 %v132_v28  ;;  %v81_v35 = vld [vmem:[#allocation2] sm:$0xff]  ;;  %v123_v36 = vld [vmem:[#allocation5 + $0x130] sm:$0xff]  ;;  %v120_v37 = vld [vmem:[#allocation5 + $0x118] sm:$0xff] }
  0x21   :  { %139 = vmatpush.msra.mxu0 %v112_v12  ;;  %168 = vmatpush.msra.mxu1 %v113_v13  ;;  %v117_v38 = vld [vmem:[#allocation5 + $0x100] sm:$0xff]  ;;  %v114_v39 = vld [vmem:[#allocation5 + $0xe8] sm:$0xff]  ;;  %v111_v41 = vld [vmem:[#allocation5 + $0xd0] sm:$0xff] }
  0x22   :  { %2789 = vmatpush.msra.mxu2 %v129_v29  ;;  %v82_v40 = vld [vmem:[#allocation2 + $0x8] sm:$0xff]  ;;  %v108_v42 = vld [vmem:[#allocation5 + $0xb8] sm:$0xff]  ;;  %v105_v43 = vld [vmem:[#allocation5 + $0xa0] sm:$0xff] }
  0x23   :  { %140 = vmatpush.msra.mxu0 %v109_v14  ;;  %169 = vmatpush.msra.mxu1 %v110_v15  ;;  %v102_v44 = vld [vmem:[#allocation5 + $0x88] sm:$0xff]  ;;  %v83_v45 = vld [vmem:[#allocation2 + $0x10] sm:$0xff]  ;;  %v96_v47 = vld [vmem:[#allocation5 + $0x58] sm:$0xff] }
  0x24   :  { %2790 = vmatpush.msra.mxu2 %v126_v32  ;;  %v99_v46 = vld [vmem:[#allocation5 + $0x70] sm:$0xff]  ;;  %v93_v48 = vld [vmem:[#allocation5 + $0x40] sm:$0xff]  ;;  %v90_v49 = vld [vmem:[#allocation5 + $0x28] sm:$0xff] }
  0x25   :  { %141 = vmatpush.msra.mxu0 %v106_v16  ;;  %170 = vmatpush.msra.mxu1 %v107_v17  ;;  %v84_v50 = vld [vmem:[#allocation2 + $0x18] sm:$0xff]  ;;  %v87_v51 = vld [vmem:[#allocation5 + $0x10] sm:$0xff]  ;;  %v2946_v52 = vld [vmem:[#allocation8] ss:$0 sm:$0xff] }
  0x26   :  { %2791 = vmatpush.msra.mxu2 %v123_v36  ;;  %v2947_v53 = vld [vmem:[#allocation8 + $0x1] ss:$0 sm:$0xff]  ;;  %v2948_v17 = vld [vmem:[#allocation8 + $0x2] ss:$0 sm:$0xff] }
  0x27   :  { %142 = vmatpush.msra.mxu0 %v103_v18  ;;  %171 = vmatpush.msra.mxu1 %v104_v19 }
  0x28   :  { %2792 = vmatpush.msra.mxu2 %v120_v37 }
  0x29   :  { %143 = vmatpush.msra.mxu0 %v100_v20  ;;  %172 = vmatpush.msra.mxu1 %v101_v21 }
  0x2a   :  { %2793 = vmatpush.msra.mxu2 %v117_v38 }
  0x2b   :  { %144 = vmatpush.msra.mxu0 %v97_v22  ;;  %173 = vmatpush.msra.mxu1 %v98_v23 }
  0x2c   :  { %2794 = vmatpush.msra.mxu2 %v114_v39 }
  0x2d   :  { %145 = vmatpush.msra.mxu0 %v94_v24  ;;  %174 = vmatpush.msra.mxu1 %v95_v25 }
  0x2e   :  { %2795 = vmatpush.msra.mxu2 %v111_v41 }
  0x2f   :  { %146 = vmatpush.msra.mxu0 %v91_v26  ;;  %175 = vmatpush.msra.mxu1 %v92_v27 }
  0x30   :  { %2796 = vmatpush.msra.mxu2 %v108_v42 }
  0x31   :  { %147 = vmatpush.msra.mxu0 %v88_v30  ;;  %176 = vmatpush.msra.mxu1 %v89_v31 }
  0x32   :  { %2797 = vmatpush.msra.mxu2 %v105_v43 }
  0x33   :  { %148 = vmatpush.msra.mxu0 %v85_v33  ;;  %177 = vmatpush.msra.mxu1 %v86_v34 }
  0x34   :  { %149 = vmatmul.f32.vlgmr.msra.gmra.mxu0 %v81_v35  ;;  %178 = vmatmul.f32.vlgmr.msra.gmra.mxu1 %v81_v35 }
  0x35   :  { %191 = vmatpush.msrb.mxu0 %v132_v28  ;;  %2798 = vmatpush.msra.mxu2 %v102_v44 }
  0x37   :  { %192 = vmatpush.msrb.mxu0 %v129_v29  ;;  %2799 = vmatpush.msra.mxu2 %v99_v46 }
  0x39   :  { %193 = vmatpush.msrb.mxu0 %v126_v32  ;;  %2800 = vmatpush.msra.mxu2 %v96_v47 }
  0x3b   :  { %194 = vmatpush.msrb.mxu0 %v123_v36  ;;  %2801 = vmatpush.msra.mxu2 %v93_v48 }
  0x3c   :  { %181 = vmatmul.f32.gmra.mxu1 %v82_v40  ;;  %152 = vmatmul.f32.gmra.mxu0 %v82_v40 }
  0x3d   :  { %195 = vmatpush.msrb.mxu0 %v120_v37  ;;  %2802 = vmatpush.msra.mxu2 %v90_v49 }
  0x3f   :  { %196 = vmatpush.msrb.mxu0 %v117_v38  ;;  %2803 = vmatpush.msra.mxu2 %v87_v51 }
  0x40   :  { %210 = vmatmul.f32.vlgmr.msra.gmra.mxu2 %v82_v40 }
  0x41   :  { %197 = vmatpush.msrb.mxu0 %v114_v39 }
  0x43   :  { %198 = vmatpush.msrb.mxu0 %v111_v41 }
  0x44   :  { %184 = vmatmul.f32.gmra.mxu1 %v83_v45  ;;  %155 = vmatmul.f32.gmra.mxu0 %v83_v45 }
  0x45   :  { %199 = vmatpush.msrb.mxu0 %v108_v42 }
  0x47   :  { %200 = vmatpush.msrb.mxu0 %v105_v43 }
  0x48   :  { %213 = vmatmul.f32.gmra.mxu2 %v83_v45 }
  0x49   :  { %201 = vmatpush.msrb.mxu0 %v102_v44 }
  0x4b   :  { %202 = vmatpush.msrb.mxu0 %v99_v46 }
  0x4c   :  { %187 = vmatmul.f32.gmra.mxu1 %v84_v50  ;;  %158 = vmatmul.f32.gmra.mxu0 %v84_v50 }
  0x4d   :  { %203 = vmatpush.msrb.mxu0 %v96_v47 }
  0x4f   :  { %204 = vmatpush.msrb.mxu0 %v93_v48 }
  0x50   :  { %216 = vmatmul.f32.gmra.mxu2 %v84_v50 }
  0x51   :  { %205 = vmatpush.msrb.mxu0 %v90_v49 }
  0x53   :  { %206 = vmatpush.msrb.mxu0 %v87_v51 }
  0x54   :  { %207 = vmatmul.f32.vlgmr.msrb.gmra.mxu0 %v81_v35 }
  0xb1   :  { %v150_v54 = vpop.f32.mrf.mxu0  ;;  %v179_v55 = vpop.f32.mrf.mxu1 }
  0xb2   :  { %v3297_v56 = vadd.f32 %v2946_v52, %v150_v54  ;;  %v3299_v57 = vadd.f32 %v2947_v53, %v179_v55 }
  0xb4   :  { %302 = vrot.lane.b32.xlu0 %v3299_v57, %s3242_s2  ;;  %258 = vrot.lane.b32.xlu2 %v3297_v56, %s3243_s3 }
  0xb5   :  { %242 = vrot.lane.b32.xlu1 %v3297_v56, %s3242_s2 }
  0xb9   :  { %v182_v58 = vpop.f32.mrf.mxu1  ;;  %v153_v61 = vpop.f32.mrf.mxu0 }
  0xba   :  { %v229_v59 = vadd.f32 %v2947_v53, %v182_v58  ;;  %v223_v62 = vadd.f32 %v2946_v52, %v153_v61 }
  0xbc   :  { %310 = vrot.lane.b32.xlu0 %v3299_v57, %s3244_s11  ;;  %2692 = vmatpush.xpose.msk.msra.mxu3 %vm446_vm0, %v229_v59 }
  0xbd   :  { %334 = vrot.lane.b32.xlu2 %v3299_v57, %s3245_s12  ;;  %250 = vrot.lane.b32.xlu1 %v3297_v56, %s3244_s11 }
  0xc0   :  { %2693 = vmatpush.xpose.msk.msra.mxu3 %vm446_vm0, %v3299_v57 }
  0xc1   :  { %v185_v60 = vpop.f32.mrf.mxu1  ;;  %v156_v2 = vpop.f32.mrf.mxu0 }
  0xc2   :  { %v230_v1 = vadd.f32 %v2947_v53, %v185_v60  ;;  %v3335_v3 = vadd.f32 %v2946_v52, %v156_v2 }
  0xc3   :  { %2694 = vmatmul.msk.f32.vlgmr.msra.gmra.mxu3 %vm446_vm0, %v3297_v56  ;;  %v211_v8 = vpop.f32.mrf.mxu2 }
  0xc4   :  { %318 = vrot.lane.b32.xlu0 %v3299_v57, %s3243_s3  ;;  %v3423_v26 = vadd.f32 %v2948_v17, %v211_v8 }
  0xc5   :  { %326 = vrot.lane.b32.xlu2 %v3299_v57, %s3246_s13  ;;  %274 = vrot.lane.b32.xlu1 %v3297_v56, %s3245_s12 }
  0xc9   :  { %v188_v63 = vpop.f32.mrf.mxu1  ;;  %v159_v4 = vpop.f32.mrf.mxu0 }
  0xca   :  { %v3324_v0 = vadd.f32 %v2947_v53, %v188_v63  ;;  %v3346_v5 = vadd.f32 %v2946_v52, %v159_v4 }
  0xcb   :  { %2695 = vmatmul.msk.f32.gmra.mxu3 %vm446_vm0, %v223_v62  ;;  %v214_v13 = vpop.f32.mrf.mxu2 }
  0xcc   :  { %290 = vrot.lane.b32.xlu0 %v3297_v56, %s3247_s14  ;;  %2696 = vmatpush.xpose.msk.msrb.mxu3 %vm446_vm0, %v3324_v0  ;;  %v3407_v19 = vadd.f32 %v2948_v17, %v214_v13 }
  0xcd   :  { %266 = vrot.lane.b32.xlu2 %v3297_v56, %s3246_s13  ;;  %350 = vrot.lane.b32.xlu1 %v3299_v57, %s3247_s14 }
  0xd0   :  { %2697 = vmatpush.xpose.msk.msrb.mxu3 %vm446_vm0, %v230_v1 }
  0xd1   :  { %v208_v25 = vpop.f32.mrf.mxu0 }
  0xd2   :  { %v3429_v27 = vadd.f32 %v2948_v17, %v208_v25 }
  0xd3   :  { %2698 = vmatmul.msk.f32.vlgmr.msrb.gmra.mxu3 %vm446_vm0, %v3335_v3  ;;  %v217_v18 = vpop.f32.mrf.mxu2 }
  0xd4   :  { %304 = vrot.lane.b32.xlu0 %v229_v59, %s3242_s2  ;;  %v3413_v20 = vadd.f32 %v2948_v17, %v217_v18  ;;  %v3434_v31 = vpack.i.bf16 %v3429_v27, %v3423_v26 }
  0xd5   :  { %312 = vrot.lane.b32.xlu2 %v229_v59, %s3244_s11  ;;  %244 = vrot.lane.b32.xlu1 %v223_v62, %s3242_s2 }
  0xd6   :  { %v3419_v24 = vpack.i.bf16 %v3407_v19, %v3413_v20 }
  0xdb   :  { %2699 = vmatmul.msk.f32.gmra.mxu3 %vm446_vm0, %v3346_v5 }
  0xdc   :  { %336 = vrot.lane.b32.xlu0 %v229_v59, %s3245_s12 }
  0xdd   :  { %252 = vrot.lane.b32.xlu2 %v223_v62, %s3244_s11  ;;  %320 = vrot.lane.b32.xlu1 %v229_v59, %s3243_s3 }
  0xe4   :  { %344 = vrot.lane.b32.xlu0 %v229_v59, %s3248_s15 }
  0xe5   :  { %328 = vrot.lane.b32.xlu2 %v229_v59, %s3246_s13  ;;  %260 = vrot.lane.b32.xlu1 %v223_v62, %s3243_s3 }
  0xec   :  { %246 = vrot.lane.b32.xlu0 %v3335_v3, %s3242_s2 }
  0xed   :  { %292 = vrot.lane.b32.xlu2 %v223_v62, %s3247_s14  ;;  %276 = vrot.lane.b32.xlu1 %v223_v62, %s3245_s12 }
  0xf4   :  { %262 = vrot.lane.b32.xlu0 %v3335_v3, %s3243_s3 }
  0xf5   :  { %306 = vrot.lane.b32.xlu2 %v230_v1, %s3242_s2  ;;  %352 = vrot.lane.b32.xlu1 %v229_v59, %s3247_s14 }
  0xfc   :  { %338 = vrot.lane.b32.xlu0 %v230_v1, %s3245_s12 }
  0xfd   :  { %314 = vrot.lane.b32.xlu2 %v230_v1, %s3244_s11  ;;  %268 = vrot.lane.b32.xlu1 %v223_v62, %s3246_s13 }
 0x104   :  { %316 = vrot.lane.b32.xlu0 %v3324_v0, %s3244_s11 }
 0x105   :  { %278 = vrot.lane.b32.xlu2 %v3335_v3, %s3245_s12  ;;  %254 = vrot.lane.b32.xlu1 %v3335_v3, %s3244_s11 }
 0x10c   :  { %330 = vrot.lane.b32.xlu0 %v230_v1, %s3246_s13 }
 0x10d   :  { %308 = vrot.lane.b32.xlu2 %v3324_v0, %s3242_s2  ;;  %322 = vrot.lane.b32.xlu1 %v230_v1, %s3243_s3 }
 0x10e   :  { %v3374_v6 = vpop.permute.xlu2 %258 }
 0x114   :  { %256 = vrot.lane.b32.xlu0 %v3346_v5, %s3244_s11 }
 0x115   :  { %324 = vrot.lane.b32.xlu2 %v3324_v0, %s3243_s3  ;;  %248 = vrot.lane.b32.xlu1 %v3346_v5, %s3242_s2 }
 0x117   :  { %v3382_v7 = vpop.permute.xlu2 %334 }
 0x11c   :  { %264 = vrot.lane.b32.xlu0 %v3346_v5, %s3243_s3 }
 0x11d   :  { %354 = vrot.lane.b32.xlu2 %v230_v1, %s3247_s14  ;;  %342 = vrot.lane.b32.xlu1 %v3299_v57, %s3248_s15 }
 0x11f   :  { %v327_v9 = vpop.permute.xlu2 %326 }
 0x124   :  { %340 = vrot.lane.b32.xlu0 %v3324_v0, %s3245_s12 }
 0x125   :  { %284 = vrot.lane.b32.xlu2 %v223_v62, %s3248_s15  ;;  %282 = vrot.lane.b32.xlu1 %v3297_v56, %s3248_s15 }
 0x126   :  { %v303_v10 = vpop.permute.xlu0 %302 }
 0x127   :  { %v267_v11 = vpop.permute.xlu2 %266  ;;  %v243_v12 = vpop.permute.xlu1 %242 }
 0x12c   :  { %270 = vrot.lane.b32.xlu0 %v3335_v3, %s3246_s13 }
 0x12d   :  { %346 = vrot.lane.b32.xlu2 %v230_v1, %s3248_s15  ;;  %280 = vrot.lane.b32.xlu1 %v3346_v5, %s3245_s12 }
 0x12e   :  { %v3399_v14 = vpop.permute.xlu0 %310 }
 0x12f   :  { %v3401_v15 = vpop.permute.xlu2 %312  ;;  %v3403_v16 = vpop.permute.xlu1 %250 }
 0x134   :  { %294 = vrot.lane.b32.xlu0 %v3335_v3, %s3247_s14 }
 0x135   :  { %332 = vrot.lane.b32.xlu2 %v3324_v0, %s3246_s13  ;;  %272 = vrot.lane.b32.xlu1 %v3346_v5, %s3246_s13 }
 0x136   :  { %v319_v21 = vpop.permute.xlu0 %318 }
 0x137   :  { %v275_v22 = vpop.permute.xlu1 %274  ;;  %v3415_v23 = vpop.permute.xlu2 %252 }
 0x13c   :  { %348 = vrot.lane.b32.xlu0 %v3324_v0, %s3248_s15 }
 0x13d   :  { %356 = vrot.lane.b32.xlu2 %v3324_v0, %s3247_s14  ;;  %2822 = vrot.lane.b32.xlu1 %v3419_v24, %s3242_s2 }
 0x13e   :  { %v291_v28 = vpop.permute.xlu0 %290 }
 0x13f   :  { %v351_v29 = vpop.permute.xlu1 %350  ;;  %v329_v30 = vpop.permute.xlu2 %328 }
 0x140   :  { %2724 = vmatpush.xpose.msk.msra.mxu0 %vm446_vm0, %v329_v30 }
 0x144   :  { %2725 = vmatpush.xpose.msk.msra.mxu0 %vm446_vm0, %v327_v9  ;;  %286 = vrot.lane.b32.xlu0 %v3335_v3, %s3248_s15 }
 0x145   :  { %296 = vrot.lane.b32.xlu1 %v3346_v5, %s3247_s14  ;;  %2837 = vrot.lane.b32.xlu2 %v3434_v31, %s3243_s3 }
 0x146   :  { %v305_v32 = vpop.permute.xlu0 %304  ;;  %v3480_v47 = vpop.f32.mrf.mxu3 }
 0x147   :  { %2726 = vmatmul.msk.f32.vlgmr.msra.gmra.mxu0 %vm446_vm0, %v267_v11  ;;  %v293_v33 = vpop.permute.xlu2 %292  ;;  %v245_v34 = vpop.permute.xlu1 %244  ;;  %2700 = vmatpush.xpose.msk.msra.mxu3 %vm446_vm0, %v305_v32  ;;  %v943_v62 = vsel %vm446_vm0, %v3480_v47, -inf }
 0x14b   :  { %2701 = vmatpush.xpose.msk.msra.mxu3 %vm446_vm0, %v303_v10 }
 0x14c   :  { %2832 = vrot.lane.b32.xlu0 %v3434_v31, %s3242_s2 }
 0x14d   :  { %288 = vrot.lane.b32.xlu1 %v3346_v5, %s3248_s15  ;;  %2852 = vrot.lane.b32.xlu2 %v3434_v31, %s3245_s12 }
 0x14e   :  { %v337_v35 = vpop.permute.xlu0 %336  ;;  %2702 = vmatmul.msk.f32.vlgmr.msra.gmra.mxu3 %vm446_vm0, %v243_v12  ;;  %v3489_v51 = vpop.f32.mrf.mxu3 }
 0x14f   :  { %v307_v36 = vpop.permute.xlu2 %306  ;;  %v321_v37 = vpop.permute.xlu1 %320  ;;  %v946_v56 = vsel %vm446_vm0, %v3489_v51, -inf }
 0x150   :  { %2716 = vmatpush.xpose.msk.msrb.mxu2 %vm446_vm0, %v321_v37 }
 0x154   :  { %2717 = vmatpush.xpose.msk.msrb.mxu2 %vm446_vm0, %v319_v21  ;;  %2842 = vrot.lane.b32.xlu0 %v3434_v31, %s3244_s11 }
 0x155   :  { %2827 = vrot.lane.b32.xlu1 %v3419_v24, %s3243_s3  ;;  %2862 = vrot.lane.b32.xlu2 %v3419_v24, %s3245_s12 }
 0x156   :  { %v345_v38 = vpop.permute.xlu0 %344  ;;  %2703 = vmatmul.msk.f32.gmra.mxu3 %vm446_vm0, %v245_v34  ;;  %v3495_v55 = vpop.f32.mrf.mxu3 }
 0x157   :  { %v315_v39 = vpop.permute.xlu2 %314  ;;  %2718 = vmatmul.msk.f32.vlgmr.msrb.gmra.mxu2 %vm446_vm0, %v3374_v6  ;;  %v261_v40 = vpop.permute.xlu1 %260  ;;  %2740 = vmatpush.xpose.msk.msrb.mxu0 %vm446_vm0, %v345_v38  ;;  %v949_v0 = vsel %vm446_vm0, %v3495_v55, -inf }
 0x158   :  { %2732 = vmatpush.xpose.msk.msra.mxu2 %vm446_vm0, %v337_v35 }
 0x15c   :  { %2733 = vmatpush.xpose.msk.msra.mxu2 %vm446_vm0, %v3382_v7  ;;  %2847 = vrot.lane.b32.xlu0 %v3419_v24, %s3244_s11 }
 0x15d   :  { %2857 = vrot.lane.b32.xlu1 %v3434_v31, %s3246_s13 }
 0x15e   :  { %v247_v41 = vpop.permute.xlu0 %246  ;;  %v3501_v60 = vpop.f32.mrf.mxu3 }
 0x15f   :  { %2719 = vmatmul.msk.f32.gmra.mxu2 %vm446_vm0, %v261_v40  ;;  %v277_v42 = vpop.permute.xlu1 %276  ;;  %v3473_v43 = vpop.permute.xlu2 %278  ;;  %v952_v61 = vsel %vm446_vm0, %v3501_v60, -inf }
 0x166   :  { %v3475_v44 = vpop.permute.xlu0 %262 }
 0x167   :  { %2734 = vmatmul.msk.f32.vlgmr.msra.gmra.mxu2 %vm446_vm0, %v275_v22  ;;  %v353_v45 = vpop.permute.xlu1 %352  ;;  %v309_v46 = vpop.permute.xlu2 %308 }
 0x168   :  { %2704 = vmatpush.xpose.msk.msrb.mxu3 %vm446_vm0, %v309_v46  ;;  %2748 = vmatpush.xpose.msk.msrb.mxu2 %vm446_vm0, %v353_v45 }
 0x16c   :  { %2705 = vmatpush.xpose.msk.msrb.mxu3 %vm446_vm0, %v307_v36  ;;  %2749 = vmatpush.xpose.msk.msrb.mxu2 %vm446_vm0, %v351_v29 }
 0x16e   :  { %v339_v48 = vpop.permute.xlu0 %338 }
 0x16f   :  { %2735 = vmatmul.msk.f32.gmra.mxu2 %vm446_vm0, %v277_v42  ;;  %v269_v49 = vpop.permute.xlu1 %268  ;;  %v325_v50 = vpop.permute.xlu2 %324  ;;  %2706 = vmatmul.msk.f32.vlgmr.msrb.gmra.mxu3 %vm446_vm0, %v247_v41 }
 0x170   :  { %2708 = vmatpush.xpose.msk.msra.mxu3 %vm446_vm0, %v3401_v15  ;;  %2727 = vmatmul.msk.f32.gmra.mxu0 %vm446_vm0, %v269_v49 }
 0x174   :  { %2709 = vmatpush.xpose.msk.msra.mxu3 %vm446_vm0, %v3399_v14 }
 0x176   :  { %v317_v52 = vpop.permute.xlu0 %316 }
 0x177   :  { %2750 = vmatmul.msk.f32.vlgmr.msrb.gmra.mxu2 %vm446_vm0, %v291_v28  ;;  %v355_v53 = vpop.permute.xlu2 %354  ;;  %v255_v54 = vpop.permute.xlu1 %254 }
 0x178   :  { %2712 = vmatpush.xpose.msk.msrb.mxu3 %vm446_vm0, %v317_v52 }
 0x17c   :  { %2713 = vmatpush.xpose.msk.msrb.mxu3 %vm446_vm0, %v315_v39 }
 0x17e   :  { %v331_v57 = vpop.permute.xlu0 %330  ;;  %947 = vmax.xlane.f32.xlu2 %v946_v56 }
 0x17f   :  { %2751 = vmatmul.msk.f32.gmra.mxu2 %vm446_vm0, %v293_v33  ;;  %v285_v58 = vpop.permute.xlu2 %284  ;;  %v323_v59 = vpop.permute.xlu1 %322 }
 0x186   :  { %v257_v63 = vpop.permute.xlu0 %256  ;;  %944 = vmax.xlane.f32.xlu0 %v943_v62  ;;  %953 = vmax.xlane.f32.xlu2 %v952_v61 }
 0x187   :  { %v347_v1 = vpop.permute.xlu2 %346  ;;  %v249_v2 = vpop.permute.xlu1 %248  ;;  %950 = vmax.xlane.f32.xlu1 %v949_v0 }
 0x188   :  { %2707 = vmatmul.msk.f32.gmra.mxu3 %vm446_vm0, %v249_v2 }
 0x18e   :  { %v265_v3 = vpop.permute.xlu0 %264 }
 0x18f   :  { %v333_v4 = vpop.permute.xlu2 %332  ;;  %v343_v5 = vpop.permute.xlu1 %342 }
 0x190   :  { %2710 = vmatmul.msk.f32.vlgmr.msra.gmra.mxu3 %vm446_vm0, %v3403_v16  ;;  %2728 = vmatpush.xpose.msk.msrb.mxu1 %vm446_vm0, %v333_v4 }
 0x191   :  { %2720 = vmatpush.xpose.msk.msra.mxu3 %vm446_vm0, %v325_v50  ;;  %2741 = vmatpush.xpose.msk.msrb.mxu0 %vm446_vm0, %v343_v5 }
 0x194   :  { %2729 = vmatpush.xpose.msk.msrb.mxu1 %vm446_vm0, %v331_v57 }
 0x195   :  { %1731 = vmatpush.msra.mxu0 %v3423_v26  ;;  %2721 = vmatpush.xpose.msk.msra.mxu3 %vm446_vm0, %v323_v59 }
 0x196   :  { %v341_v6 = vpop.permute.xlu0 %340 }
 0x197   :  { %1732 = vmatpush.msra.mxu0 %v3429_v27  ;;  %v283_v7 = vpop.permute.xlu1 %282  ;;  %v357_v14 = vpop.permute.xlu2 %356 }
 0x198   :  { %2711 = vmatmul.msk.f32.gmra.mxu3 %vm446_vm0, %v3415_v23  ;;  %2742 = vmatmul.msk.f32.vlgmr.msrb.gmra.mxu0 %vm446_vm0, %v283_v7 }
 0x19e   :  { %v271_v8 = vpop.permute.xlu0 %270 }
 0x19f   :  { %v281_v9 = vpop.permute.xlu1 %280  ;;  %2730 = vmatmul.msk.f32.vlgmr.msrb.gmra.mxu1 %vm446_vm0, %v271_v8 }
 0x1a0   :  { %2714 = vmatmul.msk.f32.vlgmr.msrb.gmra.mxu3 %vm446_vm0, %v255_v54  ;;  %2743 = vmatmul.msk.f32.gmra.mxu0 %vm446_vm0, %v285_v58 }
 0x1a1   :  { %2736 = vmatpush.xpose.msk.msrb.mxu3 %vm446_vm0, %v341_v6 }
 0x1a5   :  { %2737 = vmatpush.xpose.msk.msrb.mxu3 %vm446_vm0, %v339_v48 }
 0x1a6   :  { %v295_v10 = vpop.permute.xlu0 %294 }
 0x1a7   :  { %v273_v11 = vpop.permute.xlu1 %272 }
 0x1a8   :  { %2715 = vmatmul.msk.f32.gmra.mxu3 %vm446_vm0, %v257_v63  ;;  %2731 = vmatmul.msk.f32.gmra.mxu1 %vm446_vm0, %v273_v11 }
 0x1ae   :  { %v349_v12 = vpop.permute.xlu0 %348 }
 0x1af   :  { %v2823_v13 = vpop.permute.xlu1 %2822  ;;  %2744 = vmatpush.xpose.msk.msra.mxu1 %vm446_vm0, %v349_v12 }
 0x1b0   :  { %2722 = vmatmul.msk.f32.vlgmr.msra.gmra.mxu3 %vm446_vm0, %v3475_v44  ;;  %v2824_v17 = vunpack.i.l.bf16 %v2823_v13  ;;  %v2825_v21 = vunpack.i.h.bf16 %v2823_v13 }
 0x1b1   :  { %2752 = vmatpush.xpose.msk.msra.mxu3 %vm446_vm0, %v357_v14 }
 0x1b3   :  { %2745 = vmatpush.xpose.msk.msra.mxu1 %vm446_vm0, %v347_v1 }
 0x1b5   :  { %2753 = vmatpush.xpose.msk.msra.mxu3 %vm446_vm0, %v355_v53 }
 0x1b6   :  { %v287_v15 = vpop.permute.xlu0 %286 }
 0x1b7   :  { %1760 = vmatpush.msrb.mxu1 %v3413_v20  ;;  %v297_v16 = vpop.permute.xlu1 %296  ;;  %v2838_v20 = vpop.permute.xlu2 %2837 }
 0x1b8   :  { %2746 = vmatmul.msk.f32.vlgmr.msra.gmra.mxu1 %vm446_vm0, %v287_v15  ;;  %2723 = vmatmul.msk.f32.gmra.mxu3 %vm446_vm0, %v265_v3  ;;  %v2840_v27 = vunpack.i.h.bf16 %v2838_v20 }
 0x1b9   :  { %1761 = vmatpush.msrb.mxu1 %v3407_v19  ;;  %v2839_v19 = vunpack.i.l.bf16 %v2838_v20 }
 0x1be   :  { %v2833_v18 = vpop.permute.xlu0 %2832 }
 0x1bf   :  { %v289_v22 = vpop.permute.xlu1 %288  ;;  %v2835_v23 = vunpack.i.h.bf16 %v2833_v18  ;;  %v2834_v25 = vunpack.i.l.bf16 %v2833_v18  ;;  %v3577_v56 = vpop.permute.xlu2 %2852 }
 0x1c0   :  { %2738 = vmatmul.msk.f32.vlgmr.msrb.gmra.mxu3 %vm446_vm0, %v3473_v43  ;;  %2747 = vmatmul.msk.f32.gmra.mxu1 %vm446_vm0, %v289_v22 }
 0x1c1   :  { %1789 = vmatpush.msra.mxu2 %v2834_v25  ;;  %1818 = vmatpush.msrb.mxu3 %v2824_v17 }
 0x1c3   :  { %1790 = vmatpush.msra.mxu2 %v2835_v23  ;;  %1819 = vmatpush.msrb.mxu3 %v2825_v21 }
 0x1c4   :  { %v3542_v26 = vpop.f32.mrf.mxu0 }
 0x1c5   :  { %1905 = vmatpush.msrb.mxu2 %v2839_v19  ;;  %v991_v28 = vsel %vm446_vm0, %v3542_v26, -inf }
 0x1c6   :  { %992 = vmax.xlane.f32.xlu1 %v991_v28  ;;  %v2843_v29 = vpop.permute.xlu0 %2842 }
 0x1c7   :  { %1906 = vmatpush.msrb.mxu2 %v2840_v27  ;;  %v2845_v30 = vunpack.i.h.bf16 %v2843_v29  ;;  %v2844_v32 = vunpack.i.l.bf16 %v2843_v29  ;;  %v2828_v33 = vpop.permute.xlu1 %2827  ;;  %v3582_v62 = vpop.permute.xlu2 %2862 }
 0x1c8   :  { %2739 = vmatmul.msk.f32.gmra.mxu3 %vm446_vm0, %v281_v9  ;;  %v2829_v34 = vunpack.i.l.bf16 %v2828_v33  ;;  %v2830_v38 = vunpack.i.h.bf16 %v2828_v33 }
 0x1c9   :  { %1847 = vmatpush.msrb.mxu0 %v2844_v32 }
 0x1cb   :  { %1848 = vmatpush.msrb.mxu0 %v2845_v30 }
 0x1ce   :  { %v2848_v35 = vpop.permute.xlu0 %2847 }
 0x1cf   :  { %v2850_v36 = vunpack.i.h.bf16 %v2848_v35  ;;  %v2849_v37 = vunpack.i.l.bf16 %v2848_v35  ;;  %v3603_v9 = vpop.permute.xlu1 %2857 }
 0x1d0   :  { %2754 = vmatmul.msk.f32.vlgmr.msra.gmra.mxu3 %vm446_vm0, %v295_v10 }
 0x1d1   :  { %v3548_v39 = vpop.f32.mrf.mxu3  ;;  %1876 = vmatpush.msra.mxu1 %v2849_v37  ;;  %1934 = vmatpush.msra.mxu3 %v2829_v34 }
 0x1d2   :  { %v955_v40 = vsel %vm446_vm0, %v3548_v39, -inf }
 0x1d3   :  { %956 = vmax.xlane.f32.xlu2 %v955_v40  ;;  %1877 = vmatpush.msra.mxu1 %v2850_v36 }
 0x1d4   :  { %1935 = vmatpush.msra.mxu3 %v2830_v38 }
 0x1d8   :  { %2755 = vmatmul.msk.f32.gmra.mxu3 %vm446_vm0, %v297_v16 }
 0x1d9   :  { %v3553_v41 = vpop.f32.mrf.mxu3 }
 0x1da   :  { %v3555_v42 = vpop.f32.mrf.mxu2  ;;  %v958_v43 = vsel %vm446_vm0, %v3553_v41, -inf }
 0x1db   :  { %959 = vmax.xlane.f32.xlu1 %v958_v43  ;;  %v979_v44 = vsel %vm446_vm0, %v3555_v42, -inf }
 0x1dc   :  { %980 = vmax.xlane.f32.xlu0 %v979_v44 }
 0x1e2   :  { %v3561_v45 = vpop.f32.mrf.mxu2 }
 0x1e3   :  { %v982_v46 = vsel %vm446_vm0, %v3561_v45, -inf }
 0x1e4   :  { %983 = vmax.xlane.f32.xlu1 %v982_v46 }
 0x1ea   :  { %v3573_v53 = vpop.f32.mrf.mxu2 }
 0x1eb   :  { %v1003_v54 = vsel %vm446_vm0, %v3573_v53, -inf }
 0x1ed   :  { %v3565_v48 = vpop.f32.mrf.mxu0 }
 0x1ee   :  { %v994_v49 = vsel %vm446_vm0, %v3565_v48, -inf }
 0x1ef   :  { %995 = vmax.xlane.f32.xlu2 %v994_v49 }
 0x1f1   :  { %v948_v3 = vpop.xlane.xlu2 %947 }
 0x1f2   :  { %v3569_v50 = vpop.f32.mrf.mxu3  ;;  %v1040_v6 = vsub.f32 %v3489_v51, %v948_v3  ;;  %v3630_v27 = vpop.f32.mrf.mxu2 }
 0x1f3   :  { %v961_v52 = vsel %vm446_vm0, %v3569_v50, -inf  ;;  %v1006_v35 = vsel %vm446_vm0, %v3630_v27, -inf }
 0x1f4   :  { %v1073_v10 = vmul.f32 1.442695, %v1040_v6 }
 0x1f7   :  { %962 = vmax.xlane.f32.xlu2 %v961_v52 }
 0x1f9   :  { %v945_v57 = vpop.xlane.xlu0 %944 }
 0x1fa   :  { %v1039_v59 = vsub.f32 %v3480_v47, %v945_v57  ;;  %v951_v15 = vpop.xlane.xlu1 %950  ;;  %v3645_v37 = vpop.f32.mrf.mxu2 }
 0x1fb   :  { %v1041_v18 = vsub.f32 %v3495_v55, %v951_v15  ;;  %v954_v55 = vpop.xlane.xlu2 %953 }
 0x1fc   :  { %v1071_v61 = vmul.f32 1.442695, %v1039_v59  ;;  %v1042_v30 = vsub.f32 %v3501_v60, %v954_v55  ;;  %v1027_v60 = vsel %vm446_vm0, %v3645_v37, -inf }
 0x1fd   :  { %v1075_v22 = vmul.f32 1.442695, %v1041_v18 }
 0x1fe   :  { %2956 = vpow2.f32 %v1071_v61  ;;  %v1077_v36 = vmul.f32 1.442695, %v1042_v30 }
 0x1ff   :  { %1004 = vmax.xlane.f32.xlu2 %v1003_v54  ;;  %2958 = vpow2.f32 %v1073_v10 }
 0x200   :  { %2960 = vpow2.f32 %v1075_v22 }
 0x201   :  { %2962 = vpow2.f32 %v1077_v36 }
 0x202   :  { %v3657_v49 = vpop.f32.mrf.mxu2 }
 0x203   :  { %v1030_v61 = vsel %vm446_vm0, %v3657_v49, -inf }
 0x204   :  { %v3592_v4 = vpop.eup %2956 }
 0x205   :  { %v1135_v8 = vsel %vm446_vm0, %v3592_v4, 0.0  ;;  %v3615_v16 = vpop.eup %2958 }
 0x206   :  { %v1138_v21 = vsel %vm446_vm0, %v3615_v16, 0.0  ;;  %v3632_v28 = vpop.eup %2960 }
 0x207   :  { %v1141_v33 = vsel %vm446_vm0, %v3632_v28, 0.0  ;;  %v3655_v46 = vpop.eup %2962 }
 0x208   :  { %v1144_v54 = vsel %vm446_vm0, %v3655_v46, 0.0 }
 0x20b   :  { %v3579_v58 = vpop.f32.mrf.mxu3 }
 0x20c   :  { %v964_v19 = vsel %vm446_vm0, %v3579_v58, -inf }
 0x213   :  { %v3584_v63 = vpop.f32.mrf.mxu3 }
 0x214   :  { %v967_v0 = vsel %vm446_vm0, %v3584_v63, -inf }
 0x215   :  { %v3588_v1 = vpop.f32.mrf.mxu0  ;;  %968 = vmax.xlane.f32.xlu2 %v967_v0 }
 0x216   :  { %v1015_v2 = vsel %vm446_vm0, %v3588_v1, -inf }
 0x217   :  { %1016 = vmax.xlane.f32.xlu1 %v1015_v2 }
 0x21b   :  { %v3594_v47 = vpop.f32.mrf.mxu3 }
 0x21c   :  { %v3596_v5 = vpop.f32.mrf.mxu1  ;;  %v970_v44 = vsel %vm446_vm0, %v3594_v47, -inf }
 0x21d   :  { %v997_v7 = vsel %vm446_vm0, %v3596_v5, -inf  ;;  %v3605_v11 = vpop.f32.mrf.mxu0 }
 0x21e   :  { %998 = vmax.xlane.f32.xlu0 %v997_v7  ;;  %v1018_v14 = vsel %vm446_vm0, %v3605_v11, -inf }
 0x21f   :  { %1136 = vadd.xlane.f32.xlu1 %v1135_v8 }
 0x223   :  { %v3607_v12 = vpop.f32.mrf.mxu3 }
 0x224   :  { %v973_v10 = vsel %vm446_vm0, %v3607_v12, -inf }
 0x225   :  { %v3609_v13 = vpop.f32.mrf.mxu1 }
 0x226   :  { %v1000_v51 = vsel %vm446_vm0, %v3609_v13, -inf }
 0x227   :  { %1001 = vmax.xlane.f32.xlu0 %v1000_v51  ;;  %1019 = vmax.xlane.f32.xlu1 %v1018_v14 }
 0x22b   :  { %v3617_v17 = vpop.f32.mrf.mxu3 }
 0x22c   :  { %v976_v7 = vsel %vm446_vm0, %v3617_v17, -inf }
 0x22f   :  { %1139 = vadd.xlane.f32.xlu0 %v1138_v21 }
 0x233   :  { %v3622_v23 = vpop.f32.mrf.mxu3 }
 0x235   :  { %v3624_v25 = vpop.f32.mrf.mxu1 }
 0x236   :  { %v1021_v20 = vsel %vm446_vm0, %v3624_v25, -inf }
 0x237   :  { %1022 = vmax.xlane.f32.xlu1 %v1021_v20  ;;  %965 = vmax.xlane.f32.xlu0 %v964_v19  ;;  %v985_v20 = vsel %vm446_vm0, %v3622_v23, -inf }
 0x239   :  { %v993_v40 = vpop.xlane.xlu1 %992 }
 0x23a   :  { %v1055_v2 = vsub.f32 %v3542_v26, %v993_v40 }
 0x23b   :  { %v3634_v29 = vpop.f32.mrf.mxu3 }
 0x23c   :  { %v988_v43 = vsel %vm446_vm0, %v3634_v29, -inf  ;;  %v1103_v51 = vmul.f32 1.442695, %v1055_v2 }
 0x23d   :  { %v3637_v32 = vpop.f32.mrf.mxu1 }
 0x23e   :  { %v1024_v34 = vsel %vm446_vm0, %v3637_v32, -inf  ;;  %2964 = vpow2.f32 %v1103_v51 }
 0x23f   :  { %1142 = vadd.xlane.f32.xlu1 %v1141_v33  ;;  %1025 = vmax.xlane.f32.xlu2 %v1024_v34 }
 0x240   :  { %1007 = vmax.xlane.f32.xlu0 %v1006_v35 }
 0x243   :  { %v3647_v38 = vpop.f32.mrf.mxu3 }
 0x244   :  { %v1009_v55 = vsel %vm446_vm0, %v3647_v38, -inf }
 0x246   :  { %v957_v0 = vpop.xlane.xlu2 %956 }
 0x247   :  { %1028 = vmax.xlane.f32.xlu1 %v1027_v60  ;;  %989 = vmax.xlane.f32.xlu2 %v988_v43  ;;  %v1043_v6 = vsub.f32 %v3548_v39, %v957_v0 }
 0x248   :  { %971 = vmax.xlane.f32.xlu0 %v970_v44 }
 0x249   :  { %v1079_v15 = vmul.f32 1.442695, %v1043_v6 }
 0x24b   :  { %v3659_v52 = vpop.f32.mrf.mxu3  ;;  %2966 = vpow2.f32 %v1079_v15 }
 0x24c   :  { %v1012_v59 = vsel %vm446_vm0, %v3659_v52, -inf }
 0x24e   :  { %v960_v57 = vpop.xlane.xlu1 %959 }
 0x24f   :  { %1145 = vadd.xlane.f32.xlu1 %v1144_v54  ;;  %1013 = vmax.xlane.f32.xlu2 %v1012_v59  ;;  %v981_v18 = vpop.xlane.xlu0 %980 }
 0x250   :  { %1031 = vmax.xlane.f32.xlu0 %v1030_v61  ;;  %v1051_v22 = vsub.f32 %v3555_v42, %v981_v18 }
 0x252   :  { %v1095_v30 = vmul.f32 1.442695, %v1051_v22 }
 0x253   :  { %v3668_v3 = vpop.f32.mrf.mxu3 }
 0x254   :  { %v1033_v8 = vsel %vm446_vm0, %v3668_v3, -inf }
 0x257   :  { %977 = vmax.xlane.f32.xlu1 %v976_v7  ;;  %v984_v14 = vpop.xlane.xlu1 %983  ;;  %1034 = vmax.xlane.f32.xlu2 %v1033_v8 }
 0x258   :  { %974 = vmax.xlane.f32.xlu0 %v973_v10  ;;  %v1052_v26 = vsub.f32 %v3561_v45, %v984_v14  ;;  %v3687_v45 = vpop.eup %2964 }
 0x259   :  { %v3689_v33 = vpop.eup %2966  ;;  %v1183_v36 = vsel %vm446_vm0, %v3687_v45, 0.0 }
 0x25a   :  { %v1097_v21 = vmul.f32 1.442695, %v1052_v26  ;;  %v1147_v60 = vsel %vm446_vm0, %v3689_v33, 0.0 }
 0x25b   :  { %v3678_v39 = vpop.f32.mrf.mxu3 }
 0x25c   :  { %2968 = vpow2.f32 %v1097_v21  ;;  %v1036_v19 = vsel %vm446_vm0, %v3678_v39, -inf }
 0x25d   :  { %2970 = vpow2.f32 %v1095_v30 }
 0x25f   :  { %986 = vmax.xlane.f32.xlu1 %v985_v20  ;;  %1037 = vmax.xlane.f32.xlu2 %v1036_v19 }
 0x260   :  { %1010 = vmax.xlane.f32.xlu0 %v1009_v55 }
 0x262   :  { %v996_v34 = vpop.xlane.xlu2 %995  ;;  %v3691_v42 = vpop.eup %2968 }
 0x263   :  { %v1056_v35 = vsub.f32 %v3565_v48, %v996_v34  ;;  %v1174_v40 = vsel %vm446_vm0, %v3691_v42, 0.0  ;;  %v3700_v54 = vpop.eup %2970  ;;  %v1044_v48 = vsub.f32 %v3553_v41, %v960_v57 }
 0x264   :  { %v1171_v0 = vsel %vm446_vm0, %v3700_v54, 0.0 }
 0x265   :  { %v1105_v43 = vmul.f32 1.442695, %v1056_v35  ;;  %v1081_v2 = vmul.f32 1.442695, %v1044_v48 }
 0x267   :  { %1184 = vadd.xlane.f32.xlu1 %v1183_v36  ;;  %1148 = vadd.xlane.f32.xlu2 %v1147_v60  ;;  %2972 = vpow2.f32 %v1105_v43 }
 0x268   :  { %1175 = vadd.xlane.f32.xlu0 %v1174_v40 }
 0x26a   :  { %v963_v44 = vpop.xlane.xlu2 %962 }
 0x26b   :  { %v1045_v59 = vsub.f32 %v3569_v50, %v963_v44 }
 0x26d   :  { %v1083_v61 = vmul.f32 1.442695, %v1045_v59  ;;  %v3706_v7 = vpop.eup %2972 }
 0x26e   :  { %v1186_v41 = vsel %vm446_vm0, %v3706_v7, 0.0 }
 0x26f   :  { %2974 = vpow2.f32 %v1083_v61  ;;  %1172 = vadd.xlane.f32.xlu2 %v1171_v0 }
 0x270   :  { %2976 = vpow2.f32 %v1081_v2 }
 0x272   :  { %v1005_v6 = vpop.xlane.xlu2 %1004 }
 0x273   :  { %v1059_v10 = vsub.f32 %v3573_v53, %v1005_v6 }
 0x275   :  { %v3708_v8 = vpop.eup %2974  ;;  %v1111_v57 = vmul.f32 1.442695, %v1059_v10 }
 0x276   :  { %v1153_v50 = vsel %vm446_vm0, %v3708_v8, 0.0  ;;  %v3715_v51 = vpop.eup %2976 }
 0x277   :  { %1154 = vadd.xlane.f32.xlu1 %v1153_v50  ;;  %1187 = vadd.xlane.f32.xlu2 %v1186_v41  ;;  %2978 = vpow2.f32 %v1111_v57  ;;  %v1150_v14 = vsel %vm446_vm0, %v3715_v51, 0.0 }
 0x27d   :  { %v3719_v15 = vpop.eup %2978 }
 0x27e   :  { %v1195_v53 = vsel %vm446_vm0, %v3719_v15, 0.0 }
 0x27f   :  { %1151 = vadd.xlane.f32.xlu2 %v1150_v14 }
 0x287   :  { %1196 = vadd.xlane.f32.xlu2 %v1195_v53 }
 0x288   :  { %v969_v34 = vpop.xlane.xlu2 %968 }
 0x28a   :  { %v1017_v26 = vpop.xlane.xlu1 %1016 }
 0x28b   :  { %v1063_v20 = vsub.f32 %v3588_v1, %v1017_v26  ;;  %v2859_v26 = vunpack.i.l.bf16 %v3603_v9 }
 0x28d   :  { %v1119_v55 = vmul.f32 1.442695, %v1063_v20 }
 0x291   :  { %v999_v18 = vpop.xlane.xlu0 %998 }
 0x292   :  { %v1137_v21 = vpop.xlane.xlu1 %1136  ;;  %v1057_v22 = vsub.f32 %v3596_v5, %v999_v18  ;;  %v1047_v5 = vsub.f32 %v3584_v63, %v969_v34 }
 0x293   :  { %2980 = vrcp.f32 %v1137_v21  ;;  %v1242_v48 = vand.u32 2147483648, %v1137_v21  ;;  %v1240_v2 = vand.u32 2147483647, %v1137_v21  ;;  %vm1236_vm2 = vweird.f32 %v1137_v21 }
 0x294   :  { %v1107_v19 = vmul.f32 1.442695, %v1057_v22  ;;  %v1087_v10 = vmul.f32 1.442695, %v1047_v5  ;;  %v2860_v22 = vunpack.i.h.bf16 %v3603_v9 }
 0x295   :  { %v1243_v50 = vor.u32 1.1754944e-38, %v1242_v48  ;;  %vm1241_vm4 = vcmp.eq.f32.partialorder %v1240_v2, 8.507059e+37 }
 0x296   :  { %2982 = vpow2.f32 %v1107_v19 }
 0x297   :  { %2984 = vpow2.f32 %v1119_v55 }
 0x299   :  { %v2981_v30 = vpop.eup %2980 }
 0x29a   :  { %v1232_v35 = vmul.f32 %v2981_v30, %v1137_v21  ;;  %v1020_v36 = vpop.xlane.xlu1 %1019  ;;  %v1002_v60 = vpop.xlane.xlu0 %1001  ;;  %vm1237_vm1 = vweird.f32 %v2981_v30 }
 0x29b   :  { %v1064_v40 = vsub.f32 %v3605_v11, %v1020_v36  ;;  %v1058_v59 = vsub.f32 %v3609_v13, %v1002_v60  ;;  %vm1238_vm3 = vmor %vm1236_vm2, %vm1237_vm1 }
 0x29c   :  { %v3726_v43 = vpop.eup %2982  ;;  %v1233_v44 = vsub.f32 1.0, %v1232_v35 }
 0x29d   :  { %v1121_v1 = vmul.f32 1.442695, %v1064_v40  ;;  %v1189_v61 = vsel %vm446_vm0, %v3726_v43, 0.0  ;;  %v1109_v11 = vmul.f32 1.442695, %v1058_v59  ;;  %v3732_v41 = vpop.eup %2984 }
 0x29e   :  { %v1234_v0 = vmul.f32 %v2981_v30, %v1233_v44  ;;  %1190 = vadd.xlane.f32.xlu0 %v1189_v61  ;;  %v1207_v18 = vsel %vm446_vm0, %v3732_v41, 0.0 }
 0x29f   :  { %2986 = vpow2.f32 %v1121_v1 }
 0x2a0   :  { %v1235_v6 = vadd.f32 %v2981_v30, %v1234_v0 }
 0x2a2   :  { %v1239_v13 = vsel %vm1238_vm3, %v2981_v30, %v1235_v6  ;;  %v1140_v63 = vpop.xlane.xlu0 %1139 }
 0x2a3   :  { %v1244_v57 = vsel %vm1241_vm4, %v1243_v50, %v1239_v13  ;;  %2988 = vrcp.f32 %v1140_v63  ;;  %v1256_v44 = vand.u32 2147483648, %v1140_v63  ;;  %v1254_v5 = vand.u32 2147483647, %v1140_v63 }
 0x2a4   :  { %2990 = vpow2.f32 %v1109_v11  ;;  %v1679_v14 = vmul.f32 %v3592_v4, %v1244_v57  ;;  %vm1250_vm6 = vweird.f32 %v1140_v63 }
 0x2a5   :  { %v3735_v53 = vpop.eup %2986  ;;  %2992 = vpow2.f32 %v1087_v10  ;;  %v1257_v61 = vor.u32 1.1754944e-38, %v1256_v44  ;;  %vm1255_vm8 = vcmp.eq.f32.partialorder %v1254_v5, 8.507059e+37 }
 0x2a6   :  { %2756 = vmatmul.msk.f32.vlgmr.msra.gmra.mxu0 %vm446_vm0, %v1679_v14  ;;  %v1210_v21 = vsel %vm446_vm0, %v3735_v53, 0.0  ;;  %1208 = vadd.xlane.f32.xlu0 %v1207_v18 }
 0x2a7   :  { %1963 = vmatpush.msra.mxu0 %v2859_v26  ;;  %1211 = vadd.xlane.f32.xlu2 %v1210_v21 }
 0x2a9   :  { %v2989_v20 = vpop.eup %2988  ;;  %1964 = vmatpush.msra.mxu0 %v2860_v22 }
 0x2aa   :  { %v3744_v4 = vpop.xlane.xlu1 %1022  ;;  %v3746_v19 = vpop.eup %2990  ;;  %v1246_v55 = vmul.f32 %v2989_v20, %v1140_v63  ;;  %vm1251_vm5 = vweird.f32 %v2989_v20 }
 0x2ab   :  { %v966_v30 = vpop.xlane.xlu0 %965  ;;  %v3748_v34 = vpop.eup %2992  ;;  %v1192_v40 = vsel %vm446_vm0, %v3746_v19, 0.0  ;;  %vm1252_vm7 = vmor %vm1250_vm6, %vm1251_vm5 }
 0x2ac   :  { %v1046_v35 = vsub.f32 %v3579_v58, %v966_v30  ;;  %v1247_v36 = vsub.f32 1.0, %v1246_v55  ;;  %v1159_v59 = vsel %vm446_vm0, %v3748_v34, 0.0 }
 0x2ae   :  { %v1085_v60 = vmul.f32 1.442695, %v1046_v35  ;;  %v1248_v9 = vmul.f32 %v2989_v20, %v1247_v36  ;;  %1193 = vadd.xlane.f32.xlu0 %v1192_v40 }
 0x2af   :  { %1160 = vadd.xlane.f32.xlu2 %v1159_v59 }
 0x2b0   :  { %2994 = vpow2.f32 %v1085_v60  ;;  %v1249_v48 = vadd.f32 %v2989_v20, %v1248_v9 }
 0x2b2   :  { %v1143_v1 = vpop.xlane.xlu1 %1142  ;;  %v3755_v58 = vpop.xlane.xlu2 %1025  ;;  %v1253_v6 = vsel %vm1252_vm7, %v2989_v20, %v1249_v48 }
 0x2b3   :  { %2996 = vrcp.f32 %v1143_v1  ;;  %v1008_v0 = vpop.xlane.xlu0 %1007  ;;  %v1258_v11 = vsel %vm1255_vm8, %v1257_v61, %v1253_v6  ;;  %v1270_v20 = vand.u32 2147483648, %v1143_v1  ;;  %v1268_v35 = vand.u32 2147483647, %v1143_v1 }
 0x2b4   :  { %v1060_v2 = vsub.f32 %v3630_v27, %v1008_v0  ;;  %v1680_v13 = vmul.f32 %v3615_v16, %v1258_v11  ;;  %vm1264_vm10 = vweird.f32 %v1143_v1 }
 0x2b5   :  { %v1271_v9 = vor.u32 1.1754944e-38, %v1270_v20  ;;  %vm1269_vm12 = vcmp.eq.f32.partialorder %v1268_v35, 8.507059e+37 }
 0x2b6   :  { %v3758_v10 = vpop.eup %2994  ;;  %v1113_v50 = vmul.f32 1.442695, %v1060_v2  ;;  %2757 = vmatmul.msk.f32.gmra.mxu0 %vm446_vm0, %v1680_v13 }
 0x2b7   :  { %v1156_v63 = vsel %vm446_vm0, %v3758_v10, 0.0 }
 0x2b8   :  { %1157 = vadd.xlane.f32.xlu1 %v1156_v63  ;;  %2998 = vpow2.f32 %v1113_v50 }
 0x2b9   :  { %v2997_v57 = vpop.eup %2996 }
 0x2ba   :  { %v1260_v14 = vmul.f32 %v2997_v57, %v1143_v1  ;;  %v1029_v26 = vpop.xlane.xlu1 %1028  ;;  %v990_v18 = vpop.xlane.xlu2 %989  ;;  %vm1265_vm9 = vweird.f32 %v2997_v57 }
 0x2bb   :  { %v1067_v27 = vsub.f32 %v3645_v37, %v1029_v26  ;;  %v972_v21 = vpop.xlane.xlu0 %971  ;;  %vm1266_vm11 = vmor %vm1264_vm10, %vm1265_vm9  ;;  %v1054_v61 = vsub.f32 %v3634_v29, %v990_v18  ;;  %v1065_v26 = vsub.f32 %v3624_v25, %v3744_v4 }
 0x2bc   :  { %v1261_v22 = vsub.f32 1.0, %v1260_v14  ;;  %v1048_v30 = vsub.f32 %v3594_v47, %v972_v21 }
 0x2bd   :  { %v1127_v55 = vmul.f32 1.442695, %v1067_v27  ;;  %v1101_v50 = vmul.f32 1.442695, %v1054_v61 }
 0x2be   :  { %v1262_v16 = vmul.f32 %v2997_v57, %v1261_v22  ;;  %v3766_v36 = vpop.eup %2998  ;;  %v1089_v37 = vmul.f32 1.442695, %v1048_v30 }
 0x2bf   :  { %3000 = vpow2.f32 %v1127_v55  ;;  %v1198_v40 = vsel %vm446_vm0, %v3766_v36, 0.0 }
 0x2c0   :  { %v1263_v60 = vadd.f32 %v2997_v57, %v1262_v16  ;;  %1199 = vadd.xlane.f32.xlu0 %v1198_v40  ;;  %v1123_v40 = vmul.f32 1.442695, %v1065_v26 }
 0x2c2   :  { %v1267_v44 = vsel %vm1266_vm11, %v2997_v57, %v1263_v60  ;;  %v1146_v59 = vpop.xlane.xlu1 %1145  ;;  %v1014_v47 = vpop.xlane.xlu2 %1013 }
 0x2c3   :  { %v1272_v5 = vsel %vm1269_vm12, %v1271_v9, %v1267_v44  ;;  %3002 = vrcp.f32 %v1146_v59  ;;  %v1032_v48 = vpop.xlane.xlu0 %1031  ;;  %v1062_v21 = vsub.f32 %v3659_v52, %v1014_v47  ;;  %v1284_v22 = vand.u32 2147483648, %v1146_v59 }
 0x2c4   :  { %v1068_v0 = vsub.f32 %v3657_v49, %v1032_v48  ;;  %v1681_v1 = vmul.f32 %v3632_v28, %v1272_v5  ;;  %3004 = vpow2.f32 %v1089_v37  ;;  %v1282_v55 = vand.u32 2147483647, %v1146_v59 }
 0x2c5   :  { %v3773_v2 = vpop.eup %3000  ;;  %vm1278_vm14 = vweird.f32 %v1146_v59  ;;  %v1117_v4 = vmul.f32 1.442695, %v1062_v21  ;;  %v1285_v52 = vor.u32 1.1754944e-38, %v1284_v22 }
 0x2c6   :  { %v1129_v6 = vmul.f32 1.442695, %v1068_v0  ;;  %2758 = vmatmul.msk.f32.vlgmr.msrb.gmra.mxu1 %vm446_vm0, %v1681_v1  ;;  %v1219_v11 = vsel %vm446_vm0, %v3773_v2, 0.0  ;;  %vm1283_vm1 = vcmp.eq.f32.partialorder %v1282_v55, 8.507059e+37 }
 0x2c7   :  { %1220 = vadd.xlane.f32.xlu2 %v1219_v11 }
 0x2c8   :  { %3006 = vpow2.f32 %v1129_v6 }
 0x2c9   :  { %v3003_v13 = vpop.eup %3002  ;;  %3008 = vpow2.f32 %v1101_v50 }
 0x2ca   :  { %v1274_v63 = vmul.f32 %v3003_v13, %v1146_v59  ;;  %v978_v57 = vpop.xlane.xlu1 %977  ;;  %v3778_v29 = vpop.eup %3004  ;;  %vm1279_vm13 = vweird.f32 %v3003_v13 }
 0x2cb   :  { %v3780_v49 = vpop.xlane.xlu2 %1034  ;;  %v1050_v28 = vsub.f32 %v3617_v17, %v978_v57  ;;  %v975_v14 = vpop.xlane.xlu0 %974  ;;  %v1162_v35 = vsel %vm446_vm0, %v3778_v29, 0.0  ;;  %vm1280_vm15 = vmor %vm1278_vm14, %vm1279_vm13 }
 0x2cc   :  { %v1275_v18 = vsub.f32 1.0, %v1274_v63  ;;  %v1049_v27 = vsub.f32 %v3607_v12, %v975_v14 }
 0x2cd   :  { %v1093_v20 = vmul.f32 1.442695, %v1050_v28 }
 0x2ce   :  { %v1276_v30 = vmul.f32 %v3003_v13, %v1275_v18  ;;  %v1091_v16 = vmul.f32 1.442695, %v1049_v27  ;;  %v3789_v17 = vpop.eup %3006 }
 0x2cf   :  { %3010 = vpow2.f32 %v1093_v20  ;;  %1163 = vadd.xlane.f32.xlu2 %v1162_v35  ;;  %v1222_v25 = vsel %vm446_vm0, %v3789_v17, 0.0  ;;  %v3793_v60 = vpop.eup %3008 }
 0x2d0   :  { %v1277_v12 = vadd.f32 %v3003_v13, %v1276_v30  ;;  %3012 = vpow2.f32 %v1091_v16  ;;  %1223 = vadd.xlane.f32.xlu1 %v1222_v25  ;;  %v1180_v1 = vsel %vm446_vm0, %v3793_v60, 0.0 }
 0x2d1   :  { %3014 = vpow2.f32 %v1117_v4 }
 0x2d2   :  { %v987_v9 = vpop.xlane.xlu1 %986  ;;  %v1281_v37 = vsel %vm1280_vm15, %v3003_v13, %v1277_v12  ;;  %3016 = vpow2.f32 %v1123_v40 }
 0x2d3   :  { %v3795_v44 = vpop.xlane.xlu2 %1037  ;;  %v1053_v5 = vsub.f32 %v3622_v23, %v987_v9  ;;  %v1286_v59 = vsel %vm1283_vm1, %v1285_v52, %v1281_v37  ;;  %v1011_v47 = vpop.xlane.xlu0 %1010 }
 0x2d4   :  { %v1682_v48 = vmul.f32 %v3655_v46, %v1286_v59  ;;  %v1061_v23 = vsub.f32 %v3647_v38, %v1011_v47  ;;  %v2854_v59 = vunpack.i.l.bf16 %v3577_v56  ;;  %v2855_v47 = vunpack.i.h.bf16 %v3577_v56 }
 0x2d5   :  { %v3799_v61 = vpop.eup %3010  ;;  %v1099_v0 = vmul.f32 1.442695, %v1053_v5 }
 0x2d6   :  { %2759 = vmatmul.msk.f32.gmra.mxu1 %vm446_vm0, %v1682_v48  ;;  %v1168_v6 = vsel %vm446_vm0, %v3799_v61, 0.0  ;;  %v3806_v11 = vpop.eup %3012  ;;  %v1115_v13 = vmul.f32 1.442695, %v1061_v23 }
 0x2d7   :  { %3018 = vpow2.f32 %v1099_v0  ;;  %1181 = vadd.xlane.f32.xlu2 %v1180_v1  ;;  %v1165_v46 = vsel %vm446_vm0, %v3806_v11, 0.0  ;;  %v3811_v50 = vpop.eup %3014 }
 0x2d8   :  { %1169 = vadd.xlane.f32.xlu1 %v1168_v6  ;;  %1166 = vadd.xlane.f32.xlu0 %v1165_v46  ;;  %v3813_v57 = vpop.eup %3016  ;;  %v1204_v14 = vsel %vm446_vm0, %v3811_v50, 0.0 }
 0x2d9   :  { %v1213_v26 = vsel %vm446_vm0, %v3813_v57, 0.0 }
 0x2da   :  { %v3823_v21 = vpop.xlane.xlu1 %1184 }
 0x2db   :  { %v1149_v63 = vpop.xlane.xlu2 %1148  ;;  %v3838_v0 = vpop.xlane.xlu0 %1175 }
 0x2dc   :  { %3020 = vrcp.f32 %v1149_v63  ;;  %v1298_v30 = vand.u32 2147483648, %v1149_v63  ;;  %v1296_v35 = vand.u32 2147483647, %v1149_v63  ;;  %vm1292_vm3 = vweird.f32 %v1149_v63 }
 0x2dd   :  { %v3815_v28 = vpop.eup %3018  ;;  %3022 = vpow2.f32 %v1115_v13 }
 0x2de   :  { %v1177_v38 = vsel %vm446_vm0, %v3815_v28, 0.0  ;;  %v1299_v4 = vor.u32 1.1754944e-38, %v1298_v30  ;;  %vm1297_vm5 = vcmp.eq.f32.partialorder %v1296_v35, 8.507059e+37 }
 0x2df   :  { %1205 = vadd.xlane.f32.xlu2 %v1204_v14 }
 0x2e0   :  { %1178 = vadd.xlane.f32.xlu1 %v1177_v38  ;;  %1214 = vadd.xlane.f32.xlu0 %v1213_v26 }
 0x2e2   :  { %v3021_v18 = vpop.eup %3020 }
 0x2e3   :  { %v1288_v27 = vmul.f32 %v3021_v18, %v1149_v63  ;;  %v3825_v22 = vpop.xlane.xlu2 %1172  ;;  %v3827_v20 = vpop.eup %3022  ;;  %vm1293_vm2 = vweird.f32 %v3021_v18 }
 0x2e4   :  { %v1201_v25 = vsel %vm446_vm0, %v3827_v20, 0.0  ;;  %vm1294_vm4 = vmor %vm1292_vm3, %vm1293_vm2  ;;  %vm1404_vm15 = vweird.f32 %v3825_v22 }
 0x2e5   :  { %v1289_v55 = vsub.f32 1.0, %v1288_v27 }
 0x2e7   :  { %v1290_v16 = vmul.f32 %v3021_v18, %v1289_v55 }
 0x2e8   :  { %1202 = vadd.xlane.f32.xlu1 %v1201_v25 }
 0x2e9   :  { %v1291_v12 = vadd.f32 %v3021_v18, %v1290_v16 }
 0x2ea   :  { %v1155_v40 = vpop.xlane.xlu1 %1154 }
 0x2eb   :  { %v1295_v52 = vsel %vm1294_vm4, %v3021_v18, %v1291_v12  ;;  %v3831_v9 = vpop.xlane.xlu2 %1187  ;;  %3024 = vrcp.f32 %v1155_v40  ;;  %v1324_v63 = vand.u32 2147483647, %v1155_v40  ;;  %vm1320_vm7 = vweird.f32 %v1155_v40 }
 0x2ec   :  { %v1300_v37 = vsel %vm1297_vm5, %v1299_v4, %v1295_v52  ;;  %3026 = vrcp.f32 %v3825_v22  ;;  %v2864_v4 = vunpack.i.l.bf16 %v3582_v62  ;;  %vm1418_vm4 = vweird.f32 %v3838_v0 }
 0x2ed   :  { %v1683_v5 = vmul.f32 %v3689_v33, %v1300_v37  ;;  %v1326_v33 = vand.u32 2147483648, %v1155_v40  ;;  %vm1325_vm9 = vcmp.eq.f32.partialorder %v1324_v63, 8.507059e+37 }
 0x2ef   :  { %2760 = vmatmul.msk.f32.vlgmr.msra.gmra.mxu2 %vm446_vm0, %v1683_v5  ;;  %v1327_v26 = vor.u32 1.1754944e-38, %v1326_v33 }
 0x2f0   :  { %2021 = vmatpush.msra.mxu2 %v2854_v59 }
 0x2f1   :  { %v3025_v48 = vpop.eup %3024 }
 0x2f2   :  { %v1316_v1 = vmul.f32 %v3025_v48, %v1155_v40  ;;  %2022 = vmatpush.msra.mxu2 %v2855_v47  ;;  %v3840_v23 = vpop.eup %3026  ;;  %vm1321_vm6 = vweird.f32 %v3025_v48  ;;  %v2865_v47 = vunpack.i.h.bf16 %v3582_v62 }
 0x2f3   :  { %v1152_v6 = vpop.xlane.xlu2 %1151  ;;  %v1400_v56 = vmul.f32 %v3840_v23, %v3825_v22  ;;  %vm1322_vm8 = vmor %vm1320_vm7, %vm1321_vm6  ;;  %vm1405_vm13 = vweird.f32 %v3840_v23 }
 0x2f4   :  { %3028 = vrcp.f32 %v1152_v6  ;;  %v1317_v46 = vsub.f32 1.0, %v1316_v1  ;;  %2872 = vrot.lane.b32.xlu0 %v3419_v24, %s3246_s13  ;;  %v1312_v40 = vand.u32 2147483648, %v1152_v6  ;;  %v1310_v59 = vand.u32 2147483647, %v1152_v6  ;;  %vm1406_vm1 = vmor %vm1404_vm15, %vm1405_vm13 }
 0x2f5   :  { %3030 = vrcp.f32 %v3838_v0  ;;  %v1401_v27 = vsub.f32 1.0, %v1400_v56  ;;  %vm1306_vm11 = vweird.f32 %v1152_v6 }
 0x2f6   :  { %v1318_v13 = vmul.f32 %v3025_v48, %v1317_v46  ;;  %v1313_v1 = vor.u32 1.1754944e-38, %v1312_v40  ;;  %vm1311_vm14 = vcmp.eq.f32.partialorder %v1310_v59, 8.507059e+37 }
 0x2f7   :  { %2877 = vrot.lane.b32.xlu2 %v3434_v31, %s3248_s15  ;;  %v1402_v37 = vmul.f32 %v3840_v23, %v1401_v27 }
 0x2f8   :  { %v1319_v14 = vadd.f32 %v3025_v48, %v1318_v13  ;;  %v1410_v13 = vand.u32 2147483648, %v3825_v22 }
 0x2f9   :  { %v1403_v46 = vadd.f32 %v3840_v23, %v1402_v37 }
 0x2fa   :  { %v3029_v38 = vpop.eup %3028  ;;  %v1323_v55 = vsel %vm1322_vm8, %v3025_v48, %v1319_v14 }
 0x2fb   :  { %v3849_v18 = vpop.eup %3030  ;;  %v1302_v30 = vmul.f32 %v3029_v38, %v1152_v6  ;;  %v3851_v16 = vpop.xlane.xlu2 %1196  ;;  %v1328_v35 = vsel %vm1325_vm9, %v1327_v26, %v1323_v55  ;;  %vm1307_vm10 = vweird.f32 %v3029_v38  ;;  %v1408_v6 = vand.u32 2147483647, %v3825_v22 }
 0x2fc   :  { %2882 = vrot.lane.b32.xlu0 %v3419_v24, %s3247_s14  ;;  %v1685_v12 = vmul.f32 %v3708_v8, %v1328_v35  ;;  %v1414_v52 = vmul.f32 %v3849_v18, %v3838_v0  ;;  %3032 = vrcp.f32 %v3851_v16  ;;  %vm1308_vm12 = vmor %vm1306_vm11, %vm1307_vm10  ;;  %v1407_v14 = vsel %vm1406_vm1, %v3840_v23, %v1403_v46 }
 0x2fd   :  { %v1303_v25 = vsub.f32 1.0, %v1302_v30  ;;  %v1411_v26 = vor.u32 1.1754944e-38, %v1410_v13  ;;  %vm1409_vm2 = vcmp.eq.f32.partialorder %v1408_v6, 8.507059e+37  ;;  %vm1419_vm3 = vweird.f32 %v3849_v18 }
 0x2fe   :  { %2762 = vmatmul.msk.f32.vlgmr.msrb.gmra.mxu3 %vm446_vm0, %v1685_v12  ;;  %v1415_v48 = vsub.f32 1.0, %v1414_v52  ;;  %v1422_v23 = vand.u32 2147483647, %v3838_v0  ;;  %v1066_v30 = vsub.f32 %v3637_v32, %v3755_v58  ;;  %vm1420_vm5 = vmor %vm1418_vm4, %vm1419_vm3  ;;  %v1522_v37 = vand.u32 2147483648, %v3851_v16 }
 0x2ff   :  { %v1304_v5 = vmul.f32 %v3029_v38, %v1303_v25  ;;  %2050 = vmatpush.msrb.mxu3 %v2864_v4  ;;  %v1412_v27 = vsel %vm1409_vm2, %v1411_v26, %v1407_v14  ;;  %vm1516_vm8 = vweird.f32 %v3851_v16  ;;  %vm1460_vm4 = vweird.f32 %v3823_v21 }
 0x300   :  { %v1416_v63 = vmul.f32 %v3849_v18, %v1415_v48  ;;  %vm1423_vm6 = vcmp.eq.f32.partialorder %v1422_v23, 8.507059e+37  ;;  %v1125_v4 = vmul.f32 1.442695, %v1066_v30 }
 0x301   :  { %v1305_v8 = vadd.f32 %v3029_v38, %v1304_v5  ;;  %2051 = vmatpush.msrb.mxu3 %v2865_v47  ;;  %2867 = vrot.lane.b32.xlu1 %v3434_v31, %s3247_s14  ;;  %v1069_v5 = vsub.f32 %v3668_v3, %v3780_v49 }
 0x302   :  { %v3033_v56 = vpop.eup %3032  ;;  %v1417_v22 = vadd.f32 %v3849_v18, %v1416_v63  ;;  %3034 = vpow2.f32 %v1125_v4 }
 0x303   :  { %v1309_v33 = vsel %vm1308_vm12, %v3029_v38, %v1305_v8  ;;  %v1512_v38 = vmul.f32 %v3033_v56, %v3851_v16  ;;  %vm1517_vm7 = vweird.f32 %v3033_v56 }
 0x304   :  { %v1314_v62 = vsel %vm1311_vm14, %v1313_v1, %v1309_v33  ;;  %2887 = vrot.lane.b32.xlu0 %v3419_v24, %s3248_s15  ;;  %v1424_v24 = vand.u32 2147483648, %v3838_v0  ;;  %v1421_v25 = vsel %vm1420_vm5, %v3849_v18, %v1417_v22  ;;  %vm1518_vm9 = vmor %vm1516_vm8, %vm1517_vm7  ;;  %v1523_v0 = vor.u32 1.1754944e-38, %v1522_v37 }
 0x305   :  { %v1684_v31 = vmul.f32 %v3715_v51, %v1314_v62  ;;  %v1513_v55 = vsub.f32 1.0, %v1512_v38  ;;  %v1691_v51 = vmul.f32 %v3700_v54, %v1412_v27  ;;  %v1520_v54 = vand.u32 2147483647, %v3851_v16 }
 0x306   :  { %v1425_v12 = vor.u32 1.1754944e-38, %v1424_v24  ;;  %v1070_v1 = vsub.f32 %v3678_v39, %v3795_v44 }
 0x307   :  { %2761 = vmatmul.msk.f32.gmra.mxu2 %vm446_vm0, %v1684_v31  ;;  %v1514_v35 = vmul.f32 %v3033_v56, %v1513_v55  ;;  %vm1521_vm10 = vcmp.eq.f32.partialorder %v1520_v54, 8.507059e+37 }
 0x308   :  { %v1426_v52 = vsel %vm1423_vm6, %v1425_v12, %v1421_v25  ;;  %v3898_v8 = vpop.eup %3034  ;;  %v1133_v49 = vmul.f32 1.442695, %v1070_v1 }
 0x309   :  { %v1515_v40 = vadd.f32 %v3033_v56, %v1514_v35  ;;  %v1692_v32 = vmul.f32 %v3691_v42, %v1426_v52  ;;  %v1131_v42 = vmul.f32 1.442695, %v1069_v5  ;;  %v1216_v48 = vsel %vm446_vm0, %v3898_v8, 0.0 }
 0x30b   :  { %v1519_v58 = vsel %vm1518_vm9, %v3033_v56, %v1515_v40  ;;  %3036 = vpow2.f32 %v1131_v42  ;;  %vm1474_vm9 = vweird.f32 %v3831_v9 }
 0x30c   :  { %v1524_v59 = vsel %vm1521_vm10, %v1523_v0, %v1519_v58 }
 0x30d   :  { %v1699_v16 = vmul.f32 %v3719_v15, %v1524_v59 }
 0x30f   :  { %2768 = vmatmul.msk.f32.vlgmr.msrb.gmra.mxu2 %vm446_vm0, %v1691_v51 }
 0x311   :  { %v3892_v18 = vpop.xlane.xlu0 %1190  ;;  %v3908_v33 = vpop.eup %3036 }
 0x312   :  { %v1225_v62 = vsel %vm446_vm0, %v3908_v33, 0.0 }
 0x317   :  { %2769 = vmatmul.msk.f32.gmra.mxu2 %vm446_vm0, %v1692_v32 }
 0x319   :  { %v3906_v46 = vpop.xlane.xlu0 %1208 }
 0x31a   :  { %v3896_v47 = vpop.xlane.xlu2 %1211 }
 0x31f   :  { %2776 = vmatmul.msk.f32.vlgmr.msra.gmra.mxu2 %vm446_vm0, %v1699_v16 }
 0x320   :  { %1217 = vadd.xlane.f32.xlu2 %v1216_v48 }
 0x321   :  { %v3913_v6 = vpop.xlane.xlu0 %1193 }
 0x322   :  { %v1161_v3 = vpop.xlane.xlu2 %1160 }
 0x323   :  { %3038 = vrcp.f32 %v1161_v3  ;;  %v1354_v44 = vand.u32 2147483648, %v1161_v3  ;;  %v1352_v63 = vand.u32 2147483647, %v1161_v3  ;;  %vm1348_vm12 = vweird.f32 %v1161_v3 }
 0x324   :  { %3040 = vpow2.f32 %v1133_v49 }
 0x325   :  { %3042 = vrcp.f32 %v3823_v21  ;;  %v1355_v55 = vor.u32 1.1754944e-38, %v1354_v44  ;;  %vm1353_vm14 = vcmp.eq.f32.partialorder %v1352_v63, 8.507059e+37 }
 0x329   :  { %v3039_v56 = vpop.eup %3038 }
 0x32a   :  { %v1344_v15 = vmul.f32 %v3039_v56, %v1161_v3  ;;  %vm1349_vm11 = vweird.f32 %v3039_v56  ;;  %v3916_v14 = vpop.eup %3040 }
 0x32b   :  { %v1158_v13 = vpop.xlane.xlu1 %1157  ;;  %1226 = vadd.xlane.f32.xlu1 %v1225_v62  ;;  %v3918_v38 = vpop.eup %3042  ;;  %vm1350_vm13 = vmor %vm1348_vm12, %vm1349_vm11  ;;  %v1228_v23 = vsel %vm446_vm0, %v3916_v14, 0.0 }
 0x32c   :  { %3044 = vrcp.f32 %v1158_v13  ;;  %v1345_v39 = vsub.f32 1.0, %v1344_v15  ;;  %v1456_v25 = vmul.f32 %v3918_v38, %v3823_v21  ;;  %v1340_v37 = vand.u32 2147483648, %v1158_v13 }
 0x32d   :  { %3046 = vrcp.f32 %v3831_v9  ;;  %v1338_v54 = vand.u32 2147483647, %v1158_v13  ;;  %vm1334_vm1 = vweird.f32 %v1158_v13  ;;  %v1464_v15 = vand.u32 2147483647, %v3823_v21 }
 0x32e   :  { %v1346_v31 = vmul.f32 %v3039_v56, %v1345_v39  ;;  %v1457_v32 = vsub.f32 1.0, %v1456_v25  ;;  %v1341_v16 = vor.u32 1.1754944e-38, %v1340_v37  ;;  %vm1461_vm6 = vweird.f32 %v3918_v38 }
 0x32f   :  { %vm1339_vm3 = vcmp.eq.f32.partialorder %v1338_v54, 8.507059e+37  ;;  %vm3954_vm11 = vmor %vm1460_vm4, %vm1461_vm6  ;;  %vm1488_vm4 = vweird.f32 %v3892_v18 }
 0x330   :  { %v1347_v26 = vadd.f32 %v3039_v56, %v1346_v31  ;;  %v1466_v31 = vand.u32 2147483648, %v3823_v21 }
 0x332   :  { %v3045_v27 = vpop.eup %3044  ;;  %v1351_v24 = vsel %vm1350_vm13, %v3039_v56, %v1347_v26  ;;  %v1467_v21 = vor.u32 1.1754944e-38, %v1466_v31 }
 0x333   :  { %v3920_v22 = vpop.eup %3046  ;;  %v1330_v51 = vmul.f32 %v3045_v27, %v1158_v13  ;;  %v1356_v30 = vsel %vm1353_vm14, %v1355_v55, %v1351_v24  ;;  %1229 = vadd.xlane.f32.xlu1 %v1228_v23  ;;  %v1200_v35 = vpop.xlane.xlu0 %1199  ;;  %vm1335_vm15 = vweird.f32 %v3045_v27  ;;  %v1480_v55 = vand.u32 2147483648, %v3831_v9 }
 0x334   :  { %3048 = vrcp.f32 %v1200_v35  ;;  %v1470_v4 = vmul.f32 %v3920_v22, %v3831_v9  ;;  %v1687_v52 = vmul.f32 %v3748_v34, %v1356_v30  ;;  %vm1336_vm2 = vmor %vm1334_vm1, %vm1335_vm15  ;;  %v1458_v34 = vmul.f32 %v3918_v38, %v1457_v32 }
 0x335   :  { %v1331_v12 = vsub.f32 1.0, %v1330_v51  ;;  %3050 = vrcp.f32 %v3892_v18  ;;  %v1536_v62 = vand.u32 2147483648, %v1200_v35  ;;  %v1534_v63 = vand.u32 2147483647, %v1200_v35 }
 0x336   :  { %2764 = vmatmul.msk.f32.vlgmr.msrb.gmra.mxu0 %vm446_vm0, %v1687_v52  ;;  %v1471_v0 = vsub.f32 1.0, %v1470_v4  ;;  %v1459_v44 = vadd.f32 %v3918_v38, %v1458_v34  ;;  %vm1530_vm7 = vweird.f32 %v1200_v35  ;;  %vm1475_vm8 = vweird.f32 %v3920_v22 }
 0x337   :  { %v1332_v40 = vmul.f32 %v3045_v27, %v1331_v12  ;;  %v1478_v24 = vand.u32 2147483647, %v3831_v9  ;;  %v1537_v30 = vor.u32 1.1754944e-38, %v1536_v62  ;;  %vm1535_vm12 = vcmp.eq.f32.partialorder %v1534_v63, 8.507059e+37  ;;  %vm1476_vm13 = vmor %vm1474_vm9, %vm1475_vm8 }
 0x338   :  { %v1472_v3 = vmul.f32 %v3920_v22, %v1471_v0  ;;  %v1463_v12 = vsel %vm3954_vm11, %v3918_v38, %v1459_v44  ;;  %vm1465_vm14 = vcmp.eq.f32.partialorder %v1464_v15, 8.507059e+37  ;;  %v1481_v52 = vor.u32 1.1754944e-38, %v1480_v55 }
 0x339   :  { %v1333_v58 = vadd.f32 %v3045_v27, %v1332_v40  ;;  %v1468_v37 = vsel %vm1465_vm14, %v1467_v21, %v1463_v12  ;;  %vm1479_vm15 = vcmp.eq.f32.partialorder %v1478_v24, 8.507059e+37  ;;  %v1592_v24 = vand.u32 2147483648, %v3896_v47 }
 0x33a   :  { %v3930_v5 = vpop.xlane.xlu2 %1220  ;;  %v3049_v59 = vpop.eup %3048  ;;  %vm1572_vm9 = vweird.f32 %v3906_v46 }
 0x33b   :  { %v1526_v42 = vmul.f32 %v3049_v59, %v1200_v35  ;;  %v1337_v48 = vsel %vm1336_vm2, %v3045_v27, %v1333_v58  ;;  %vm1531_vm5 = vweird.f32 %v3049_v59  ;;  %v3939_v39 = vpop.eup %3050  ;;  %v1473_v27 = vadd.f32 %v3920_v22, %v1472_v3 }
 0x33c   :  { %v1342_v1 = vsel %vm1339_vm3, %v1341_v16, %v1337_v48  ;;  %vm1532_vm10 = vmor %vm1530_vm7, %vm1531_vm5  ;;  %v1484_v23 = vmul.f32 %v3939_v39, %v3892_v18  ;;  %v1492_v3 = vand.u32 2147483647, %v3892_v18  ;;  %vm1489_vm2 = vweird.f32 %v3939_v39 }
 0x33d   :  { %v1527_v49 = vsub.f32 1.0, %v1526_v42  ;;  %v1686_v56 = vmul.f32 %v3758_v10, %v1342_v1  ;;  %v1477_v4 = vsel %vm1476_vm13, %v3920_v22, %v1473_v27  ;;  %v3976_v22 = vmul.f32 %v3687_v45, %v1468_v37  ;;  %vm4019_vm8 = vmor %vm1488_vm4, %vm1489_vm2 }
 0x33e   :  { %v1485_v54 = vsub.f32 1.0, %v1484_v23  ;;  %v1482_v58 = vsel %vm1479_vm15, %v1481_v52, %v1477_v4  ;;  %vm4008_vm6 = vcmp.eq.f32.partialorder %v1492_v3, 8.507059e+37 }
 0x33f   :  { %v1528_v13 = vmul.f32 %v3049_v59, %v1527_v49  ;;  %2763 = vmatmul.msk.f32.gmra.mxu3 %vm446_vm0, %v1686_v56  ;;  %v3985_v34 = vmul.f32 %v3706_v7, %v1482_v58  ;;  %v1494_v7 = vand.u32 2147483648, %v3892_v18 }
 0x340   :  { %v1486_v16 = vmul.f32 %v3939_v39, %v1485_v54 }
 0x341   :  { %v1529_v26 = vadd.f32 %v3049_v59, %v1528_v13  ;;  %v1578_v13 = vand.u32 2147483648, %v3906_v46 }
 0x342   :  { %v3944_v10 = vpop.xlane.xlu2 %1163  ;;  %v1487_v62 = vadd.f32 %v3939_v39, %v1486_v16  ;;  %v1590_v16 = vand.u32 2147483647, %v3896_v47 }
 0x343   :  { %3052 = vrcp.f32 %v3944_v10  ;;  %v3961_v35 = vpop.xlane.xlu1 %1223  ;;  %v1533_v25 = vsel %vm1532_vm10, %v3049_v59, %v1529_v26  ;;  %v1368_v49 = vand.u32 2147483648, %v3944_v10  ;;  %v1366_v15 = vand.u32 2147483647, %v3944_v10 }
 0x344   :  { %3054 = vrcp.f32 %v3906_v46  ;;  %v1538_v9 = vsel %vm1535_vm12, %v1537_v30, %v1533_v25  ;;  %vm1362_vm3 = vweird.f32 %v3944_v10  ;;  %v1495_v30 = vor.u32 1.1754944e-38, %v1494_v7 }
 0x345   :  { %3056 = vrcp.f32 %v3896_v47  ;;  %v1700_v40 = vmul.f32 %v3766_v36, %v1538_v9  ;;  %v1369_v26 = vor.u32 1.1754944e-38, %v1368_v49  ;;  %vm1367_vm7 = vcmp.eq.f32.partialorder %v1366_v15, 8.507059e+37 }
 0x346   :  { %3058 = vrcp.f32 %v3913_v6  ;;  %v1576_v25 = vand.u32 2147483647, %v3906_v46  ;;  %v4024_v12 = vor.u32 1.1754944e-38, %v1578_v13  ;;  %v1491_v4 = vsel %vm4019_vm8, %v3939_v39, %v1487_v62 }
 0x347   :  { %2777 = vmatmul.msk.f32.gmra.mxu2 %vm446_vm0, %v1700_v40  ;;  %v1508_v49 = vand.u32 2147483648, %v3913_v6  ;;  %vm1502_vm8 = vweird.f32 %v3913_v6 }
 0x348   :  { %vm4075_vm15 = vcmp.eq.f32.partialorder %v1576_v25, 8.507059e+37 }
 0x349   :  { %v3053_v32 = vpop.eup %3052 }
 0x34a   :  { %v3970_v38 = vpop.eup %3054  ;;  %v1358_v0 = vmul.f32 %v3053_v32, %v3944_v10  ;;  %v3973_v59 = vpop.xlane.xlu2 %1181  ;;  %vm1363_vm1 = vweird.f32 %v3053_v32 }
 0x34b   :  { %v3980_v42 = vpop.xlane.xlu1 %1169  ;;  %v3982_v48 = vpop.xlane.xlu0 %1166  ;;  %v1568_v45 = vmul.f32 %v3970_v38, %v3906_v46  ;;  %vm1364_vm5 = vmor %vm1362_vm3, %vm1363_vm1  ;;  %vm1573_vm10 = vweird.f32 %v3970_v38 }
 0x34c   :  { %v1359_v36 = vsub.f32 1.0, %v1358_v0  ;;  %v3987_v1 = vpop.eup %3056  ;;  %3060 = vrcp.f32 %v3980_v42  ;;  %v1380_v15 = vand.u32 2147483647, %v3982_v48  ;;  %v1382_v62 = vand.u32 2147483648, %v3982_v48  ;;  %vm4098_vm4 = vmor %vm1572_vm9, %vm1573_vm10 }
 0x34d   :  { %3062 = vrcp.f32 %v3982_v48  ;;  %v1582_v44 = vmul.f32 %v3987_v1, %v3896_v47  ;;  %v1569_v63 = vsub.f32 1.0, %v1568_v45  ;;  %v4006_v27 = vpop.eup %3058  ;;  %v4051_v45 = vsel %vm4008_vm6, %v1495_v30, %v1491_v4 }
 0x34e   :  { %v1360_v56 = vmul.f32 %v3053_v32, %v1359_v36  ;;  %3064 = vrcp.f32 %v3973_v59  ;;  %v4040_v36 = vor.u32 1.1754944e-38, %v1592_v24  ;;  %v1498_v39 = vmul.f32 %v4006_v27, %v3913_v6 }
 0x34f   :  { %3066 = vrcp.f32 %v3930_v5  ;;  %v1583_v52 = vsub.f32 1.0, %v1582_v44  ;;  %v1570_v58 = vmul.f32 %v3970_v38, %v1569_v63  ;;  %v1506_v44 = vand.u32 2147483647, %v3913_v6 }
 0x350   :  { %v1361_v31 = vadd.f32 %v3053_v32, %v1360_v56  ;;  %v1499_v55 = vsub.f32 1.0, %v1498_v39  ;;  %vm1390_vm12 = vweird.f32 %v3980_v42  ;;  %vm1376_vm13 = vweird.f32 %v3982_v48 }
 0x351   :  { %v1584_v7 = vmul.f32 %v3987_v1, %v1583_v52  ;;  %vm4071_vm14 = vcmp.eq.f32.partialorder %v1380_v15, 8.507059e+37  ;;  %vm1587_vm3 = vweird.f32 %v3987_v1 }
 0x352   :  { %v4013_v51 = vpop.xlane.xlu2 %1205  ;;  %v1365_v23 = vsel %vm1364_vm5, %v3053_v32, %v1361_v31  ;;  %v4015_v10 = vpop.eup %3060  ;;  %v4061_v31 = vadd.f32 %v3970_v38, %v1570_v58  ;;  %vm1586_vm5 = vweird.f32 %v3896_v47 }
 0x353   :  { %v1370_v21 = vsel %vm1367_vm7, %v1369_v26, %v1365_v23  ;;  %v3063_v9 = vpop.eup %3062  ;;  %v1386_v40 = vmul.f32 %v4015_v10, %v3980_v42  ;;  %v4031_v37 = vpop.xlane.xlu1 %1178  ;;  %vm1391_vm2 = vweird.f32 %v4015_v10 }
 0x354   :  { %v1688_v54 = vmul.f32 %v3778_v29, %v1370_v21  ;;  %v4034_v32 = vpop.eup %3064  ;;  %v1372_v0 = vmul.f32 %v3063_v9, %v3982_v48  ;;  %3068 = vrcp.f32 %v4031_v37  ;;  %vm1377_vm11 = vweird.f32 %v3063_v9  ;;  %v4083_v48 = vpop.xlane.xlu0 %1214  ;;  %vm4115_vm7 = vmor %vm1390_vm12, %vm1391_vm2 }
 0x355   :  { %v1387_v29 = vsub.f32 1.0, %v1386_v40  ;;  %v4047_v3 = vpop.eup %3066  ;;  %v1442_v13 = vmul.f32 %v4034_v32, %v3973_v59  ;;  %3070 = vrcp.f32 %v3961_v35  ;;  %vm1378_vm1 = vmor %vm1376_vm13, %vm1377_vm11  ;;  %vm1432_vm9 = vweird.f32 %v4031_v37 }
 0x356   :  { %2765 = vmatmul.msk.f32.gmra.mxu0 %vm446_vm0, %v1688_v54  ;;  %v1373_v56 = vsub.f32 1.0, %v1372_v0  ;;  %v4066_v24 = vmul.f32 %v4047_v3, %v3930_v5  ;;  %v1383_v54 = vor.u32 1.1754944e-38, %v1382_v62  ;;  %v1394_v62 = vand.u32 2147483647, %v3980_v42 }
 0x357   :  { %v1388_v63 = vmul.f32 %v4015_v10, %v1387_v29  ;;  %v1443_v40 = vsub.f32 1.0, %v1442_v13  ;;  %vm1447_vm13 = vweird.f32 %v4034_v32 }
 0x358   :  { %v1374_v26 = vmul.f32 %v3063_v9, %v1373_v56  ;;  %v1396_v56 = vand.u32 2147483648, %v3980_v42  ;;  %v4130_v42 = vadd.f32 %v3987_v1, %v1584_v7  ;;  %vm1395_vm12 = vcmp.eq.f32.partialorder %v1394_v62, 8.507059e+37 }
 0x359   :  { %v1389_v25 = vadd.f32 %v4015_v10, %v1388_v63  ;;  %v1436_v63 = vand.u32 2147483647, %v4031_v37  ;;  %v1450_v62 = vand.u32 2147483647, %v3973_v59 }
 0x35a   :  { %v2878_v23 = vpop.permute.xlu2 %2877  ;;  %v3069_v18 = vpop.eup %3068  ;;  %v1375_v30 = vadd.f32 %v3063_v9, %v1374_v26  ;;  %v1438_v26 = vand.u32 2147483648, %v4031_v37 }
 0x35b   :  { %v2879_v4 = vunpack.i.l.bf16 %v2878_v23  ;;  %v1428_v58 = vmul.f32 %v3069_v18, %v4031_v37  ;;  %v4080_v0 = vpop.xlane.xlu1 %1202  ;;  %v2880_v29 = vunpack.i.h.bf16 %v2878_v23  ;;  %v4106_v23 = vpop.eup %3070  ;;  %vm1433_vm6 = vweird.f32 %v3069_v18 }
 0x35c   :  { %v1379_v39 = vsel %vm1378_vm1, %v3063_v9, %v1375_v30  ;;  %3072 = vrcp.f32 %v4080_v0  ;;  %v1444_v30 = vmul.f32 %v4034_v32, %v1443_v40  ;;  %v1393_v40 = vsel %vm4115_vm7, %v4015_v10, %v1389_v25  ;;  %vm1434_vm10 = vmor %vm1432_vm9, %vm1433_vm6 }
 0x35d   :  { %2079 = vmatpush.msrb.mxu0 %v2879_v4  ;;  %v1384_v15 = vsel %vm4071_vm14, %v1383_v54, %v1379_v39  ;;  %v1429_v13 = vsub.f32 1.0, %v1428_v58  ;;  %3074 = vrcp.f32 %v4013_v51  ;;  %v1500_v4 = vmul.f32 %v4006_v27, %v1499_v55  ;;  %vm4193_vm6 = vmor %vm1586_vm5, %vm1587_vm3 }
 0x35e   :  { %2772 = vmatmul.msk.f32.vlgmr.msra.gmra.mxu0 %vm446_vm0, %v3976_v22  ;;  %v1689_v22 = vmul.f32 %v3806_v11, %v1384_v15  ;;  %3076 = vrcp.f32 %v4083_v48  ;;  %v1575_v11 = vsel %vm4098_vm4, %v3970_v38, %v4061_v31  ;;  %v1625_v54 = vsub.f32 1.0, %v4066_v24 }
 0x35f   :  { %2080 = vmatpush.msrb.mxu0 %v2880_v29  ;;  %v1430_v46 = vmul.f32 %v3069_v18, %v1429_v13  ;;  %v1397_v58 = vor.u32 1.1754944e-38, %v1396_v56  ;;  %vm1437_vm11 = vcmp.eq.f32.partialorder %v1436_v63, 8.507059e+37  ;;  %v1439_v31 = vor.u32 1.1754944e-38, %v1438_v26 }
 0x360   :  { %2766 = vmatmul.msk.f32.vlgmr.msra.gmra.mxu1 %vm446_vm0, %v1689_v22  ;;  %v1445_v29 = vadd.f32 %v4034_v32, %v1444_v30  ;;  %v1580_v37 = vsel %vm4075_vm15, %v4024_v12, %v1575_v11  ;;  %v1452_v25 = vand.u32 2147483648, %v3973_v59  ;;  %vm1503_vm14 = vweird.f32 %v4006_v27 }
 0x361   :  { %v1431_v39 = vadd.f32 %v3069_v18, %v1430_v46  ;;  %v1398_v7 = vsel %vm1395_vm12, %v1397_v58, %v1393_v40  ;;  %vm1446_vm1 = vweird.f32 %v3973_v59  ;;  %vm4156_vm15 = vcmp.eq.f32.partialorder %v1590_v16, 8.507059e+37  ;;  %vm4202_vm9 = vmor %vm1502_vm8, %vm1503_vm14 }
 0x362   :  { %v4134_v38 = vpop.eup %3072  ;;  %v1626_v52 = vmul.f32 %v4047_v3, %v1625_v54  ;;  %v1638_v9 = vmul.f32 %v4106_v23, %v3961_v35  ;;  %v1690_v26 = vmul.f32 %v3799_v61, %v1398_v7  ;;  %vm4166_vm2 = vmor %vm1446_vm1, %vm1447_vm13  ;;  %v1501_v59 = vadd.f32 %v4006_v27, %v1500_v4 }
 0x363   :  { %v1435_v55 = vsel %vm1434_vm10, %v3069_v18, %v1431_v39  ;;  %v1540_v10 = vmul.f32 %v4134_v38, %v4080_v0  ;;  %v4140_v24 = vpop.eup %3074  ;;  %v1449_v61 = vsel %vm4166_vm2, %v4034_v32, %v1445_v29  ;;  %v1509_v30 = vor.u32 1.1754944e-38, %v1508_v49 }
 0x364   :  { %v1440_v56 = vsel %vm1437_vm11, %v1439_v31, %v1435_v55  ;;  %v4147_v15 = vpop.eup %3076  ;;  %v1453_v46 = vor.u32 1.1754944e-38, %v1452_v25  ;;  %vm4185_vm4 = vcmp.eq.f32.partialorder %v1506_v44, 8.507059e+37  ;;  %vm1451_vm7 = vcmp.eq.f32.partialorder %v1450_v62, 8.507059e+37 }
 0x365   :  { %v1541_v18 = vsub.f32 1.0, %v1540_v10  ;;  %v1693_v13 = vmul.f32 %v3815_v28, %v1440_v56  ;;  %v1596_v21 = vmul.f32 %v4147_v15, %v4083_v48  ;;  %v1703_v4 = vmul.f32 %v3732_v41, %v1580_v37 }
 0x366   :  { %2773 = vmatmul.msk.f32.gmra.mxu0 %vm446_vm0, %v3985_v34  ;;  %v2873_v63 = vpop.permute.xlu0 %2872  ;;  %v1554_v34 = vmul.f32 %v4140_v24, %v4013_v51  ;;  %v1589_v47 = vsel %vm4193_vm6, %v3987_v1, %v4130_v42  ;;  %v1627_v40 = vadd.f32 %v4047_v3, %v1626_v52  ;;  %vm1629_vm3 = vweird.f32 %v4047_v3 }
 0x367   :  { %v1542_v16 = vmul.f32 %v4134_v38, %v1541_v18  ;;  %v2874_v22 = vunpack.i.l.bf16 %v2873_v63  ;;  %2770 = vmatmul.msk.f32.vlgmr.msra.gmra.mxu3 %vm446_vm0, %v1693_v13  ;;  %v2875_v49 = vunpack.i.h.bf16 %v2873_v63  ;;  %v1454_v54 = vsel %vm1451_vm7, %v1453_v46, %v1449_v61 }
 0x368   :  { %2767 = vmatmul.msk.f32.gmra.mxu1 %vm446_vm0, %v1690_v26  ;;  %v1505_v41 = vsel %vm4202_vm9, %v4006_v27, %v1501_v59  ;;  %v1639_v58 = vsub.f32 1.0, %v1638_v9  ;;  %v1555_v6 = vsub.f32 1.0, %v1554_v34  ;;  %vm1545_vm5 = vweird.f32 %v4134_v38 }
 0x369   :  { %1992 = vmatpush.msrb.mxu1 %v2874_v22  ;;  %v1543_v39 = vadd.f32 %v4134_v38, %v1542_v16  ;;  %vm1628_vm8 = vweird.f32 %v3930_v5  ;;  %v1634_v1 = vand.u32 2147483648, %v3930_v5  ;;  %v1597_v42 = vsub.f32 1.0, %v1596_v21 }
 0x36a   :  { %v1550_v31 = vand.u32 2147483648, %v4080_v0  ;;  %vm4220_vm10 = vmor %vm1628_vm8, %vm1629_vm3  ;;  %v1632_v27 = vand.u32 2147483647, %v3930_v5  ;;  %vm1544_vm11 = vweird.f32 %v4080_v0  ;;  %v1548_v10 = vand.u32 2147483647, %v4080_v0 }
 0x36b   :  { %1993 = vmatpush.msrb.mxu1 %v2875_v49  ;;  %v1694_v7 = vmul.f32 %v3793_v60, %v1454_v54  ;;  %v1631_v29 = vsel %vm4220_vm10, %v4047_v3, %v1627_v40  ;;  %vm4232_vm12 = vmor %vm1544_vm11, %vm1545_vm5  ;;  %v1697_v5 = vmul.f32 %v3726_v43, %v4051_v45  ;;  %v1510_v56 = vsel %vm4185_vm4, %v1509_v30, %v1505_v41 }
 0x36c   :  { %v1594_v60 = vsel %vm4156_vm15, %v4040_v36, %v1589_v47  ;;  %v1640_v0 = vmul.f32 %v4106_v23, %v1639_v58  ;;  %v1556_v18 = vmul.f32 %v4140_v24, %v1555_v6  ;;  %v1547_v3 = vsel %vm4232_vm12, %v4134_v38, %v1543_v39 }
 0x36d   :  { %v1635_v62 = vor.u32 1.1754944e-38, %v1634_v1  ;;  %v1598_v43 = vmul.f32 %v4147_v15, %v1597_v42  ;;  %v1551_v45 = vor.u32 1.1754944e-38, %v1550_v31  ;;  %vm1633_vm13 = vcmp.eq.f32.partialorder %v1632_v27, 8.507059e+37 }
 0x36e   :  { %2780 = vmatmul.msk.f32.vlgmr.msrb.gmra.mxu0 %vm446_vm0, %v1703_v4  ;;  %v2883_v25 = vpop.permute.xlu0 %2882  ;;  %vm1549_vm14 = vcmp.eq.f32.partialorder %v1548_v10, 8.507059e+37  ;;  %v1704_v12 = vmul.f32 %v3735_v53, %v1594_v60  ;;  %vm1642_vm1 = vweird.f32 %v3961_v35  ;;  %v1698_v38 = vmul.f32 %v3746_v19, %v1510_v56 }
 0x36f   :  { %v2884_v13 = vunpack.i.l.bf16 %v2883_v25  ;;  %2771 = vmatmul.msk.f32.gmra.mxu3 %vm446_vm0, %v1694_v7  ;;  %v2885_v36 = vunpack.i.h.bf16 %v2883_v25  ;;  %v1636_v52 = vsel %vm1633_vm13, %v1635_v62, %v1631_v29  ;;  %v1552_v9 = vsel %vm1549_vm14, %v1551_v45, %v1547_v3 }
 0x370   :  { %2774 = vmatmul.msk.f32.vlgmr.msrb.gmra.mxu1 %vm446_vm0, %v1697_v5  ;;  %v1557_v26 = vadd.f32 %v4140_v24, %v1556_v18  ;;  %vm1559_vm15 = vweird.f32 %v4140_v24  ;;  %v1641_v28 = vadd.f32 %v4106_v23, %v1640_v0  ;;  %vm1643_vm2 = vweird.f32 %v4106_v23 }
 0x371   :  { %2166 = vmatpush.msra.mxu3 %v2884_v13  ;;  %v1564_v59 = vand.u32 2147483648, %v4013_v51  ;;  %v1599_v53 = vadd.f32 %v4147_v15, %v1598_v43  ;;  %vm1601_vm4 = vweird.f32 %v4147_v15  ;;  %vm1558_vm6 = vweird.f32 %v4013_v51  ;;  %vm1644_vm5 = vmor %vm1642_vm1, %vm1643_vm2 }
 0x372   :  { %v1606_v19 = vand.u32 2147483648, %v4083_v48  ;;  %v1701_v16 = vmul.f32 %v3827_v20, %v1552_v9  ;;  %v1562_v22 = vand.u32 2147483647, %v4013_v51  ;;  %v1648_v61 = vand.u32 2147483648, %v3961_v35  ;;  %vm4271_vm9 = vmor %vm1558_vm6, %vm1559_vm15  ;;  %v1792_v39 = vpop.f32.mrf.mxu2 }
 0x373   :  { %v2868_v63 = vpop.permute.xlu1 %2867  ;;  %2167 = vmatpush.msra.mxu3 %v2885_v36  ;;  %vm1600_vm7 = vweird.f32 %v4083_v48  ;;  %v1604_v30 = vand.u32 2147483647, %v4083_v48  ;;  %v1707_v32 = vmul.f32 %v3773_v2, %v1636_v52  ;;  %v1561_v48 = vsel %vm4271_vm9, %v4140_v24, %v1557_v26 }
 0x374   :  { %v2869_v34 = vunpack.i.l.bf16 %v2868_v63  ;;  %v2870_v46 = vunpack.i.h.bf16 %v2868_v63  ;;  %vm4275_vm3 = vmor %vm1600_vm7, %vm1601_vm4  ;;  %v1646_v49 = vand.u32 2147483647, %v3961_v35  ;;  %v1565_v4 = vor.u32 1.1754944e-38, %v1564_v59 }
 0x375   :  { %v1603_v44 = vsel %vm4275_vm3, %v4147_v15, %v1599_v53  ;;  %v1607_v2 = vor.u32 1.1754944e-38, %v1606_v19  ;;  %vm1563_vm8 = vcmp.eq.f32.partialorder %v1562_v22, 8.507059e+37  ;;  %v1645_v24 = vsel %vm1644_vm5, %v4106_v23, %v1641_v28 }
 0x376   :  { %2781 = vmatmul.msk.f32.gmra.mxu0 %vm446_vm0, %v1704_v12  ;;  %v2888_v21 = vpop.permute.xlu0 %2887  ;;  %2137 = vmatpush.msrb.mxu2 %v2869_v34  ;;  %v1649_v40 = vor.u32 1.1754944e-38, %v1648_v61  ;;  %vm1605_vm10 = vcmp.eq.f32.partialorder %v1604_v30, 8.507059e+37  ;;  %v1566_v54 = vsel %vm1563_vm8, %v1565_v4, %v1561_v48  ;;  %vm1647_vm11 = vcmp.eq.f32.partialorder %v1646_v49, 8.507059e+37 }
 0x377   :  { %v2889_v51 = vunpack.i.l.bf16 %v2888_v21  ;;  %2778 = vmatmul.msk.f32.vlgmr.msrb.gmra.mxu3 %vm446_vm0, %v1701_v16  ;;  %v2890_v47 = vunpack.i.h.bf16 %v2888_v21  ;;  %v1608_v15 = vsel %vm1605_vm10, %v1607_v2, %v1603_v44  ;;  %v1702_v58 = vmul.f32 %v3811_v50, %v1566_v54 }
 0x378   :  { %2775 = vmatmul.msk.f32.gmra.mxu1 %vm446_vm0, %v1698_v38  ;;  %2138 = vmatpush.msrb.mxu2 %v2870_v46  ;;  %v1650_v41 = vsel %vm1647_vm11, %v1649_v40, %v1645_v24  ;;  %v1705_v35 = vmul.f32 %v3813_v57, %v1608_v15  ;;  %v4308_v46 = vpop.f32.mrf.mxu0  ;;  %vm2291_vm8 = vcmask 261120   ;;  %vm2296_vm10 = vcmask 392192  }
 0x379   :  { %2108 = vmatpush.msra.mxu1 %v2889_v51  ;;  %2784 = vmatmul.msk.f32.vlgmr.msrb.gmra.mxu2 %vm446_vm0, %v1707_v32  ;;  %v1708_v6 = vmul.f32 %v3789_v17, %v1650_v41  ;;  %v4313_v32 = vpop.f32.mrf.mxu1  ;;  %vm2301_vm11 = vcmask 523264  }
 0x37b   :  { %2109 = vmatpush.msra.mxu1 %v2890_v47 }
 0x37f   :  { %2779 = vmatmul.msk.f32.gmra.mxu3 %vm446_vm0, %v1702_v58 }
 0x380   :  { %2782 = vmatmul.msk.f32.vlgmr.msra.gmra.mxu1 %vm446_vm0, %v1705_v35 }
 0x381   :  { %2785 = vmatmul.msk.f32.gmra.mxu2 %vm446_vm0, %v1708_v6  ;;  %v4316_v4 = vpop.f32.mrf.mxu1 }
 0x38a   :  { %v1795_v23 = vpop.f32.mrf.mxu2 }
 0x38b   :  { %v2891_v1 = vpack.i.bf16 %v1795_v23, %v1792_v39 }
 0x38d   :  { %2892 = vrot.lane.b32.xlu0 %v2891_v1, %s3247_s14 }
 0x392   :  { %v1908_v42 = vpop.f32.mrf.mxu2 }
 0x393   :  { %v1218_v31 = vpop.xlane.xlu2 %1217 }
 0x394   :  { %3078 = vrcp.f32 %v1218_v31  ;;  %v1620_v17 = vand.u32 2147483648, %v1218_v31  ;;  %v1618_v37 = vand.u32 2147483647, %v1218_v31  ;;  %vm1614_vm13 = vweird.f32 %v1218_v31 }
 0x396   :  { %v1621_v5 = vor.u32 1.1754944e-38, %v1620_v17  ;;  %vm1619_vm1 = vcmp.eq.f32.partialorder %v1618_v37, 8.507059e+37 }
 0x39a   :  { %v3079_v55 = vpop.eup %3078  ;;  %v1911_v50 = vpop.f32.mrf.mxu2 }
 0x39b   :  { %v1610_v27 = vmul.f32 %v3079_v55, %v1218_v31  ;;  %v2896_v57 = vpack.i.bf16 %v1911_v50, %v1908_v42  ;;  %vm1615_vm12 = vweird.f32 %v3079_v55 }
 0x39c   :  { %vm1616_vm14 = vmor %vm1614_vm13, %vm1615_vm12  ;;  %vm2306_vm12 = vcmask 654336   ;;  %vm2311_vm13 = vcmask 785408  }
 0x39d   :  { %v1611_v10 = vsub.f32 1.0, %v1610_v27  ;;  %2897 = vrot.lane.b32.xlu0 %v2896_v57, %s3245_s12 }
 0x39e   :  { %v1227_v29 = vpop.xlane.xlu1 %1226 }
 0x39f   :  { %v1612_v7 = vmul.f32 %v3079_v55, %v1611_v10  ;;  %3080 = vrcp.f32 %v1227_v29  ;;  %v1662_v43 = vand.u32 2147483648, %v1227_v29  ;;  %v1660_v36 = vand.u32 2147483647, %v1227_v29 }
 0x3a0   :  { %vm1656_vm2 = vweird.f32 %v1227_v29 }
 0x3a1   :  { %v1613_v25 = vadd.f32 %v3079_v55, %v1612_v7  ;;  %v1663_v9 = vor.u32 1.1754944e-38, %v1662_v43  ;;  %vm1661_vm6 = vcmp.eq.f32.partialorder %v1660_v36, 8.507059e+37  ;;  %v2328_v43 = vld [vmem:[#allocation7 + $0x38] sm:$0xff]  ;;  %v2326_v36 = vld [vmem:[#allocation7 + $0x28] sm:$0xff] }
 0x3a2   :  { %v2024_v21 = vpop.f32.mrf.mxu2 }
 0x3a3   :  { %v1617_v56 = vsel %vm1616_vm14, %v3079_v55, %v1613_v25  ;;  %vm2316_vm14 = vcmask 916480  }
 0x3a4   :  { %v1622_v60 = vsel %vm1619_vm1, %v1621_v5, %v1617_v56  ;;  %v2336_v5 = vld [vmem:[#allocation7 + $0x78] sm:$0xff]  ;;  %v2335_v56 = vld [vmem:[#allocation7 + $0x70] sm:$0xff] }
 0x3a5   :  { %v1706_v0 = vmul.f32 %v3898_v8, %v1622_v60  ;;  %v3081_v18 = vpop.eup %3080  ;;  %2339 = vmatpush.msra.mxu0 %v2336_v5  ;;  %v2334_v60 = vld [vmem:[#allocation7 + $0x68] sm:$0xff] }
 0x3a6   :  { %v1652_v3 = vmul.f32 %v3081_v18, %v1227_v29  ;;  %v1230_v13 = vpop.xlane.xlu1 %1229  ;;  %vm1657_vm15 = vweird.f32 %v3081_v18 }
 0x3a7   :  { %2783 = vmatmul.msk.f32.gmra.mxu1 %vm446_vm0, %v1706_v0  ;;  %3082 = vrcp.f32 %v1230_v13  ;;  %vm1658_vm4 = vmor %vm1656_vm2, %vm1657_vm15  ;;  %v1676_v59 = vand.u32 2147483648, %v1230_v13  ;;  %v1674_v34 = vand.u32 2147483647, %v1230_v13  ;;  %vm1670_vm9 = vweird.f32 %v1230_v13  ;;  %2340 = vmatpush.msra.mxu0 %v2335_v56  ;;  %v2333_v0 = vld [vmem:[#allocation7 + $0x60] sm:$0xff] }
 0x3a8   :  { %v1653_v62 = vsub.f32 1.0, %v1652_v3  ;;  %v2331_v3 = vld [vmem:[#allocation7 + $0x50] sm:$0xff] }
 0x3a9   :  { %v1677_v16 = vor.u32 1.1754944e-38, %v1676_v59  ;;  %vm1675_vm5 = vcmp.eq.f32.partialorder %v1674_v34, 8.507059e+37  ;;  %2341 = vmatpush.msra.mxu0 %v2334_v60 }
 0x3aa   :  { %v1654_v45 = vmul.f32 %v3081_v18, %v1653_v62  ;;  %v2329_v62 = vld [vmem:[#allocation7 + $0x40] sm:$0xff] }
 0x3ab   :  { %2342 = vmatpush.msra.mxu0 %v2333_v0 }
 0x3ac   :  { %v1655_v12 = vadd.f32 %v3081_v18, %v1654_v45  ;;  %v2327_v45 = vld [vmem:[#allocation7 + $0x30] sm:$0xff] }
 0x3ad   :  { %v3083_v52 = vpop.eup %3082 }
 0x3ae   :  { %v1659_v38 = vsel %vm1658_vm4, %v3081_v18, %v1655_v12  ;;  %v1666_v63 = vmul.f32 %v3083_v52, %v1230_v13  ;;  %vm1671_vm7 = vweird.f32 %v3083_v52  ;;  %v2332_v18 = vld [vmem:[#allocation7 + $0x58] sm:$0xff]  ;;  %v2330_v13 = vld [vmem:[#allocation7 + $0x48] sm:$0xff]  ;;  %v2325_v12 = vld [vmem:[#allocation7 + $0x20] sm:$0xff] }
 0x3af   :  { %v1664_v8 = vsel %vm1661_vm6, %v1663_v9, %v1659_v38  ;;  %vm1672_vm3 = vmor %vm1670_vm9, %vm1671_vm7  ;;  %2343 = vmatpush.msra.mxu0 %v2332_v18  ;;  %v2323_v9 = vld [vmem:[#allocation7 + $0x10] sm:$0xff] }
 0x3b0   :  { %v1709_v26 = vmul.f32 %v3908_v33, %v1664_v8  ;;  %v1667_v28 = vsub.f32 1.0, %v1666_v63  ;;  %v4311_v33 = vpop.f32.mrf.mxu0  ;;  %v2322_v63 = vld [vmem:[#allocation7 + $0x8] sm:$0xff]  ;;  %v2321_v8 = vld [vmem:[#allocation7] sm:$0xff] }
 0x3b1   :  { %2344 = vmatpush.msra.mxu0 %v2331_v3 }
 0x3b2   :  { %v1668_v53 = vmul.f32 %v3083_v52, %v1667_v28  ;;  %2786 = vmatmul.msk.f32.vlgmr.msra.gmra.mxu3 %vm446_vm0, %v1709_v26 }
 0x3b3   :  { %2345 = vmatpush.msra.mxu0 %v2330_v13 }
 0x3b4   :  { %v1669_v19 = vadd.f32 %v3083_v52, %v1668_v53 }
 0x3b5   :  { %2346 = vmatpush.msra.mxu0 %v2329_v62 }
 0x3b6   :  { %v1673_v22 = vsel %vm1672_vm3, %v3083_v52, %v1669_v19  ;;  %v2324_v52 = vld [vmem:[#allocation7 + $0x18] sm:$0xff] }
 0x3b7   :  { %v1678_v61 = vsel %vm1675_vm5, %v1677_v16, %v1673_v22  ;;  %2347 = vmatpush.msra.mxu0 %v2328_v43 }
 0x3b8   :  { %v1710_v30 = vmul.f32 %v3916_v14, %v1678_v61  ;;  %v1850_v11 = vpop.f32.mrf.mxu0  ;;  %v1821_v14 = vpop.f32.mrf.mxu3 }
 0x3b9   :  { %2348 = vmatpush.msra.mxu0 %v2327_v45 }
 0x3ba   :  { %2787 = vmatmul.msk.f32.gmra.mxu3 %vm446_vm0, %v1710_v30 }
 0x3bb   :  { %2349 = vmatpush.msra.mxu0 %v2326_v36 }
 0x3bd   :  { %2350 = vmatpush.msra.mxu0 %v2325_v12 }
 0x3bf   :  { %2351 = vmatpush.msra.mxu0 %v2324_v52 }
 0x3c1   :  { %2352 = vmatpush.msra.mxu0 %v2323_v9 }
 0x3c2   :  { %v1824_v47 = vpop.f32.mrf.mxu3 }
 0x3c3   :  { %v2926_v17 = vpack.i.bf16 %v1824_v47, %v1821_v14  ;;  %2353 = vmatpush.msra.mxu0 %v2322_v63 }
 0x3c5   :  { %2354 = vmatpush.msra.mxu0 %v2321_v8 }
 0x3ca   :  { %v2027_v20 = vpop.f32.mrf.mxu2 }
 0x3cb   :  { %v2911_v51 = vpack.i.bf16 %v2027_v20, %v2024_v21 }
 0x3cd   :  { %2912 = vrot.lane.b32.xlu2 %v2911_v51, %s3243_s3 }
 0x3d3   :  { %v1853_v48 = vpop.f32.mrf.mxu0 }
 0x3d4   :  { %v2901_v49 = vpack.i.bf16 %v1853_v48, %v1850_v11 }
 0x3d6   :  { %2902 = vrot.lane.b32.xlu0 %v2901_v49, %s3248_s15 }
 0x3db   :  { %v1966_v44 = vpop.f32.mrf.mxu0 }
 0x3dd   :  { %v1879_v2 = vpop.f32.mrf.mxu1 }
 0x3e3   :  { %v1969_v24 = vpop.f32.mrf.mxu0 }
 0x3e4   :  { %v2906_v40 = vpack.i.bf16 %v1969_v24, %v1966_v44 }
 0x3e5   :  { %v1882_v54 = vpop.f32.mrf.mxu1 }
 0x3e6   :  { %2907 = vrot.lane.b32.xlu1 %v2906_v40, %s3246_s13  ;;  %v2931_v41 = vpack.i.bf16 %v1882_v54, %v1879_v2 }
 0x3ea   :  { %v1937_v15 = vpop.f32.mrf.mxu3 }
 0x3eb   :  { %v2082_v31 = vpop.f32.mrf.mxu0 }
 0x3ed   :  { %v1995_v58 = vpop.f32.mrf.mxu1 }
 0x3ee   :  { %2932 = vrot.lane.b32.xlu1 %v2931_v41, %s3248_s15 }
 0x3f2   :  { %v1940_v35 = vpop.f32.mrf.mxu3 }
 0x3f3   :  { %v2941_v6 = vpack.i.bf16 %v1940_v35, %v1937_v15  ;;  %v2085_v57 = vpop.f32.mrf.mxu0 }
 0x3f4   :  { %v2921_v10 = vpack.i.bf16 %v2085_v57, %v2082_v31 }
 0x3f5   :  { %v1998_v39 = vpop.f32.mrf.mxu1  ;;  %2942 = vrot.lane.b32.xlu2 %v2941_v6, %s3245_s12 }
 0x3f6   :  { %v2936_v7 = vpack.i.bf16 %v1998_v39, %v1995_v58 }
 0x3fa   :  { %v2053_v23 = vpop.f32.mrf.mxu3 }
 0x3fb   :  { %2247 = vrot.lane.b32.xlu1 %v2053_v23, %s3243_s3 }
 0x3fc   :  { %v2140_v1 = vpop.f32.mrf.mxu2 }
 0x3fd   :  { %v2111_v42 = vpop.f32.mrf.mxu1 }
 0x3fe   :  { %2263 = vrot.lane.b32.xlu2 %v2111_v42, %s3244_s11 }
 0x3ff   :  { %v2893_v38 = vpop.permute.xlu0 %2892 }
 0x400   :  { %v2894_v59 = vunpack.i.l.bf16 %v2893_v38  ;;  %v2895_v30 = vunpack.i.h.bf16 %v2893_v38 }
 0x402   :  { %v2056_v55 = vpop.f32.mrf.mxu3  ;;  %v2287_v16 = vsel %vm446_vm0, %v4308_v46, %v2894_v59  ;;  %v2288_v49 = vsel %vm446_vm0, %v4311_v33, %v2895_v30  ;;  %v2949_v59 = vld [vmem:[#allocation8 + $0x3] ss:$0 sm:$0xff]  ;;  %v3103_v30 = vld [vmem:[#allocation2 + $0x8] sm:$0xff] }
 0x403   :  { %2249 = vrot.lane.b32.xlu1 %v2056_v55, %s3243_s3 }
 0x404   :  { %v2143_v50 = vpop.f32.mrf.mxu2 }
 0x405   :  { %v2916_v27 = vpack.i.bf16 %v2143_v50, %v2140_v1 }
 0x407   :  { %2917 = vrot.lane.b32.xlu0 %v2916_v27, %s3242_s2 }
 0x40f   :  { %2922 = vrot.lane.b32.xlu0 %v2921_v10, %s3244_s11  ;;  %v2898_v26 = vpop.permute.xlu0 %2897 }
 0x410   :  { %v2899_v21 = vunpack.i.l.bf16 %v2898_v26  ;;  %v2900_v24 = vunpack.i.h.bf16 %v2898_v26 }
 0x417   :  { %2927 = vrot.lane.b32.xlu0 %v2926_v17, %s3247_s14 }
 0x41f   :  { %2937 = vrot.lane.b32.xlu0 %v2936_v7, %s3246_s13 }
 0x424   :  { %v2114_v29 = vpop.f32.mrf.mxu1 }
 0x425   :  { %2265 = vrot.lane.b32.xlu2 %v2114_v29, %s3244_s11 }
 0x427   :  { %v2913_v11 = vpop.permute.xlu2 %2912 }
 0x428   :  { %v2914_v14 = vunpack.i.l.bf16 %v2913_v11  ;;  %v2915_v6 = vunpack.i.h.bf16 %v2913_v11 }
 0x435   :  { %v2169_v37 = vpop.f32.mrf.mxu3 }
 0x436   :  { %2279 = vrot.lane.b32.xlu0 %v2169_v37, %s3242_s2 }
 0x43d   :  { %v2172_v25 = vpop.f32.mrf.mxu3 }
 0x43e   :  { %2281 = vrot.lane.b32.xlu0 %v2172_v25, %s3242_s2 }
 0x448   :  { %v2903_v28 = vpop.permute.xlu0 %2902 }
 0x449   :  { %v2904_v53 = vunpack.i.l.bf16 %v2903_v28  ;;  %v2905_v20 = vunpack.i.h.bf16 %v2903_v28 }
 0x44b   :  { %v2292_v22 = vsel %vm2291_vm8, %v2287_v16, %v2904_v53  ;;  %v2293_v46 = vsel %vm2291_vm8, %v2288_v49, %v2905_v20 }
 0x44c   :  { %v2297_v51 = vsel %vm2296_vm10, %v2292_v22, %v2899_v21  ;;  %v2298_v41 = vsel %vm2296_vm10, %v2293_v46, %v2900_v24 }
 0x44f   :  { %v2943_v10 = vpop.permute.xlu2 %2942 }
 0x450   :  { %v2944_v37 = vunpack.i.l.bf16 %v2943_v10  ;;  %v2945_v62 = vunpack.i.h.bf16 %v2943_v10 }
 0x458   :  { %v2908_v34 = vpop.permute.xlu1 %2907  ;;  %v2264_v43 = vpop.permute.xlu2 %2263 }
 0x459   :  { %v2909_v61 = vunpack.i.l.bf16 %v2908_v34  ;;  %v2910_v2 = vunpack.i.h.bf16 %v2908_v34 }
 0x45b   :  { %v2302_v48 = vsel %vm2301_vm11, %v2297_v51, %v2909_v61  ;;  %v2303_v33 = vsel %vm2301_vm11, %v2298_v41, %v2910_v2  ;;  %v3104_v51 = vld [vmem:[#allocation2 + $0x10] sm:$0xff]  ;;  %v3249_v2 = vmov 128.0  }
 0x45c   :  { %v2307_v54 = vsel %vm2306_vm12, %v2302_v48, %v2914_v14  ;;  %v2308_v39 = vsel %vm2306_vm12, %v2303_v33, %v2915_v6  ;;  %3084 = vrcp.f32 %v3249_v2 }
 0x460   :  { %v2933_v50 = vpop.permute.xlu1 %2932 }
 0x461   :  { %v2934_v17 = vunpack.i.l.bf16 %v2933_v50  ;;  %v2935_v18 = vunpack.i.h.bf16 %v2933_v50 }
 0x46d   :  { %v2248_v56 = vpop.permute.xlu1 %2247 }
 0x475   :  { %v2250_v38 = vpop.permute.xlu1 %2249 }
 0x479   :  { %v2918_v19 = vpop.permute.xlu0 %2917 }
 0x47a   :  { %v2919_v40 = vunpack.i.l.bf16 %v2918_v19  ;;  %v2920_v1 = vunpack.i.h.bf16 %v2918_v19  ;;  %v3102_v19 = vld [vmem:[#allocation2] sm:$0xff] }
 0x47f   :  { %v2266_v63 = vpop.permute.xlu2 %2265 }
 0x481   :  { %v2923_v44 = vpop.permute.xlu0 %2922 }
 0x482   :  { %v2924_v47 = vunpack.i.l.bf16 %v2923_v44  ;;  %v2925_v35 = vunpack.i.h.bf16 %v2923_v44  ;;  %v3105_v44 = vld [vmem:[#allocation2 + $0x18] sm:$0xff] }
 0x484   :  { %v2312_v15 = vsel %vm2311_vm13, %v2307_v54, %v2924_v47  ;;  %v2313_v23 = vsel %vm2311_vm13, %v2308_v39, %v2925_v35  ;;  %v3085_v47 = vpop.eup %3084 }
 0x485   :  { %v2317_v58 = vsel %vm2316_vm14, %v2312_v15, %v2919_v40  ;;  %v2318_v42 = vsel %vm2316_vm14, %v2313_v23, %v2920_v1  ;;  %v2383_v24 = vmul.f32 128.0, %v3085_v47 }
 0x486   :  { %2355 = vmatmul.f32.vlgmr.msra.gmra.mxu0 %v2317_v58 }
 0x487   :  { %v2384_v40 = vsub.f32 1.0, %v2383_v24 }
 0x489   :  { %v2928_v31 = vpop.permute.xlu0 %2927  ;;  %v2385_v54 = vmul.f32 %v3085_v47, %v2384_v40 }
 0x48a   :  { %v2929_v55 = vunpack.i.l.bf16 %v2928_v31  ;;  %v2930_v25 = vunpack.i.h.bf16 %v2928_v31  ;;  %v2487_v31 = vld [vmem:[#allocation7 + $0xf8] sm:$0xff] }
 0x48b   :  { %v2386_v15 = vadd.f32 %v3085_v47, %v2385_v54  ;;  %2490 = vmatpush.msrb.mxu1 %v2487_v31  ;;  %v2535_v31 = vld [vmem:[#allocation7 + $0x158] sm:$0xff] }
 0x48c   :  { %v2289_v27 = vsel %vm446_vm0, %v4313_v32, %v2929_v55  ;;  %v2290_v0 = vsel %vm446_vm0, %v4316_v4, %v2930_v25  ;;  %vm2387_vm0 = vweird.f32 %v3085_v47  ;;  %v2486_v55 = vld [vmem:[#allocation7 + $0xf0] sm:$0xff]  ;;  %v2485_v25 = vld [vmem:[#allocation7 + $0xe8] sm:$0xff] }
 0x48d   :  { %v2294_v7 = vsel %vm2291_vm8, %v2289_v27, %v2934_v17  ;;  %v2295_v32 = vsel %vm2291_vm8, %v2290_v0, %v2935_v18  ;;  %v4364_v41 = vsel %vm2387_vm0, %v3085_v47, %v2386_v15  ;;  %2491 = vmatpush.msrb.mxu1 %v2486_v55  ;;  %v2481_v0 = vld [vmem:[#allocation7 + $0xc8] sm:$0xff]  ;;  %v2480_v18 = vld [vmem:[#allocation7 + $0xc0] sm:$0xff] }
 0x48e   :  { %2358 = vmatmul.f32.gmra.mxu0 %v2318_v42  ;;  %v2299_v5 = vsel %vm2296_vm10, %v2294_v7, %v2944_v37  ;;  %v2300_v12 = vsel %vm2296_vm10, %v2295_v32, %v2945_v62  ;;  %v2478_v32 = vld [vmem:[#allocation7 + $0xb0] sm:$0xff]  ;;  %v2477_v62 = vld [vmem:[#allocation7 + $0xa8] sm:$0xff] }
 0x48f   :  { %2492 = vmatpush.msrb.mxu1 %v2485_v25 }
 0x491   :  { %v2938_v57 = vpop.permute.xlu0 %2937 }
 0x492   :  { %v2939_v29 = vunpack.i.l.bf16 %v2938_v57  ;;  %v2940_v13 = vunpack.i.h.bf16 %v2938_v57 }
 0x494   :  { %v2304_v60 = vsel %vm2301_vm11, %v2299_v5, %v2939_v29  ;;  %v2305_v9 = vsel %vm2301_vm11, %v2300_v12, %v2940_v13  ;;  %v2484_v5 = vld [vmem:[#allocation7 + $0xe0] sm:$0xff]  ;;  %v2475_v12 = vld [vmem:[#allocation7 + $0x98] sm:$0xff] }
 0x495   :  { %v2309_v3 = vsel %vm2306_vm12, %v2304_v60, %v2248_v56  ;;  %v2310_v4 = vsel %vm2306_vm12, %v2305_v9, %v2250_v38  ;;  %2493 = vmatpush.msrb.mxu1 %v2484_v5  ;;  %v2483_v56 = vld [vmem:[#allocation7 + $0xd8] sm:$0xff]  ;;  %v2482_v60 = vld [vmem:[#allocation7 + $0xd0] sm:$0xff]  ;;  %v2473_v38 = vld [vmem:[#allocation7 + $0x88] sm:$0xff] }
 0x496   :  { %v2314_v36 = vsel %vm2311_vm13, %v2309_v3, %v2264_v43  ;;  %v2315_v26 = vsel %vm2311_vm13, %v2310_v4, %v2266_v63  ;;  %v2479_v3 = vld [vmem:[#allocation7 + $0xb8] sm:$0xff]  ;;  %v2472_v63 = vld [vmem:[#allocation7 + $0x80] sm:$0xff] }
 0x497   :  { %2494 = vmatpush.msrb.mxu1 %v2483_v56  ;;  %v2531_v5 = vld [vmem:[#allocation7 + $0x138] sm:$0xff] }
 0x499   :  { %2495 = vmatpush.msrb.mxu1 %v2482_v60 }
 0x49b   :  { %2496 = vmatpush.msrb.mxu1 %v2481_v0  ;;  %v2530_v0 = vld [vmem:[#allocation7 + $0x130] sm:$0xff] }
 0x49d   :  { %2497 = vmatpush.msrb.mxu1 %v2480_v18 }
 0x49f   :  { %2498 = vmatpush.msrb.mxu1 %v2479_v3 }
 0x4a1   :  { %2499 = vmatpush.msrb.mxu1 %v2478_v32 }
 0x4a3   :  { %2500 = vmatpush.msrb.mxu1 %v2477_v62 }
 0x4a8   :  { %v2280_v45 = vpop.permute.xlu0 %2279 }
 0x4a9   :  { %v2319_v52 = vsel %vm2316_vm14, %v2314_v36, %v2280_v45  ;;  %v2476_v45 = vld [vmem:[#allocation7 + $0xa0] sm:$0xff] }
 0x4aa   :  { %2361 = vmatmul.f32.gmra.mxu0 %v2319_v52  ;;  %2501 = vmatpush.msrb.mxu1 %v2476_v45  ;;  %v2474_v52 = vld [vmem:[#allocation7 + $0x90] sm:$0xff]  ;;  %v2528_v45 = vld [vmem:[#allocation7 + $0x120] sm:$0xff] }
 0x4ac   :  { %2502 = vmatpush.msrb.mxu1 %v2475_v12 }
 0x4ae   :  { %2503 = vmatpush.msrb.mxu1 %v2474_v52  ;;  %v2527_v52 = vld [vmem:[#allocation7 + $0x118] sm:$0xff] }
 0x4b0   :  { %v2282_v8 = vpop.permute.xlu0 %2281  ;;  %2504 = vmatpush.msrb.mxu1 %v2473_v38 }
 0x4b1   :  { %v2320_v28 = vsel %vm2316_vm14, %v2315_v26, %v2282_v8 }
 0x4b2   :  { %2364 = vmatmul.f32.gmra.mxu0 %v2320_v28  ;;  %2505 = vmatpush.msrb.mxu1 %v2472_v63 }
 0x503   :  { %v2356_v53 = vpop.f32.mrf.mxu0 }
 0x504   :  { %v2357_v34 = vadd.f32 %v2949_v59, %v2356_v53 }
 0x506   :  { %v2368_v16 = vadd.f32 %v3102_v19, %v2357_v34 }
 0x508   :  { %2374 = vadd.xlane.f32.xlu1 %v2368_v16 }
 0x50b   :  { %v2359_v22 = vpop.f32.mrf.mxu0 }
 0x50c   :  { %v2360_v61 = vadd.f32 %v2949_v59, %v2359_v22 }
 0x50e   :  { %v2369_v21 = vadd.f32 %v3103_v30, %v2360_v61  ;;  %v4388_v61 = vld [vmem:[#allocation8 + $0x6] ss:$0 sm:$0xff] }
 0x510   :  { %2376 = vadd.xlane.f32.xlu2 %v2369_v21 }
 0x527   :  { %v2362_v11 = vpop.f32.mrf.mxu0 }
 0x528   :  { %v2363_v20 = vadd.f32 %v2949_v59, %v2362_v11 }
 0x52a   :  { %v2370_v48 = vadd.f32 %v3104_v51, %v2363_v20  ;;  %v4391_v20 = vld [vmem:[#allocation8 + $0x7] ss:$0 sm:$0xff] }
 0x52c   :  { %2378 = vadd.xlane.f32.xlu0 %v2370_v48 }
 0x52f   :  { %v2365_v49 = vpop.f32.mrf.mxu0 }
 0x530   :  { %v2366_v14 = vadd.f32 %v2949_v59, %v2365_v49 }
 0x532   :  { %v2371_v46 = vadd.f32 %v3105_v44, %v2366_v14 }
 0x534   :  { %2380 = vadd.xlane.f32.xlu2 %v2371_v46 }
 0x57b   :  { %v2375_v58 = vpop.xlane.xlu1 %2374 }
 0x57c   :  { %v2389_v33 = vmul.f32 %v4364_v41, %v2375_v58  ;;  %v2539_v58 = vld [vmem:[#allocation7 + $0x178] sm:$0xff] }
 0x57d   :  { %2542 = vmatpush.msra.mxu2 %v2539_v58 }
 0x57e   :  { %v4367_v35 = vsub.f32 %v2368_v16, %v2389_v33  ;;  %v2538_v33 = vld [vmem:[#allocation7 + $0x170] sm:$0xff] }
 0x57f   :  { %2543 = vmatpush.msra.mxu2 %v2538_v33 }
 0x580   :  { %v2397_v6 = vmul.f32 %v4367_v35, %v4367_v35 }
 0x582   :  { %2401 = vadd.xlane.f32.xlu1 %v2397_v6 }
 0x583   :  { %v2377_v39 = vpop.xlane.xlu2 %2376 }
 0x584   :  { %v2390_v23 = vmul.f32 %v4364_v41, %v2377_v39 }
 0x586   :  { %v4372_v1 = vsub.f32 %v2369_v21, %v2390_v23  ;;  %v2536_v23 = vld [vmem:[#allocation7 + $0x160] sm:$0xff] }
 0x588   :  { %v2398_v42 = vmul.f32 %v4372_v1, %v4372_v1 }
 0x58a   :  { %2403 = vadd.xlane.f32.xlu0 %v2398_v42 }
 0x59f   :  { %v2379_v50 = vpop.xlane.xlu0 %2378 }
 0x5a0   :  { %v2391_v27 = vmul.f32 %v4364_v41, %v2379_v50  ;;  %v2534_v50 = vld [vmem:[#allocation7 + $0x150] sm:$0xff] }
 0x5a2   :  { %v4377_v57 = vsub.f32 %v2370_v48, %v2391_v27 }
 0x5a4   :  { %v2399_v10 = vmul.f32 %v4377_v57, %v4377_v57 }
 0x5a6   :  { %2405 = vadd.xlane.f32.xlu2 %v2399_v10  ;;  %v2533_v10 = vld [vmem:[#allocation7 + $0x148] sm:$0xff] }
 0x5a7   :  { %v2381_v17 = vpop.xlane.xlu2 %2380 }
 0x5a8   :  { %v2392_v7 = vmul.f32 %v4364_v41, %v2381_v17 }
 0x5aa   :  { %v4382_v29 = vsub.f32 %v2371_v46, %v2392_v7  ;;  %v2532_v7 = vld [vmem:[#allocation7 + $0x140] sm:$0xff] }
 0x5ac   :  { %v2400_v37 = vmul.f32 %v4382_v29, %v4382_v29 }
 0x5ae   :  { %2407 = vadd.xlane.f32.xlu1 %v2400_v37 }
 0x5f5   :  { %v2402_v13 = vpop.xlane.xlu1 %2401 }
 0x5f6   :  { %v2409_v43 = vmul.f32 %v2402_v13, %v4364_v41  ;;  %v2529_v13 = vld [vmem:[#allocation7 + $0x128] sm:$0xff] }
 0x5f8   :  { %v2413_v36 = vadd.f32 1e-05, %v2409_v43 }
 0x5fa   :  { %3086 = vrsqrt.f32 %v2413_v36  ;;  %vm2423_vm15 = vweird.f32 %v2413_v36 }
 0x5fd   :  { %v2404_v9 = vpop.xlane.xlu0 %2403 }
 0x5fe   :  { %v2410_v4 = vmul.f32 %v2404_v9, %v4364_v41 }
 0x600   :  { %v3087_v8 = vpop.eup %3086  ;;  %v2414_v26 = vadd.f32 1e-05, %v2410_v4 }
 0x601   :  { %v2418_v28 = vmul.f32 %v3087_v8, %v2413_v36  ;;  %vm2424_vm1 = vweird.f32 %v3087_v8 }
 0x602   :  { %3088 = vrsqrt.f32 %v2414_v26  ;;  %vm2425_vm2 = vmor %vm2423_vm15, %vm2424_vm1  ;;  %vm2433_vm6 = vweird.f32 %v2414_v26 }
 0x603   :  { %v2419_v59 = vmul.f32 %v3087_v8, %v2418_v28  ;;  %v2524_v28 = vld [vmem:[#allocation7 + $0x100] sm:$0xff] }
 0x605   :  { %v2420_v53 = vmul.f32 0.5, %v2419_v59  ;;  %v2952_v59 = vld [vmem:[#allocation8 + $0x4] ss:$0 sm:$0xff] }
 0x607   :  { %v2421_v34 = vsub.f32 1.5, %v2420_v53 }
 0x608   :  { %v3089_v19 = vpop.eup %3088 }
 0x609   :  { %v2422_v16 = vmul.f32 %v3087_v8, %v2421_v34  ;;  %v2428_v22 = vmul.f32 %v3089_v19, %v2414_v26  ;;  %vm2434_vm4 = vweird.f32 %v3089_v19  ;;  %v2525_v26 = vld [vmem:[#allocation7 + $0x108] sm:$0xff] }
 0x60a   :  { %vm2435_vm7 = vmor %vm2433_vm6, %vm2434_vm4 }
 0x60b   :  { %v2426_v30 = vsel %vm2425_vm2, %v3087_v8, %v2422_v16  ;;  %v2429_v21 = vmul.f32 %v3089_v19, %v2428_v22  ;;  %v2526_v8 = vld [vmem:[#allocation7 + $0x110] sm:$0xff] }
 0x60c   :  { %v2457_v11 = vmul.f32 %v2426_v30, %v4367_v35  ;;  %v2537_v35 = vld [vmem:[#allocation7 + $0x168] sm:$0xff] }
 0x60d   :  { %v2430_v51 = vmul.f32 0.5, %v2429_v21  ;;  %2544 = vmatpush.msra.mxu2 %v2537_v35 }
 0x60e   :  { %v2462_v48 = vmul.f32 %v4388_v61, %v2457_v11 }
 0x60f   :  { %v2431_v49 = vsub.f32 1.5, %v2430_v51  ;;  %2545 = vmatpush.msra.mxu2 %v2536_v23 }
 0x610   :  { %v4395_v14 = vadd.f32 %v4391_v20, %v2462_v48  ;;  %v2953_v48 = vld [vmem:[#allocation8 + $0x5] ss:$0 sm:$0xff] }
 0x611   :  { %v2432_v44 = vmul.f32 %v3089_v19, %v2431_v49  ;;  %2546 = vmatpush.msra.mxu2 %v2535_v31 }
 0x612   :  { %2506 = vmatmul.f32.vlgmr.msrb.gmra.mxu1 %v4395_v14 }
 0x613   :  { %v2436_v46 = vsel %vm2435_vm7, %v3089_v19, %v2432_v44  ;;  %2547 = vmatpush.msra.mxu2 %v2534_v50 }
 0x614   :  { %v2458_v2 = vmul.f32 %v2436_v46, %v4372_v1 }
 0x615   :  { %2548 = vmatpush.msra.mxu2 %v2533_v10 }
 0x616   :  { %v2463_v47 = vmul.f32 %v4388_v61, %v2458_v2 }
 0x617   :  { %2549 = vmatpush.msra.mxu2 %v2532_v7 }
 0x618   :  { %v4401_v24 = vadd.f32 %v4391_v20, %v2463_v47 }
 0x619   :  { %v2406_v40 = vpop.xlane.xlu2 %2405  ;;  %2550 = vmatpush.msra.mxu2 %v2531_v5 }
 0x61a   :  { %v2411_v54 = vmul.f32 %v2406_v40, %v4364_v41  ;;  %2509 = vmatmul.f32.gmra.mxu1 %v4401_v24 }
 0x61b   :  { %2551 = vmatpush.msra.mxu2 %v2530_v0 }
 0x61c   :  { %v2415_v15 = vadd.f32 1e-05, %v2411_v54 }
 0x61d   :  { %2552 = vmatpush.msra.mxu2 %v2529_v13 }
 0x61e   :  { %3090 = vrsqrt.f32 %v2415_v15  ;;  %vm2443_vm3 = vweird.f32 %v2415_v15 }
 0x61f   :  { %2553 = vmatpush.msra.mxu2 %v2528_v45 }
 0x621   :  { %v2408_v6 = vpop.xlane.xlu1 %2407  ;;  %2554 = vmatpush.msra.mxu2 %v2527_v52 }
 0x622   :  { %v2412_v39 = vmul.f32 %v2408_v6, %v4364_v41 }
 0x623   :  { %2555 = vmatpush.msra.mxu2 %v2526_v8  ;;  %v2955_v8 = vld [vmem:[#allocation8 + $0x9] ss:$0 sm:$0xff] }
 0x624   :  { %v3091_v1 = vpop.eup %3090  ;;  %v2416_v42 = vadd.f32 1e-05, %v2412_v39 }
 0x625   :  { %v2438_v55 = vmul.f32 %v3091_v1, %v2415_v15  ;;  %vm2444_vm9 = vweird.f32 %v3091_v1  ;;  %2556 = vmatpush.msra.mxu2 %v2525_v26 }
 0x626   :  { %3092 = vrsqrt.f32 %v2416_v42  ;;  %vm2445_vm5 = vmor %vm2443_vm3, %vm2444_vm9  ;;  %vm2453_vm10 = vweird.f32 %v2416_v42 }
 0x627   :  { %v2439_v27 = vmul.f32 %v3091_v1, %v2438_v55  ;;  %2557 = vmatpush.msra.mxu2 %v2524_v28 }
 0x629   :  { %v2440_v17 = vmul.f32 0.5, %v2439_v27 }
 0x62b   :  { %v2441_v37 = vsub.f32 1.5, %v2440_v17 }
 0x62c   :  { %v3093_v25 = vpop.eup %3092 }
 0x62d   :  { %v2442_v56 = vmul.f32 %v3091_v1, %v2441_v37  ;;  %v2448_v60 = vmul.f32 %v3093_v25, %v2416_v42  ;;  %vm2454_vm8 = vweird.f32 %v3093_v25 }
 0x62e   :  { %vm2455_vm11 = vmor %vm2453_vm10, %vm2454_vm8 }
 0x62f   :  { %v2449_v18 = vmul.f32 %v3093_v25, %v2448_v60  ;;  %v2446_v3 = vsel %vm2445_vm5, %v3091_v1, %v2442_v56 }
 0x630   :  { %v2459_v32 = vmul.f32 %v2446_v3, %v4377_v57 }
 0x631   :  { %v2450_v62 = vmul.f32 0.5, %v2449_v18 }
 0x632   :  { %v2464_v43 = vmul.f32 %v4388_v61, %v2459_v32 }
 0x633   :  { %v2451_v36 = vsub.f32 1.5, %v2450_v62 }
 0x634   :  { %v2469_v12 = vadd.f32 %v4391_v20, %v2464_v43 }
 0x635   :  { %v2452_v9 = vmul.f32 %v3093_v25, %v2451_v36 }
 0x636   :  { %2512 = vmatmul.f32.gmra.mxu1 %v2469_v12 }
 0x637   :  { %v2456_v38 = vsel %vm2455_vm11, %v3093_v25, %v2452_v9 }
 0x638   :  { %v2460_v57 = vmul.f32 %v2456_v38, %v4382_v29  ;;  %v2954_v38 = vld [vmem:[#allocation8 + $0x8] ss:$0 sm:$0xff] }
 0x63a   :  { %v2465_v4 = vmul.f32 %v4388_v61, %v2460_v57 }
 0x63c   :  { %v2470_v63 = vadd.f32 %v4391_v20, %v2465_v4 }
 0x63e   :  { %2515 = vmatmul.f32.gmra.mxu1 %v2470_v63 }
 0x68f   :  { %v2507_v53 = vpop.f32.mrf.mxu1 }
 0x690   :  { %v2508_v34 = vadd.f32 %v2952_v59, %v2507_v53 }
 0x692   :  { %v2519_v19 = vmax.f32 %v2508_v34, 0.0 }
 0x694   :  { %2558 = vmatmul.f32.vlgmr.msra.gmra.mxu2 %v2519_v19 }
 0x697   :  { %v2510_v16 = vpop.f32.mrf.mxu1 }
 0x698   :  { %v2511_v22 = vadd.f32 %v2952_v59, %v2510_v16 }
 0x69a   :  { %v2520_v30 = vmax.f32 %v2511_v22, 0.0 }
 0x69c   :  { %2561 = vmatmul.f32.gmra.mxu2 %v2520_v30 }
 0x6b3   :  { %v2513_v29 = vpop.f32.mrf.mxu1 }
 0x6b4   :  { %v2514_v61 = vadd.f32 %v2952_v59, %v2513_v29 }
 0x6b6   :  { %v2521_v21 = vmax.f32 %v2514_v61, 0.0 }
 0x6b8   :  { %2564 = vmatmul.f32.gmra.mxu2 %v2521_v21 }
 0x6bb   :  { %v2516_v11 = vpop.f32.mrf.mxu1 }
 0x6bc   :  { %v2517_v20 = vadd.f32 %v2952_v59, %v2516_v11 }
 0x6be   :  { %v2522_v51 = vmax.f32 %v2517_v20, 0.0 }
 0x6c0   :  { %2567 = vmatmul.f32.gmra.mxu2 %v2522_v51 }
 0x717   :  { %v2559_v49 = vpop.f32.mrf.mxu2 }
 0x718   :  { %v2560_v44 = vadd.f32 %v2953_v48, %v2559_v49 }
 0x71a   :  { %v2571_v46 = vadd.f32 %v2560_v44, %v4395_v14 }
 0x71c   :  { %2577 = vadd.xlane.f32.xlu0 %v2571_v46 }
 0x71f   :  { %v2562_v2 = vpop.f32.mrf.mxu2 }
 0x720   :  { %v2563_v47 = vadd.f32 %v2953_v48, %v2562_v2 }
 0x722   :  { %v2572_v40 = vadd.f32 %v2563_v47, %v4401_v24 }
 0x724   :  { %2579 = vadd.xlane.f32.xlu2 %v2572_v40 }
 0x73b   :  { %v2565_v54 = vpop.f32.mrf.mxu2 }
 0x73c   :  { %v2566_v15 = vadd.f32 %v2953_v48, %v2565_v54 }
 0x73e   :  { %v2573_v58 = vadd.f32 %v2566_v15, %v2469_v12 }
 0x740   :  { %2581 = vadd.xlane.f32.xlu1 %v2573_v58 }
 0x743   :  { %v2568_v33 = vpop.f32.mrf.mxu2 }
 0x744   :  { %v2569_v35 = vadd.f32 %v2953_v48, %v2568_v33 }
 0x746   :  { %v2574_v6 = vadd.f32 %v2569_v35, %v2470_v63 }
 0x748   :  { %2583 = vadd.xlane.f32.xlu0 %v2574_v6 }
 0x78f   :  { %v2578_v39 = vpop.xlane.xlu0 %2577 }
 0x790   :  { %v2585_v23 = vmul.f32 %v2578_v39, %v4364_v41 }
 0x792   :  { %v2589_v1 = vsub.f32 %v2571_v46, %v2585_v23 }
 0x794   :  { %v2593_v42 = vmul.f32 %v2589_v1, %v2589_v1 }
 0x796   :  { %2597 = vadd.xlane.f32.xlu2 %v2593_v42 }
 0x797   :  { %v2580_v14 = vpop.xlane.xlu2 %2579 }
 0x798   :  { %v2586_v31 = vmul.f32 %v2580_v14, %v4364_v41 }
 0x79a   :  { %v2590_v55 = vsub.f32 %v2572_v40, %v2586_v31 }
 0x79c   :  { %v2594_v24 = vmul.f32 %v2590_v55, %v2590_v55 }
 0x79e   :  { %2599 = vadd.xlane.f32.xlu1 %v2594_v24 }
 0x7b3   :  { %v2582_v50 = vpop.xlane.xlu1 %2581 }
 0x7b4   :  { %v2587_v27 = vmul.f32 %v2582_v50, %v4364_v41 }
 0x7b6   :  { %v4417_v10 = vsub.f32 %v2573_v58, %v2587_v27 }
 0x7b8   :  { %v2595_v17 = vmul.f32 %v4417_v10, %v4417_v10 }
 0x7ba   :  { %2601 = vadd.xlane.f32.xlu0 %v2595_v17 }
 0x7bb   :  { %v2584_v7 = vpop.xlane.xlu0 %2583 }
 0x7bc   :  { %v2588_v37 = vmul.f32 %v2584_v7, %v4364_v41 }
 0x7be   :  { %v4422_v25 = vsub.f32 %v2574_v6, %v2588_v37 }
 0x7c0   :  { %v2596_v5 = vmul.f32 %v4422_v25, %v4422_v25 }
 0x7c2   :  { %2603 = vadd.xlane.f32.xlu2 %v2596_v5 }
 0x809   :  { %v2598_v56 = vpop.xlane.xlu2 %2597 }
 0x80a   :  { %v2605_v60 = vmul.f32 %v2598_v56, %v4364_v41 }
 0x80c   :  { %v2609_v0 = vadd.f32 1e-05, %v2605_v60 }
 0x80e   :  { %3094 = vrsqrt.f32 %v2609_v0  ;;  %vm2619_vm13 = vweird.f32 %v2609_v0 }
 0x811   :  { %v2600_v18 = vpop.xlane.xlu1 %2599 }
 0x812   :  { %v2606_v3 = vmul.f32 %v2600_v18, %v4364_v41 }
 0x814   :  { %v3095_v32 = vpop.eup %3094  ;;  %v2610_v13 = vadd.f32 1e-05, %v2606_v3 }
 0x815   :  { %v2614_v62 = vmul.f32 %v3095_v32, %v2609_v0  ;;  %vm2620_vm12 = vweird.f32 %v3095_v32 }
 0x816   :  { %3096 = vrsqrt.f32 %v2610_v13  ;;  %vm2621_vm14 = vmor %vm2619_vm13, %vm2620_vm12  ;;  %vm2629_vm1 = vweird.f32 %v2610_v13 }
 0x817   :  { %v2615_v43 = vmul.f32 %v3095_v32, %v2614_v62 }
 0x819   :  { %v2616_v45 = vmul.f32 0.5, %v2615_v43 }
 0x81b   :  { %v2617_v36 = vsub.f32 1.5, %v2616_v45 }
 0x81c   :  { %v3097_v12 = vpop.eup %3096 }
 0x81d   :  { %v2618_v52 = vmul.f32 %v3095_v32, %v2617_v36  ;;  %v2624_v9 = vmul.f32 %v3097_v12, %v2610_v13  ;;  %vm2630_vm0 = vweird.f32 %v3097_v12 }
 0x81e   :  { %vm2631_vm15 = vmor %vm2629_vm1, %vm2630_vm0 }
 0x81f   :  { %v2622_v57 = vsel %vm2621_vm14, %v3095_v32, %v2618_v52  ;;  %v2625_v4 = vmul.f32 %v3097_v12, %v2624_v9 }
 0x820   :  { %v2653_v63 = vmul.f32 %v2622_v57, %v2589_v1 }
 0x821   :  { %v2626_v26 = vmul.f32 0.5, %v2625_v4 }
 0x822   :  { %v2658_v28 = vmul.f32 %v2954_v38, %v2653_v63 }
 0x823   :  { %v2627_v59 = vsub.f32 1.5, %v2626_v26 }
 0x824   :  { %v2663_v53 = vadd.f32 %v2955_v8, %v2658_v28 }
 0x825   :  { %v2628_v34 = vmul.f32 %v3097_v12, %v2627_v59 }
 0x826   :  { %2667 = vst [vmem:[#allocation10] sm:$0xff] %v2663_v53 }
 0x827   :  { %v2632_v19 = vsel %vm2631_vm15, %v3097_v12, %v2628_v34 }
 0x828   :  { %v2654_v16 = vmul.f32 %v2632_v19, %v2590_v55 }
 0x82a   :  { %v2659_v22 = vmul.f32 %v2954_v38, %v2654_v16 }
 0x82c   :  { %v2664_v30 = vadd.f32 %v2955_v8, %v2659_v22 }
 0x82d   :  { %v2602_v29 = vpop.xlane.xlu0 %2601 }
 0x82e   :  { %v2607_v61 = vmul.f32 %v2602_v29, %v4364_v41  ;;  %2668 = vst [vmem:[#allocation10 + $0x8] sm:$0xff] %v2664_v30 }
 0x830   :  { %v2611_v21 = vadd.f32 1e-05, %v2607_v61 }
 0x832   :  { %3098 = vrsqrt.f32 %v2611_v21  ;;  %vm2639_vm4 = vweird.f32 %v2611_v21 }
 0x835   :  { %v2604_v11 = vpop.xlane.xlu2 %2603 }
 0x836   :  { %v2608_v20 = vmul.f32 %v2604_v11, %v4364_v41 }
 0x838   :  { %v3099_v51 = vpop.eup %3098  ;;  %v2612_v48 = vadd.f32 1e-05, %v2608_v20 }
 0x839   :  { %v2634_v49 = vmul.f32 %v3099_v51, %v2611_v21  ;;  %vm2640_vm2 = vweird.f32 %v3099_v51 }
 0x83a   :  { %3100 = vrsqrt.f32 %v2612_v48  ;;  %vm2641_vm6 = vmor %vm2639_vm4, %vm2640_vm2  ;;  %vm2649_vm9 = vweird.f32 %v2612_v48 }
 0x83b   :  { %v2635_v44 = vmul.f32 %v3099_v51, %v2634_v49 }
 0x83d   :  { %v2636_v46 = vmul.f32 0.5, %v2635_v44 }
 0x83f   :  { %v2637_v2 = vsub.f32 1.5, %v2636_v46 }
 0x840   :  { %v3101_v47 = vpop.eup %3100 }
 0x841   :  { %v2638_v40 = vmul.f32 %v3099_v51, %v2637_v2  ;;  %v2644_v54 = vmul.f32 %v3101_v47, %v2612_v48  ;;  %vm2650_vm7 = vweird.f32 %v3101_v47 }
 0x842   :  { %vm2651_vm3 = vmor %vm2649_vm9, %vm2650_vm7 }
 0x843   :  { %v2642_v15 = vsel %vm2641_vm6, %v3099_v51, %v2638_v40  ;;  %v2645_v58 = vmul.f32 %v3101_v47, %v2644_v54 }
 0x844   :  { %v2655_v33 = vmul.f32 %v2642_v15, %v4417_v10 }
 0x845   :  { %v2646_v35 = vmul.f32 0.5, %v2645_v58 }
 0x846   :  { %v2660_v6 = vmul.f32 %v2954_v38, %v2655_v33 }
 0x847   :  { %v2647_v41 = vsub.f32 1.5, %v2646_v35 }
 0x848   :  { %v2665_v39 = vadd.f32 %v2955_v8, %v2660_v6 }
 0x849   :  { %v2648_v23 = vmul.f32 %v3101_v47, %v2647_v41 }
 0x84a   :  { %2669 = vst [vmem:[#allocation10 + $0x10] sm:$0xff] %v2665_v39 }
 0x84b   :  { %v2652_v1 = vsel %vm2651_vm3, %v3101_v47, %v2648_v23 }
 0x84c   :  { %v2656_v42 = vmul.f32 %v2652_v1, %v4422_v25 }
 0x84e   :  { %v2661_v14 = vmul.f32 %v2954_v38, %v2656_v42 }
 0x850   :  { %v2666_v31 = vadd.f32 %v2955_v8, %v2661_v14 }
 0x852   :  { %2670 = vst [vmem:[#allocation10 + $0x18] sm:$0xff] %v2666_v31 }
 0x853   :  { %2683 = dma.vmem_to_hbm [thread:$0]  %s2676_s17, 512, %s2678_s20, [#allocation4], %s3238_s27, %s3238_s27, %s3239_s28  }
 0x854   :  { %3232 = dma.done.wait [#allocation4], 512  }
 0x855   :  { %3233 = vsyncadd [#allocation4], 4294966784 }
 0x856   :  { %2688 = vsyncpa [#allocation3], 1 }
 0x857   :  { %2689 = vsyncpa [#allocation6], 1 }
 0x858   :  { %2690 = vsyncpa [#allocation9], 1 }
 0x859   :  { %2691 = vsyncpa [#allocation4], 1 }

</bundles_post_ra>
